<compile_context>
chip_gen: v7x
topology: tpu7x:2x2x1
jax: 0.10.0
libtpu: 0.0.40
codegen_flags: <defaults>
</compile_context>

<pallas_src>
import jax
import jax.numpy as jnp
from jax import lax
from jax.experimental import pallas as pl
from jax.experimental.pallas import tpu as pltpu

DIVISOR = 8 * 7 * 7          # hard-coded constant in the PyTorch module (== 392)
_INV_DIVISOR = 1.0 / DIVISOR


def _sigmoid_tanh(x):
    # sigmoid(x) == 0.5 * (tanh(0.5 * x) + 1): one EUP transcendental per element.
    return 0.5 * (jnp.tanh(0.5 * x) + 1.0)


def _tbp_kernel(yf_ref, ys_ref, o_ref):
    # yf_ref: (N, C)  full pre-activation block for this batch element
    # ys_ref: (N, TC) row-slab of the same block (columns [j*TC, (j+1)*TC))
    # o_ref : (TC, C) Gram-output row slab
    C = yf_ref.shape[1]

    # Activations; bf16 feeds the MXU at full rate (f32 accumulation below).
    sf = _sigmoid_tanh(yf_ref[...].astype(jnp.float32)).astype(jnp.bfloat16)
    ss = _sigmoid_tanh(ys_ref[...].astype(jnp.float32)).astype(jnp.bfloat16)

    # Algebraic L2 norm of the signed-sqrt vector.  Since s > 0 every Gram
    # entry g > 0, hence z^2 = g + 1e-8 exactly and
    #   ||z||^2 = sum_{c,d} g[c,d] + C^2*1e-8
    #           = (sum_n (sum_c s[n,c])^2) / 392 + C^2*1e-8.
    sf32 = sf.astype(jnp.float32)                      # exact bf16 -> f32 cast
    col = jnp.sum(sf32, axis=1, keepdims=True)         # (N, 1) cross-lane reduce
    sumsq = jnp.sum(col * col) * _INV_DIVISOR          # scalar
    norm2 = sumsq + (float(C) * float(C)) * 1e-8
    # F.normalize(eps=1e-12): 1 / max(norm, 1e-12) == rsqrt(max(norm^2, 1e-24)).
    inv_norm = lax.rsqrt(jnp.maximum(norm2, 1e-24))

    # Gram row slab on the MXU: contract the leading N axis of both operands.
    g = lax.dot_general(ss, sf, (((0,), (0,)), ((), ())),
                        preferred_element_type=jnp.float32)   # (TC, C)

    # Fused epilogue (sign(g) == 1 always): sqrt -> normalize -> sigmoid.
    z = jnp.sqrt(g * _INV_DIVISOR + 1e-8) * inv_norm
    o_ref[...] = _sigmoid_tanh(z).astype(o_ref.dtype)


def temporal_bilinear_pool3d(x, row_tile=256):
    """x: (B, C, T, H, W) float32 -> (B, C*C) float32."""
    B, C, T, H, W = x.shape
    N = T * H * W
    # Layout glue (plain JAX): present activations as (B, N, C) so that the
    # lane dim is C and the contraction dim N sits on sublanes -> no padding,
    # no in-kernel transpose.
    y = jnp.transpose(x.reshape(B, C, N), (0, 2, 1))

    # Row-tile the (C, C) output when the tile is lane-aligned; else one tile.
    if C % row_tile == 0 and row_tile % 128 == 0:
        tc = row_tile
    else:
        tc = C
    n_row = C // tc

    out = pl.pallas_call(
        _tbp_kernel,
        out_shape=jax.ShapeDtypeStruct((B, C, C), jnp.float32),
        grid_spec=pltpu.PrefetchScalarGridSpec(
            num_scalar_prefetch=0,
            grid=(B, n_row),
            in_specs=[
                # Full (N, C) block: same block for every row tile of a batch.
                pl.BlockSpec((None, N, C), lambda b, j: (b, 0, 0)),
                # (N, TC) column slab -> LHS rows of this Gram tile.
                pl.BlockSpec((None, N, tc), lambda b, j: (b, 0, j)),
            ],
            out_specs=pl.BlockSpec((None, tc, C), lambda b, j: (b, j, 0)),
        ),
        compiler_params=pltpu.CompilerParams(
            dimension_semantics=("parallel", "parallel"),
        ),
    )(y, y)
    return out.reshape(B, C * C)


def _reference(x):
    # Pure-JAX f32 reference mirroring the PyTorch forward.
    B, C = x.shape[0], x.shape[1]
    s = jax.nn.sigmoid(x.astype(jnp.float32)).reshape(B, C, -1)
    g = jnp.einsum("bcn,bdn->bcd", s, s) / DIVISOR
    v = g.reshape(B, -1)
    v = jnp.sign(v) * jnp.sqrt(v + 1e-8)
    norm = jnp.sqrt(jnp.sum(v * v, axis=1, keepdims=True))
    v = v / jnp.maximum(norm, 1e-12)
    return jax.nn.sigmoid(v)


if __name__ == "__main__":
    key = jax.random.PRNGKey(0)
    # Small shape consistent with the module: the 8*7*7 divisor fixes T,H,W;
    # C=256 with row_tile=128 exercises the row-tiled (2-tile) grid path.
    B, C, T, H, W = 2, 256, 8, 7, 7
    x = jax.random.normal(key, (B, C, T, H, W), dtype=jnp.float32)

    out = jax.block_until_ready(temporal_bilinear_pool3d(x, row_tile=128))
    ref = _reference(x)

    assert out.shape == (B, C * C), out.shape
    # bf16 MXU inputs (f32 accumulation) -> relaxed tolerance vs f32 reference.
    assert jnp.allclose(out, ref, atol=2e-3, rtol=2e-3), float(
        jnp.max(jnp.abs(out - ref))
    )
    print("KERNEL_OK")
</pallas_src>

<mosaic_0001>
module attributes {stable_mosaic.version = 11 : i64} {
  func.func @_tbp_kernel(%arg0: i32, %arg1: i32, %arg2: memref<1x392x256xf32, #tpu.memory_space<vmem>>, %arg3: memref<1x392x128xf32, #tpu.memory_space<vmem>>, %arg4: memref<1x128x256xf32, #tpu.memory_space<vmem>>) attributes {dimension_semantics = [#tpu.dimension_semantics<parallel>, #tpu.dimension_semantics<parallel>], iteration_bounds = array<i64: 2, 2>, scalar_prefetch = 0 : i64, scratch_operands = 0 : i64, tpu.core_type = #tpu.core_type<tc>, window_params = [{transform_indices = @transform_0, window_bounds = array<i64: 1, 392, 256>}, {transform_indices = @transform_1, window_bounds = array<i64: 1, 392, 128>}, {transform_indices = @transform_2, window_bounds = array<i64: 1, 128, 256>}]} {
    %c0 = arith.constant 0 : index
    %c0_0 = arith.constant 0 : index
    %c0_1 = arith.constant 0 : index
    %0 = vector.load %arg2[%c0, %c0_0, %c0_1] : memref<1x392x256xf32, #tpu.memory_space<vmem>>, vector<1x392x256xf32>
    %1 = vector.shape_cast %0 : vector<1x392x256xf32> to vector<392x256xf32>
    %cst = arith.constant 5.000000e-01 : f32
    %2 = vector.broadcast %cst : f32 to vector<392x256xf32>
    %3 = arith.mulf %2, %1 : vector<392x256xf32>
    %4 = math.tanh %3 : vector<392x256xf32>
    %cst_2 = arith.constant 1.000000e+00 : f32
    %5 = vector.broadcast %cst_2 : f32 to vector<392x256xf32>
    %6 = arith.addf %4, %5 : vector<392x256xf32>
    %cst_3 = arith.constant 5.000000e-01 : f32
    %7 = vector.broadcast %cst_3 : f32 to vector<392x256xf32>
    %8 = arith.mulf %7, %6 : vector<392x256xf32>
    %9 = arith.truncf %8 : vector<392x256xf32> to vector<392x256xbf16>
    %c0_4 = arith.constant 0 : index
    %c0_5 = arith.constant 0 : index
    %c0_6 = arith.constant 0 : index
    %10 = vector.load %arg3[%c0_4, %c0_5, %c0_6] : memref<1x392x128xf32, #tpu.memory_space<vmem>>, vector<1x392x128xf32>
    %11 = vector.shape_cast %10 : vector<1x392x128xf32> to vector<392x128xf32>
    %cst_7 = arith.constant 5.000000e-01 : f32
    %12 = vector.broadcast %cst_7 : f32 to vector<392x128xf32>
    %13 = arith.mulf %12, %11 : vector<392x128xf32>
    %14 = math.tanh %13 : vector<392x128xf32>
    %cst_8 = arith.constant 1.000000e+00 : f32
    %15 = vector.broadcast %cst_8 : f32 to vector<392x128xf32>
    %16 = arith.addf %14, %15 : vector<392x128xf32>
    %cst_9 = arith.constant 5.000000e-01 : f32
    %17 = vector.broadcast %cst_9 : f32 to vector<392x128xf32>
    %18 = arith.mulf %17, %16 : vector<392x128xf32>
    %19 = arith.truncf %18 : vector<392x128xf32> to vector<392x128xbf16>
    %20 = arith.extf %9 : vector<392x256xbf16> to vector<392x256xf32>
    %cst_10 = arith.constant dense<0.000000e+00> : vector<392xf32>
    %21 = vector.multi_reduction <add>, %20, %cst_10 [1] : vector<392x256xf32> to vector<392xf32>
    %22 = vector.shape_cast %21 : vector<392xf32> to vector<392x1xf32>
    %23 = arith.mulf %22, %22 : vector<392x1xf32>
    %24 = vector.shape_cast %23 : vector<392x1xf32> to vector<1x392x1xf32>
    %cst_11 = arith.constant dense<0.000000e+00> : vector<1xf32>
    %25 = vector.multi_reduction <add>, %24, %cst_11 [1, 2] : vector<1x392x1xf32> to vector<1xf32>
    %26 = vector.shape_cast %25 : vector<1xf32> to vector<1x1x1xf32>
    %27 = vector.extract %26[0, 0, 0] : f32 from vector<1x1x1xf32>
    %cst_12 = arith.constant 0.00255102036 : f32
    %28 = arith.mulf %27, %cst_12 : f32
    %cst_13 = arith.constant 6.553600e-04 : f32
    %29 = arith.addf %28, %cst_13 : f32
    %cst_14 = arith.constant 1.000000e-24 : f32
    %30 = arith.maximumf %29, %cst_14 : f32
    %31 = math.rsqrt %30 : f32
    %cst_15 = arith.constant dense<0.000000e+00> : vector<128x256xf32>
    %32 = tpu.matmul %19, %9, %cst_15 {dimension_numbers = #tpu.dot_dimension_numbers<[0], [0], [1], [1], [0, 1, 1, 1], [], []>} : vector<392x128xbf16>, vector<392x256xbf16>, vector<128x256xf32> -> vector<128x256xf32>
    %cst_16 = arith.constant 0.00255102036 : f32
    %33 = vector.broadcast %cst_16 : f32 to vector<128x256xf32>
    %34 = arith.mulf %32, %33 : vector<128x256xf32>
    %cst_17 = arith.constant 9.99999993E-9 : f32
    %35 = vector.broadcast %cst_17 : f32 to vector<128x256xf32>
    %36 = arith.addf %34, %35 : vector<128x256xf32>
    %37 = math.sqrt %36 : vector<128x256xf32>
    %38 = vector.broadcast %31 : f32 to vector<128x256xf32>
    %39 = arith.mulf %37, %38 : vector<128x256xf32>
    %cst_18 = arith.constant 5.000000e-01 : f32
    %40 = vector.broadcast %cst_18 : f32 to vector<128x256xf32>
    %41 = arith.mulf %40, %39 : vector<128x256xf32>
    %42 = math.tanh %41 : vector<128x256xf32>
    %cst_19 = arith.constant 1.000000e+00 : f32
    %43 = vector.broadcast %cst_19 : f32 to vector<128x256xf32>
    %44 = arith.addf %42, %43 : vector<128x256xf32>
    %cst_20 = arith.constant 5.000000e-01 : f32
    %45 = vector.broadcast %cst_20 : f32 to vector<128x256xf32>
    %46 = arith.mulf %45, %44 : vector<128x256xf32>
    %c0_21 = arith.constant 0 : index
    %c0_22 = arith.constant 0 : index
    %c0_23 = arith.constant 0 : index
    %47 = vector.load %arg4[%c0_21, %c0_22, %c0_23] : memref<1x128x256xf32, #tpu.memory_space<vmem>>, vector<1x128x256xf32>
    %48 = vector.shape_cast %47 : vector<1x128x256xf32> to vector<128x256xf32>
    %49 = vector.shape_cast %46 : vector<128x256xf32> to vector<1x128x256xf32>
    tpu.vector_store %arg4[%c0_21, %c0_22, %c0_23], %49 {strides = array<i32>} : memref<1x128x256xf32, #tpu.memory_space<vmem>>, vector<1x128x256xf32>,
    return
  }
  func.func @transform_0(%arg0: i32, %arg1: i32) -> (i32, i32, i32) {
    %c0_i32 = arith.constant 0 : i32
    %c0_i32_0 = arith.constant 0 : i32
    %c0_i32_1 = arith.constant 0 : i32
    return %arg0, %c0_i32, %c0_i32_0 : i32, i32, i32
  }
  func.func @transform_1(%arg0: i32, %arg1: i32) -> (i32, i32, i32) {
    %c0_i32 = arith.constant 0 : i32
    %c0_i32_0 = arith.constant 0 : i32
    return %arg0, %c0_i32, %arg1 : i32, i32, i32
  }
  func.func @transform_2(%arg0: i32, %arg1: i32) -> (i32, i32, i32) {
    %c0_i32 = arith.constant 0 : i32
    %c0_i32_0 = arith.constant 0 : i32
    return %arg0, %arg1, %c0_i32 : i32, i32, i32
  }
}

</mosaic_0001>

<bundles_post_ra>
// kernel: tpu_custom_call.1
= control target key start
LH: loop header
LB: loop body
LE: loop exit
PB: predicated region body
PF: predicated region fallthrough
CT: control target
= control target key end

     0   :  { %s4986_s0 = inlined_call_operand.hbm [shape: f32[2,392,256], index: 0, kind: input, shape index: {}]   ;;  %s4987_s1 = inlined_call_operand.hbm [shape: f32[2,392,256], index: 1, kind: input, shape index: {}]   ;;  %s4988_s2 = inlined_call_operand.hbm [shape: f32[2,256,256], index: 2, kind: output, shape index: {}]  }
   0x1   :  { %4998 = sst [smem:[#allocation14_spill]] %s4986_s0 }
   0x2   :  { %7 = vsyncpa [#allocation3], 0 }
   0x3   :  { %9 = vsyncpa [#allocation3 + $0x1], 0 }
   0x4   :  { %10 = vsyncpa [#allocation6], 0 }
   0x5   :  { %12 = vsyncpa [#allocation6 + $0x1], 0 }
   0x6   :  { %13 = vsyncpa [#allocation4], 0 }
   0x7   :  { %15 = vsyncpa [#allocation4 + $0x1], 0  ;;  %s3189_s9 = smov 0   ;;  %s3191_s10 = smov 0  }
   0x8   :  { %s3193_s11 = smov 0   ;;  %s3195_s12 = smov 0  }
   0x9   :  { %s3197_s13 = smov 0   ;;  %s3199_s14 = smov 0  }
   0xa   :  { %s3201_s15 = smov 0   ;;  %s3203_s16 = smov 0  }
   0xb   :  { %s3205_s17 = smov 0   ;;  %s3207_s18 = smov 0  }
   0xc   :  { %s3209_s19 = smov 0  }
   0xd LB: > { %s2370_s20 = sadd.s32 4294967295, %s3162_s19   ;;  %s33_s21 = sadd.s32 1, %s3158_s18  ;;  %s3162_s19 = sphi %s3209_s19, %s21_s19   ;;  %s3158_s18 = sphi %s3207_s18, %s5033_s18   ;;  %s3154_s17 = sphi %s3205_s17, %s5032_s17   ;;  %s3150_s16 = sphi %s3203_s16, %s5031_s16   ;;  %s3146_s15 = sphi %s3201_s15, %s5030_s15   ;;  %s3142_s14 = sphi %s3199_s14, %s5029_s14   ;;  %s3138_s13 = sphi %s3197_s13, %s5028_s13   ;;  %s3134_s12 = sphi %s3195_s12, %s5027_s12   ;;  %s3130_s11 = sphi %s3193_s11, %s5026_s11   ;;  %s3126_s10 = sphi %s3191_s10, %s5025_s10   ;;  %s3122_s9 = sphi %s3189_s9, %s5024_s9  }
   0xe   : > { %s40_s22 = sadd.s32 1, %s3142_s14  ;;  %p47_p0 = scmp.ne.s32.totalorder %s3142_s14, %s3138_s13 }
   0xf   : > { %p4990_p1 = scmp.eq.s32.totalorder %s3162_s19, 0  ;;  %p53_p2 = scmp.ne.s32.totalorder %s3138_s13, %s3134_s12 }
  0x10   : > { %p3251_p3 = scmp.eq.s32.totalorder %s2370_s20, 0  ;;  %p4989_p5 = scmp.lt.s32.totalorder %s3162_s19, 4 }
  0x11   : > { %p49_p4 = por %p4990_p1, %p47_p0  ;;  %s133_s25 = sand.u32 1, %s3142_s14  }
  0x12   : > { %p3260_p6 = por %p3251_p3, %p53_p2  ;;  %s2427_s26 = smul.u32 784, %s133_s25 }
  0x13   : > { %s2428_s27 = smul.u32 12544, %s3158_s18  ;;  %p3268_p7 = pnand %p4989_p5, %p49_p4 }
  0x14   : > { %s5000_s24 = scalar_select %p3260_p6, 1, 0 }
  0x15   : > { %s5002_s0 = sld [smem:[#allocation14_spill]]  ;;  %s137_s4 = scalar_lea.vmem [#allocation2], %s2427_s26 }
  0x16   : > { %s144_s5 = sshll.u32 %s137_s4, 4  ;;  %s3280_s6 = scalar_lea.sflag [#allocation3], %s133_s25  ;;  %s3277_s5 = int_to_ptr.vmem [resolvable:$true] %s144_s5 }
  0x17   : > { %p2978_p10 = pneg %p3268_p7 }
  0x1b   : > { %s3275_s3 = scalar_lea.hbm %s5002_s0, %s2428_s27  ;;  %s2981_s27 = scalar_lea.hbm %s5002_s0, 25088 }
  0x1c   : > { %s2976_s7 = scalar_lea.hbm %s3275_s3, 12544  ;;  %p2982_p13 = scmp.lt.u32.totalorder %s3275_s3, %s5002_s0 }
  0x1d   : > { %p2977_p9 = scmp.ne.s32.totalorder %s3275_s3, %s2976_s7  ;;  %p2983_p0 = scmp.lt.u32.totalorder %s2981_s27, %s2976_s7 }
  0x1e   : > { %p2985_p4 = scmp.lt.u32.totalorder %s2976_s7, %s3275_s3 }
  0x1f   : > { %p2979_p11 = pnand %p2978_p10, %p2977_p9  ;;  %p2984_p2 = por %p2983_p0, %p2982_p13 }
  0x21   : > { %p2980_p12 = pneg %p2979_p11  ;;  %p2986_p5 = por %p2985_p4, %p2984_p2 }
  0x23   : > { %p2987_p1 = pnand %p2986_p5, %p2980_p12 }
  0x25   : > { %2990 = shalt.err (!%p2987_p1)
}
  0x26   : > { %s2991_s25 = scalar_lea.vmem %s3277_s5, 12544  ;;  %s3164_s30 = smov [#allocation2]  }
  0x27   : > { %p2992_p9 = scmp.ne.s32.totalorder %s3277_s5, %s2991_s25  ;;  %s2996_s4 = sshll.u32 %s3164_s30, 4  ;;  %s2997_s4 = int_to_ptr.vmem [resolvable:$false] %s2996_s4 }
  0x28   : > { %s2998_s8 = scalar_lea.vmem %s2997_s4, 25088  ;;  %p2999_p6 = scmp.lt.s32.totalorder %s3277_s5, %s2997_s4 }
  0x29   : > { %p2994_p11 = pnand %p2992_p9, %p2978_p10  ;;  %p3000_p13 = scmp.lt.s32.totalorder %s2998_s8, %s2991_s25 }
  0x2b   : > { %p2995_p8 = pneg %p2994_p11  ;;  %p3001_p0 = por %p3000_p13, %p2999_p6 }
  0x2d   : > { %p3002_p2 = pnand %p3001_p0, %p2995_p8 }
  0x2f   : > { %3005 = shalt.err (!%p3002_p2)
}
  0x30   : > { %s4992_s7 = smov 256   ;;  %s3166_s12 = smov 16  }
  0x31   : > { %2446 = dma.hbm_to_vmem [thread:$0]  (!%p3268_p7), %s3275_s3, 12544, %s3277_s5, %s3280_s6, %s4992_s7, %s4992_s7, %s3166_s12  }
  0x32   : > { %p174_p1 = scmp.lt.s32.totalorder %s3162_s19, 5  ;;  %p5003_p5 = scmp.ge.s32.totalorder %s3162_s19, 1 }
  0x33   : > { %s2371_s29 = sadd.s32 4294967294, %s3162_s19   ;;  %s30_s26 = sadd.s32 1, %s3154_s17 }
  0x34   : > { %p3313_p6 = pnand %p5003_p5, %p174_p1  ;;  %p31_p8 = scmp.ge.s32.totalorder %s30_s26, 2 }
  0x35   : > { %s68_s25 = sadd.s32 1, %s3130_s11  ;;  %p75_p10 = scmp.ne.s32.totalorder %s3130_s11, %s3126_s10 }
  0x36   : > { %p81_p12 = scmp.ne.s32.totalorder %s3126_s10, %s3122_s9  ;;  %s5035_s26 = smov (%p31_p8, %s30_s26), 0 }
  0x37   : > { %5005 = sst [smem:[#allocation11_spill]] %s5035_s26  ;;  %s5037_s21 = smov (!%p31_p8, %s33_s21), %s3158_s18 }
  0x38   : > { %s64_s28 = ssub.s32 %s3154_s17, %s5035_s26  ;;  %p5006_p7 = scmp.eq.s32.totalorder %s3162_s19, 0 }
  0x39   : > { %p35_p9 = scmp.ge.s32.totalorder %s5037_s21, 2  ;;  %p3339_p11 = por %p81_p12, %p3251_p3 }
  0x3a   : > { %p3333_p4 = por %p75_p10, %p5006_p7  ;;  %p107_p13 = scmp.eq.s32.totalorder %s2370_s20, 3 }
  0x3b   : > { %s5008_s5 = scalar_select %p3339_p11, 1, 0 }
  0x3c   : > { %p113_p0 = scmp.eq.s32.totalorder %s2371_s29, 3  ;;  %s5039_s21 = smov (%p35_p9, %s5037_s21), 0 }
  0x3d   : > { %5009 = sst [smem:[#allocation12_spill]] %s5039_s21  ;;  %p3347_p2 = por %p107_p13, %p75_p10 }
  0x3e   : > { %p3351_p1 = por %p113_p0, %p81_p12  ;;  %s37_s23 = ssub.s32 %s3158_s18, %s5039_s21 }
  0x3f   : > { %s5010_s6 = scalar_select %p3347_p2, 1, 0 }
  0x40   : > { %s5011_s30 = scalar_select %p3351_p1, 1, 0 }
  0x41   : > { %s154_s4 = sand.u32 1, %s3130_s11   ;;  %p38_p3 = scmp.eq.s32.totalorder %s37_s23, 0 }
  0x42   : > { %5012 = sst [smem:[#allocation13_spill]] %s5011_s30  ;;  %s65_s8 = sor.u32 %s64_s28, %s37_s23 }
  0x43   : > { %p66_p5 = scmp.eq.s32.totalorder %s65_s8, 0  ;;  %s2429_s29 = smul.u32 392, %s154_s4 }
  0x44   : > { %s3361_s12 = scalar_select %p38_p3, %s3142_s14, %s40_s22  }
  0x45   : > { %s3364_s20 = scalar_select %p66_p5, %s3130_s11, %s68_s25  }
  0x46   : > { %p5013_p8 = scmp.lt.s32.totalorder %s3162_s19, 4  ;;  %s2430_s0 = smul.u32 98, %s3158_s18 }
  0x47   : > { %s158_s26 = scalar_lea.vmem [#allocation5], %s2429_s29  ;;  %s3383_s3 = scalar_lea.sflag [#allocation6], %s154_s4 }
  0x48   : > { %p3370_p10 = pnand %p5013_p8, %p3333_p4  ;;  %s163_s21 = sadd.s32 %s3154_s17, %s2430_s0 }
  0x49   : > { %s166_s30 = sshll.u32 %s158_s26, 4  ;;  %s2375_s28 = sshll.u32 %s163_s21, 7  ;;  %s3376_s30 = int_to_ptr.vmem [resolvable:$true] %s166_s30 }
  0x4a   : > { %s3381_s25 = scalar_lea.hbm %s4987_s1, %s2375_s28  ;;  %p3008_p7 = pneg %p3370_p10 }
  0x4b   : > { %s3006_s8 = scalar_lea.hbm %s3381_s25, 6272  ;;  %s3011_s26 = scalar_lea.hbm %s4987_s1, 25088 }
  0x4c   : > { %p3007_p12 = scmp.ne.s32.totalorder %s3381_s25, %s3006_s8  ;;  %p3012_p13 = scmp.lt.u32.totalorder %s3381_s25, %s4987_s1 }
  0x4d   : > { %p3013_p0 = scmp.lt.u32.totalorder %s3011_s26, %s3006_s8  ;;  %p3015_p5 = scmp.lt.u32.totalorder %s3006_s8, %s3381_s25 }
  0x4e   : > { %p3009_p4 = pnand %p3008_p7, %p3007_p12 }
  0x4f   : > { %p3014_p3 = por %p3013_p0, %p3012_p13 }
  0x50   : > { %p3010_p9 = pneg %p3009_p4 }
  0x51   : > { %p3016_p8 = por %p3015_p5, %p3014_p3 }
  0x53   : > { %p3017_p1 = pnand %p3016_p8, %p3010_p9 }
  0x55   : > { %3020 = shalt.err (!%p3017_p1)
}
  0x56   : > { %s3021_s4 = scalar_lea.vmem %s3376_s30, 6272  ;;  %s3167_s22 = smov [#allocation5]  }
  0x57   : > { %p3022_p12 = scmp.ne.s32.totalorder %s3376_s30, %s3021_s4  ;;  %s3026_s23 = sshll.u32 %s3167_s22, 4  ;;  %s3027_s23 = int_to_ptr.vmem [resolvable:$false] %s3026_s23 }
  0x58   : > { %s3028_s0 = scalar_lea.vmem %s3027_s23, 12544  ;;  %p3029_p11 = scmp.lt.s32.totalorder %s3376_s30, %s3027_s23 }
  0x59   : > { %p3024_p4 = pnand %p3022_p12, %p3008_p7  ;;  %p3030_p13 = scmp.lt.s32.totalorder %s3028_s0, %s3021_s4 }
  0x5b   : > { %p3025_p2 = pneg %p3024_p4  ;;  %p3031_p0 = por %p3030_p13, %p3029_p11 }
  0x5d   : > { %p3032_p3 = pnand %p3031_p0, %p3025_p2 }
  0x5f   : > { %3035 = shalt.err (!%p3032_p3)
}
  0x60   : > { %s3168_s8 = smov 128   ;;  %s3169_s21 = smov 8  }
  0x61   : > { %s5015_s26 = smov 256   ;;  %178 = sbr.rel (%p3313_p6) target bundleno = 833 (0x341), region = 28 }
  0x62   : > { %2449 = dma.hbm_to_vmem [thread:$0]  (!%p3370_p10), %s3381_s25, 6272, %s3376_s30, %s3383_s3, %s5015_s26, %s3168_s8, %s3169_s21  }
  0x63   : > { %s180_s29 = sand.u32 (!%p3313_p6), 1, %s3138_s13   ;;  %p5016_p11 = scmp.ne.s32.totalorder (!%p3313_p6), %s5000_s24, 0 }
  0x64   : > { %s2431_s28 = smul.u32 (!%p3313_p6), 784, %s180_s29  ;;  %s181_s4 = scalar_lea.sflag (!%p3313_p6), [#allocation3], %s180_s29 }
  0x66   : > { %s3415_s22 = scalar_lea.vmem (!%p3313_p6), [#allocation2], %s2431_s28 }
  0x68   : > { %3109 = dma.done.wait (%p5016_p11), %s181_s4, 12544  }
  0x69   : > { %3111 = vsyncadd (%p5016_p11), %s181_s4, 4294954752  ;;  %s3422_s7 = sand.u32 1, %s3126_s10   ;;  %p5017_p6 = scmp.ne.s32.totalorder %s5008_s5, 0 }
  0x6a   : > { %s2432_s27 = smul.u32 392, %s3422_s7  ;;  %s190_s30 = scalar_lea.sflag [#allocation6], %s3422_s7 }
  0x6c   : > { %s3426_s25 = scalar_lea.vmem [#allocation5], %s2432_s27 }
  0x6d   : > { %3113 = dma.done.wait (%p5017_p6), %s190_s30, 6272  }
  0x6e   : > { %3115 = vsyncadd (%p5017_p6), %s190_s30, 4294961024  ;;  %v777_v0 = vld [vmem:[%s3426_s25 + $0x80] sm:$0xff]  ;;  %v778_v1 = vld [vmem:[%s3426_s25 + $0x88] sm:$0xff]  ;;  %vm1325_vm0 = vcmask 7168   ;;  %vm1502_vm1 = vcmask 64512   ;;  %vm1527_vm2 = vcmask 1043456  }
  0x6f   : > { %v779_v2 = vld [vmem:[%s3426_s25 + $0x90] sm:$0xff]  ;;  %v826_v3 = vmul.f32 0.5, %v777_v0  ;;  %v827_v4 = vmul.f32 0.5, %v778_v1  ;;  %v780_v5 = vld [vmem:[%s3426_s25 + $0x98] sm:$0xff]  ;;  %v221_v7 = vld [vmem:[%s3415_s22] sm:$0xff]  ;;  %s2377_s21 = sshll.u32 %s3422_s7, 8 }
  0x70   : > { %v828_v6 = vmul.f32 0.5, %v779_v2  ;;  %v222_v8 = vld [vmem:[%s3415_s22 + $0x8] sm:$0xff]  ;;  %v829_v9 = vmul.f32 0.5, %v780_v5  ;;  %v223_v10 = vld [vmem:[%s3415_s22 + $0x10] sm:$0xff]  ;;  %v224_v11 = vld [vmem:[%s3415_s22 + $0x18] sm:$0xff]  ;;  %v319_v13 = vmul.f32 0.5, %v221_v7 }
  0x71   : > { %v781_v12 = vld [vmem:[%s3426_s25 + $0xa0] sm:$0xff]  ;;  %2552 = vtanh.f32 %v826_v3  ;;  %v782_v14 = vld [vmem:[%s3426_s25 + $0xa8] sm:$0xff]  ;;  %v783_v15 = vld [vmem:[%s3426_s25 + $0xb0] sm:$0xff]  ;;  %v320_v17 = vmul.f32 0.5, %v222_v8  ;;  %v321_v18 = vmul.f32 0.5, %v223_v10  ;;  %v322_v19 = vmul.f32 0.5, %v224_v11 }
  0x72   : > { %v784_v16 = vld [vmem:[%s3426_s25 + $0xb8] sm:$0xff]  ;;  %2554 = vtanh.f32 %v827_v4  ;;  %v785_v20 = vld [vmem:[%s3426_s25 + $0xc0] sm:$0xff]  ;;  %v786_v21 = vld [vmem:[%s3426_s25 + $0xc8] sm:$0xff]  ;;  %v830_v23 = vmul.f32 0.5, %v781_v12  ;;  %v831_v24 = vmul.f32 0.5, %v782_v14  ;;  %v832_v25 = vmul.f32 0.5, %v783_v15 }
  0x73   : > { %v787_v22 = vld [vmem:[%s3426_s25 + $0xd0] sm:$0xff]  ;;  %2556 = vtanh.f32 %v828_v6  ;;  %v788_v26 = vld [vmem:[%s3426_s25 + $0xd8] sm:$0xff]  ;;  %v789_v27 = vld [vmem:[%s3426_s25 + $0xe0] sm:$0xff]  ;;  %v833_v29 = vmul.f32 0.5, %v784_v16  ;;  %v834_v30 = vmul.f32 0.5, %v785_v20  ;;  %v3450_v31 = vmul.f32 0.5, %v786_v21 }
  0x74   : > { %v790_v28 = vld [vmem:[%s3426_s25 + $0xe8] sm:$0xff]  ;;  %2558 = vtanh.f32 %v829_v9  ;;  %v791_v32 = vld [vmem:[%s3426_s25 + $0xf0] sm:$0xff]  ;;  %v792_v33 = vld [vmem:[%s3426_s25 + $0xf8] sm:$0xff]  ;;  %v3455_v35 = vmul.f32 0.5, %v787_v22  ;;  %v3457_v36 = vmul.f32 0.5, %v788_v26  ;;  %v3459_v37 = vmul.f32 0.5, %v789_v27 }
  0x75   : > { %v793_v34 = vld [vmem:[%s3426_s25 + $0x100] sm:$0xff]  ;;  %2560 = vtanh.f32 %v319_v13  ;;  %v794_v38 = vld [vmem:[%s3426_s25 + $0x108] sm:$0xff]  ;;  %v795_v39 = vld [vmem:[%s3426_s25 + $0x110] sm:$0xff]  ;;  %v3464_v41 = vmul.f32 0.5, %v790_v28  ;;  %v3466_v42 = vmul.f32 0.5, %v791_v32  ;;  %v3468_v43 = vmul.f32 0.5, %v792_v33 }
  0x76   : > { %v796_v40 = vld [vmem:[%s3426_s25 + $0x118] sm:$0xff]  ;;  %2562 = vtanh.f32 %v320_v17  ;;  %v797_v44 = vld [vmem:[%s3426_s25 + $0x120] sm:$0xff]  ;;  %v798_v45 = vld [vmem:[%s3426_s25 + $0x128] sm:$0xff]  ;;  %v3473_v47 = vmul.f32 0.5, %v793_v34  ;;  %v3475_v48 = vmul.f32 0.5, %v794_v38  ;;  %v3477_v49 = vmul.f32 0.5, %v795_v39 }
  0x77   : > { %v799_v46 = vld [vmem:[%s3426_s25 + $0x130] sm:$0xff]  ;;  %2564 = vtanh.f32 %v321_v18  ;;  %v800_v50 = vld [vmem:[%s3426_s25 + $0x138] sm:$0xff]  ;;  %v801_v51 = vld [vmem:[%s3426_s25 + $0x140] sm:$0xff]  ;;  %v3482_v53 = vmul.f32 0.5, %v796_v40  ;;  %v3484_v54 = vmul.f32 0.5, %v797_v44  ;;  %v3486_v55 = vmul.f32 0.5, %v798_v45 }
  0x78   : > { %v802_v52 = vld [vmem:[%s3426_s25 + $0x148] sm:$0xff]  ;;  %2566 = vtanh.f32 %v322_v19  ;;  %v803_v56 = vld [vmem:[%s3426_s25 + $0x150] sm:$0xff]  ;;  %v804_v57 = vld [vmem:[%s3426_s25 + $0x158] sm:$0xff]  ;;  %v3491_v59 = vmul.f32 0.5, %v799_v46  ;;  %v3493_v60 = vmul.f32 0.5, %v800_v50  ;;  %v3495_v61 = vmul.f32 0.5, %v801_v51 }
  0x79   : > { %v809_v58 = vld [vmem:[%s3426_s25 + $0x180] sm:$0xff]  ;;  %2568 = vtanh.f32 %v830_v23  ;;  %v806_v63 = vld [vmem:[%s3426_s25 + $0x168] sm:$0xff]  ;;  %v807_v0 = vld [vmem:[%s3426_s25 + $0x170] sm:$0xff]  ;;  %v3500_v1 = vmul.f32 0.5, %v802_v52  ;;  %v3502_v2 = vmul.f32 0.5, %v803_v56  ;;  %v3504_v3 = vmul.f32 0.5, %v804_v57 }
  0x7a   : > { %v805_v62 = vld [vmem:[%s3426_s25 + $0x160] sm:$0xff]  ;;  %2570 = vtanh.f32 %v831_v24  ;;  %v808_v4 = vld [vmem:[%s3426_s25 + $0x178] sm:$0xff]  ;;  %v226_v6 = vld [vmem:[%s3415_s22 + $0x28] sm:$0xff]  ;;  %v3509_v8 = vmul.f32 0.5, %v809_v58  ;;  %v3513_v10 = vmul.f32 0.5, %v806_v63  ;;  %v3516_v14 = vmul.f32 0.5, %v807_v0 }
  0x7b   : > { %v225_v5 = vld [vmem:[%s3415_s22 + $0x20] sm:$0xff]  ;;  %v2553_v7 = vpop.eup %2552  ;;  %2572 = vtanh.f32 %v832_v25  ;;  %v3511_v9 = vmul.f32 0.5, %v805_v62  ;;  %v227_v11 = vld [vmem:[%s3415_s22 + $0x30] sm:$0xff]  ;;  %v3518_v15 = vmul.f32 0.5, %v808_v4  ;;  %v228_v16 = vld [vmem:[%s3415_s22 + $0x38] sm:$0xff]  ;;  %v3523_v20 = vmul.f32 0.5, %v226_v6 }
  0x7c   : > { %v2555_v12 = vpop.eup %2554  ;;  %v924_v13 = vadd.f32 1.0, %v2553_v7  ;;  %2574 = vtanh.f32 %v833_v29  ;;  %v3521_v19 = vmul.f32 0.5, %v225_v5  ;;  %v761_v21 = vld [vmem:[%s3426_s25] sm:$0xff]  ;;  %v3527_v25 = vmul.f32 0.5, %v227_v11  ;;  %v763_v45 = vld [vmem:[%s3426_s25 + $0x10] sm:$0xff]  ;;  %v764_v52 = vld [vmem:[%s3426_s25 + $0x18] sm:$0xff] }
  0x7d   : > { %v2557_v17 = vpop.eup %2556  ;;  %v925_v18 = vadd.f32 1.0, %v2555_v12  ;;  %2576 = vtanh.f32 %v834_v30  ;;  %v3530_v29 = vmul.f32 0.5, %v228_v16  ;;  %v762_v30 = vld [vmem:[%s3426_s25 + $0x8] sm:$0xff]  ;;  %v3534_v38 = vmul.f32 0.5, %v761_v21  ;;  %s3170_s23 = smov 1e-24  }
  0x7e   : > { %v2559_v22 = vpop.eup %2558  ;;  %v973_v23 = vmul.f32 0.5, %v924_v13  ;;  %v926_v24 = vadd.f32 1.0, %v2557_v17  ;;  %2578 = vtanh.f32 %v3450_v31  ;;  %v3539_v51 = vmul.f32 0.5, %v762_v30  ;;  %s4873_s26 = scalar_lea.vmem [#allocation7], %s2377_s21  ;;  %s2394_s29 = sshll.u32 %s3146_s15, 5 }
  0x7f   : > { %v2561_v26 = vpop.eup %2560  ;;  %v974_v27 = vmul.f32 0.5, %v925_v18  ;;  %v927_v28 = vadd.f32 1.0, %v2559_v22  ;;  %2580 = vtanh.f32 %v3455_v35  ;;  %v3547_v6 = vmul.f32 0.5, %v764_v52  ;;  %v765_v18 = vld [vmem:[%s3426_s25 + $0x20] sm:$0xff]  ;;  %s2390_s28 = sshll.u32 %s3150_s16, 6  ;;  %s2258_s16 = sshll.u32 %s4873_s26, 4  ;;  %s4920_s16 = int_to_ptr.vmem [resolvable:$true] %s2258_s16 }
  0x80   : > { %v2563_v32 = vpop.eup %2562  ;;  %v975_v33 = vmul.f32 0.5, %v926_v24  ;;  %v515_v34 = vadd.f32 1.0, %v2561_v26  ;;  %2582 = vtanh.f32 %v3457_v36  ;;  %s2255_s4 = sadd.s32 %s2394_s29, %s2390_s28  ;;  %p5018_p1 = scmp.ne.s32.totalorder %s5010_s6, 0 }
  0x81   : > { %v2565_v31 = vpop.eup %2564  ;;  %v1014_v39 = vpack.c.bf16 %v974_v27, %v973_v23  ;;  %v976_v40 = vmul.f32 0.5, %v927_v28  ;;  %v516_v44 = vadd.f32 1.0, %v2563_v32  ;;  %2584 = vtanh.f32 %v3459_v37  ;;  %v766_v32 = vld [vmem:[%s3426_s25 + $0x28] sm:$0xff]  ;;  %s2391_s15 = sshll.u32 %s2255_s4, 7 }
  0x82   : > { %v2567_v46 = vpop.eup %2566  ;;  %v517_v35 = vadd.f32 1.0, %v2565_v31  ;;  %v613_v50 = vmul.f32 0.5, %v515_v34  ;;  %2586 = vtanh.f32 %v3464_v41  ;;  %v3544_v37 = vmul.f32 0.5, %v763_v45  ;;  %s4918_s30 = scalar_lea.hbm %s4988_s2, %s2391_s15 }
  0x83   : > { %v2569_v56 = vpop.eup %2568  ;;  %1454 = vxpose.xlu1.c.b16.start [1/8] %v1014_v39, 128  ;;  %v1015_v36 = vpack.c.bf16 %v976_v40, %v975_v33  ;;  %v518_v57 = vadd.f32 1.0, %v2567_v46  ;;  %v614_v58 = vmul.f32 0.5, %v516_v44  ;;  %2588 = vtanh.f32 %v3466_v42  ;;  %v767_v39 = vld [vmem:[%s3426_s25 + $0x30] sm:$0xff] }
  0x84   : > { %v2571_v62 = vpop.eup %2570  ;;  %v615_v63 = vmul.f32 0.5, %v517_v35  ;;  %v928_v0 = vadd.f32 1.0, %v2569_v56  ;;  %2590 = vtanh.f32 %v3468_v43 }
  0x85   : > { %v2573_v4 = vpop.eup %2572  ;;  %v616_v41 = vmul.f32 0.5, %v518_v57  ;;  %v929_v5 = vadd.f32 1.0, %v2571_v62  ;;  %2592 = vtanh.f32 %v3473_v47  ;;  %v3561_v62 = vmul.f32 0.5, %v767_v39 }
  0x86   : > { %v2575_v7 = vpop.eup %2574  ;;  %v711_v11 = vpack.c.bf16 %v615_v63, %v613_v50  ;;  %v977_v12 = vmul.f32 0.5, %v928_v0  ;;  %v930_v13 = vadd.f32 1.0, %v2573_v4  ;;  %2594 = vtanh.f32 %v3475_v48 }
  0x87   : > { %v2577_v42 = vpop.eup %2576  ;;  %1455 = vxpose.xlu1.c.b16.cont [2/8] %v1015_v36, 128  ;;  %v712_v43 = vpack.c.bf16 %v616_v41, %v614_v58  ;;  %v978_v16 = vmul.f32 0.5, %v929_v5  ;;  %v931_v17 = vadd.f32 1.0, %v2575_v7  ;;  %2596 = vtanh.f32 %v3477_v49  ;;  %v768_v5 = vld [vmem:[%s3426_s25 + $0x38] sm:$0xff] }
  0x88   : > { %v2579_v21 = vpop.eup %2578  ;;  %v1031_v22 = vunpack.c.l.bf16 %v711_v11  ;;  %v1033_v47 = vunpack.c.h.bf16 %v711_v11  ;;  %v979_v23 = vmul.f32 0.5, %v930_v13  ;;  %v932_v24 = vadd.f32 1.0, %v2577_v42 }
  0x89   : > { %v2581_v26 = vpop.eup %2580  ;;  %v1032_v27 = vunpack.c.l.bf16 %v712_v43  ;;  %v1016_v28 = vpack.c.bf16 %v978_v16, %v977_v12  ;;  %v1034_v30 = vunpack.c.h.bf16 %v712_v43  ;;  %v980_v48 = vmul.f32 0.5, %v931_v17  ;;  %1534 = vmatprep.subr.bf16.mxu1 %v712_v43 }
  0x8a   : > { %v2583_v33 = vpop.eup %2582  ;;  %v933_v34 = vadd.f32 1.0, %v2579_v21  ;;  %v934_v31 = vadd.f32 1.0, %v2581_v26  ;;  %2598 = vtanh.f32 %v3482_v53  ;;  %v3554_v49 = vmul.f32 0.5, %v765_v18  ;;  %1535 = vmatpush1.bf16.msra.mxu1 %v711_v11 }
  0x8b   : > { %v2585_v40 = vpop.eup %2584  ;;  %v1129_v44 = vadd.f32 %v1032_v27, %v1031_v22  ;;  %1456 = vxpose.xlu1.c.b16.cont [3/8] %v1016_v28, 128  ;;  %v1017_v45 = vpack.c.bf16 %v980_v48, %v979_v23  ;;  %v981_v46 = vmul.f32 0.5, %v932_v24  ;;  %v935_v35 = vadd.f32 1.0, %v2583_v33  ;;  %v771_v22 = vld [vmem:[%s3426_s25 + $0x50] sm:$0xff]  ;;  %v772_v24 = vld [vmem:[%s3426_s25 + $0x58] sm:$0xff]  ;;  %v773_v28 = vld [vmem:[%s3426_s25 + $0x60] sm:$0xff] }
  0x8c   : > { %v2587_v50 = vpop.eup %2586  ;;  %v982_v52 = vmul.f32 0.5, %v933_v34  ;;  %v936_v56 = vadd.f32 1.0, %v2585_v40  ;;  %2600 = vtanh.f32 %v3484_v54  ;;  %v3558_v36 = vmul.f32 0.5, %v766_v32  ;;  %v775_v34 = vld [vmem:[%s3426_s25 + $0x70] sm:$0xff]  ;;  %v776_v40 = vld [vmem:[%s3426_s25 + $0x78] sm:$0xff] }
  0x8d   : > { %v2589_v57 = vpop.eup %2588  ;;  %1130 = vadd.xlane.f32.xlu0 %v1129_v44  ;;  %v1132_v53 = vadd.f32 %v1034_v30, %v1033_v47  ;;  %v937_v58 = vadd.f32 1.0, %v2587_v50  ;;  %2602 = vtanh.f32 %v3486_v55  ;;  %v983_v0 = vmul.f32 0.5, %v934_v31  ;;  %v769_v55 = vld [vmem:[%s3426_s25 + $0x40] sm:$0xff]  ;;  %v774_v30 = vld [vmem:[%s3426_s25 + $0x68] sm:$0xff] }
  0x8e   : > { %v2591_v63 = vpop.eup %2590  ;;  %v984_v4 = vmul.f32 0.5, %v935_v35  ;;  %v938_v41 = vadd.f32 1.0, %v2589_v57  ;;  %2604 = vtanh.f32 %v3491_v59  ;;  %v1018_v7 = vpack.c.bf16 %v982_v52, %v981_v46  ;;  %v770_v59 = vld [vmem:[%s3426_s25 + $0x48] sm:$0xff]  ;;  %v231_v52 = vld [vmem:[%s3415_s22 + $0x50] sm:$0xff]  ;;  %s2242_s25 = scalar_lea.sflag [#allocation4], %s3422_s7 }
  0x8f   : > { %v2593_v54 = vpop.eup %2592  ;;  %1457 = vxpose.xlu1.c.b16.cont [4/8] %v1017_v45, 128  ;;  %v3565_v11 = vmul.f32 0.5, %v936_v56  ;;  %v939_v12 = vadd.f32 1.0, %v2591_v63  ;;  %2606 = vtanh.f32 %v3493_v60  ;;  %v3569_v42 = vmul.f32 0.5, %v937_v58  ;;  %v229_v44 = vld [vmem:[%s3415_s22 + $0x40] sm:$0xff]  ;;  %v230_v50 = vld [vmem:[%s3415_s22 + $0x48] sm:$0xff]  ;;  %v232_v58 = vld [vmem:[%s3415_s22 + $0x58] sm:$0xff] }
  0x90   : > { %v2595_v13 = vpop.eup %2594  ;;  %v3571_v43 = vmul.f32 0.5, %v938_v41  ;;  %v940_v16 = vadd.f32 1.0, %v2593_v54  ;;  %2608 = vtanh.f32 %v3495_v61  ;;  %v3578_v60 = vmul.f32 0.5, %v768_v5  ;;  %v233_v63 = vld [vmem:[%s3415_s22 + $0x60] sm:$0xff] }
  0x91   : > { %v2597_v17 = vpop.eup %2596  ;;  %1133 = vadd.xlane.f32.xlu0 %v1132_v53  ;;  %v3575_v18 = vmul.f32 0.5, %v939_v12  ;;  %v941_v21 = vadd.f32 1.0, %v2595_v13  ;;  %2610 = vtanh.f32 %v3500_v1  ;;  %v3584_v61 = vmul.f32 0.5, %v769_v55 }
  0x92   : > { %v3581_v47 = vmul.f32 0.5, %v940_v16  ;;  %v942_v23 = vadd.f32 1.0, %v2597_v17  ;;  %2612 = vtanh.f32 %v3502_v2  ;;  %v1019_v26 = vpack.c.bf16 %v984_v4, %v983_v0 }
  0x93   : > { %1458 = vxpose.xlu1.c.b16.cont [5/8] %v1018_v7, 128  ;;  %v3587_v27 = vmul.f32 0.5, %v941_v21  ;;  %2614 = vtanh.f32 %v3504_v3  ;;  %v3590_v1 = vmul.f32 0.5, %v770_v59  ;;  %v1020_v32 = vpack.c.bf16 %v3569_v42, %v3565_v11  ;;  %v234_v11 = vld [vmem:[%s3415_s22 + $0x68] sm:$0xff] }
  0x94   : > { %v2599_v48 = vpop.eup %2598  ;;  %v1021_v2 = vpack.c.bf16 %v3575_v18, %v3571_v43  ;;  %2616 = vtanh.f32 %v3509_v8  ;;  %v3599_v33 = vmul.f32 0.5, %v771_v22  ;;  %v3602_v3 = vmul.f32 0.5, %v942_v23 }
  0x95   : > { %v943_v31 = vadd.f32 1.0, %v2599_v48  ;;  %2618 = vtanh.f32 %v3511_v9  ;;  %v3605_v39 = vmul.f32 0.5, %v772_v24  ;;  %v1022_v46 = vpack.c.bf16 %v3587_v27, %v3581_v47  ;;  %v239_v47 = vld [vmem:[%s3415_s22 + $0x90] sm:$0xff] }
  0x96   : > { %v2601_v45 = vpop.eup %2600  ;;  %2620 = vtanh.f32 %v3513_v10  ;;  %v3612_v8 = vmul.f32 0.5, %v773_v28  ;;  %v3614_v35 = vmul.f32 0.5, %v774_v30  ;;  %v3621_v53 = vmul.f32 0.5, %v775_v34 }
  0x97   : > { %v2603_v56 = vpop.eup %2602  ;;  %1459 = vxpose.xlu1.c.b16.cont [6/8] %v1019_v26, 128  ;;  %v3618_v9 = vmul.f32 0.5, %v943_v31  ;;  %v944_v57 = vadd.f32 1.0, %v2601_v45  ;;  %2622 = vtanh.f32 %v3516_v14  ;;  %v3626_v4 = vmul.f32 0.5, %v776_v40  ;;  %v237_v45 = vld [vmem:[%s3415_s22 + $0x80] sm:$0xff] }
  0x98   : > { %v2605_v10 = vpop.eup %2604  ;;  %v945_v0 = vadd.f32 1.0, %v2603_v56  ;;  %2624 = vtanh.f32 %v3518_v15  ;;  %v3628_v41 = vmul.f32 0.5, %v229_v44  ;;  %v3631_v7 = vmul.f32 0.5, %v230_v50  ;;  %v235_v15 = vld [vmem:[%s3415_s22 + $0x70] sm:$0xff] }
  0x99   : > { %v2607_v5 = vpop.eup %2606  ;;  %v946_v54 = vadd.f32 1.0, %v2605_v10  ;;  %2626 = vtanh.f32 %v3521_v19  ;;  %v3633_v14 = vmul.f32 0.5, %v231_v52  ;;  %v3637_v13 = vmul.f32 0.5, %v232_v58 }
  0x9a   : > { %v2609_v12 = vpop.eup %2608  ;;  %v947_v55 = vadd.f32 1.0, %v2607_v5  ;;  %2628 = vtanh.f32 %v3523_v20  ;;  %v3640_v42 = vmul.f32 0.5, %v233_v63  ;;  %v1023_v59 = vpack.c.bf16 %v3618_v9, %v3602_v3 }
  0x9b   : > { %v2611_v16 = vpop.eup %2610  ;;  %1460 = vxpose.xlu1.c.b16.cont [7/8] %v1020_v32, 128  ;;  %v3644_v19 = vmul.f32 0.5, %v944_v57  ;;  %v948_v17 = vadd.f32 1.0, %v2609_v12  ;;  %2630 = vtanh.f32 %v3527_v25  ;;  %v3647_v22 = vmul.f32 0.5, %v945_v0  ;;  %v238_v57 = vld [vmem:[%s3415_s22 + $0x88] sm:$0xff] }
  0x9c   : > { %v2613_v21 = vpop.eup %2612  ;;  %v949_v20 = vadd.f32 1.0, %v2611_v16  ;;  %2632 = vtanh.f32 %v3530_v29  ;;  %v3650_v23 = vmul.f32 0.5, %v234_v11  ;;  %v3652_v26 = vmul.f32 0.5, %v946_v54  ;;  %v236_v29 = vld [vmem:[%s3415_s22 + $0x78] sm:$0xff] }
  0x9d   : > { %v2615_v24 = vpop.eup %2614  ;;  %v950_v28 = vadd.f32 1.0, %v2613_v21  ;;  %2634 = vtanh.f32 %v3534_v38  ;;  %v3655_v30 = vmul.f32 0.5, %v235_v15  ;;  %v3657_v25 = vmul.f32 0.5, %v947_v55 }
  0x9e   : > { %v2617_v48 = vpop.eup %2616  ;;  %v3659_v32 = vmul.f32 0.5, %v948_v17  ;;  %v951_v34 = vadd.f32 1.0, %v2615_v24  ;;  %2636 = vtanh.f32 %v3539_v51  ;;  %v3666_v40 = vmul.f32 0.5, %v949_v20 }
  0x9f   : > { %v2619_v31 = vpop.eup %2618  ;;  %1461 = vxpose.xlu1.c.b16.end [8/8] %v1021_v2, 128  ;;  %v3668_v38 = vmul.f32 0.5, %v950_v28  ;;  %v956_v44 = vadd.f32 1.0, %v2617_v48  ;;  %2638 = vtanh.f32 %v3544_v37  ;;  %v1024_v52 = vpack.c.bf16 %v3647_v22, %v3644_v19 }
  0xa0   : > { %v2621_v50 = vpop.eup %2620  ;;  %v3674_v56 = vmul.f32 0.5, %v951_v34  ;;  %v952_v51 = vadd.f32 1.0, %v2619_v31  ;;  %2640 = vtanh.f32 %v3547_v6  ;;  %v3681_v58 = vmul.f32 0.5, %v236_v29 }
  0xa1   : > { %v2623_v43 = vpop.eup %2622  ;;  %v3678_v18 = vmul.f32 0.5, %v956_v44  ;;  %v953_v2 = vadd.f32 1.0, %v2621_v50  ;;  %2642 = vtanh.f32 %v3554_v49  ;;  %v1025_v63 = vpack.c.bf16 %v3657_v25, %v3652_v26 }
  0xa2   : > { %v2625_v37 = vpop.eup %2624  ;;  %v954_v10 = vadd.f32 1.0, %v2623_v43  ;;  %2644 = vtanh.f32 %v3558_v36  ;;  %v3686_v0 = vmul.f32 0.5, %v237_v45  ;;  %v1026_v49 = vpack.c.bf16 %v3666_v40, %v3659_v32 }
  0xa3   : > { %v2627_v6 = vpop.eup %2626  ;;  %1470 = vxpose.xlu1.c.b16.start [1/8] %v1022_v46, 128  ;;  %v1027_v5 = vpack.c.bf16 %v3674_v56, %v3668_v38  ;;  %2646 = vtanh.f32 %v3561_v62  ;;  %v3696_v54 = vmul.f32 0.5, %v238_v57  ;;  %v3698_v12 = vmul.f32 0.5, %v952_v51 }
  0xa4   : > { %v2629_v11 = vpop.eup %2628  ;;  %v3700_v36 = vmul.f32 0.5, %v953_v2  ;;  %v519_v55 = vadd.f32 1.0, %v2627_v6  ;;  %2648 = vtanh.f32 %v3578_v60  ;;  %v1030_v46 = vpack.c.bf16 %v3678_v18, %v3678_v18  ;;  %v241_v6 = vld [vmem:[%s3415_s22 + $0xa0] sm:$0xff] }
  0xa5   : > { %v2631_v27 = vpop.eup %2630  ;;  %v955_v15 = vadd.f32 1.0, %v2625_v37  ;;  %v520_v16 = vadd.f32 1.0, %v2629_v11  ;;  %2650 = vtanh.f32 %v3584_v61  ;;  %v3707_v19 = vmul.f32 0.5, %v954_v10  ;;  %v242_v11 = vld [vmem:[%s3415_s22 + $0xa8] sm:$0xff] }
  0xa6   : > { %v2633_v62 = vpop.eup %2632  ;;  %v521_v17 = vadd.f32 1.0, %v2631_v27  ;;  %v617_v21 = vmul.f32 0.5, %v519_v55  ;;  %2652 = vtanh.f32 %v3590_v1  ;;  %v3714_v24 = vmul.f32 0.5, %v239_v47 }
  0xa7   : > { %v2635_v22 = vpop.eup %2634  ;;  %1471 = vxpose.xlu1.c.b16.cont [2/8] %v1023_v59, 128  ;;  %v522_v60 = vadd.f32 1.0, %v2633_v62  ;;  %v618_v20 = vmul.f32 0.5, %v520_v16  ;;  %2654 = vtanh.f32 %v3599_v33  ;;  %v1028_v28 = vpack.c.bf16 %v3700_v36, %v3698_v12  ;;  %v240_v59 = vld [vmem:[%s3415_s22 + $0x98] sm:$0xff] }
  0xa8   : > { %v2637_v61 = vpop.eup %2636  ;;  %v619_v48 = vmul.f32 0.5, %v521_v17  ;;  %v908_v34 = vadd.f32 1.0, %v2635_v22  ;;  %2656 = vtanh.f32 %v3605_v39  ;;  %v3719_v29 = vmul.f32 0.5, %v955_v15 }
  0xa9   : > { %v2639_v1 = vpop.eup %2638  ;;  %v620_v3 = vmul.f32 0.5, %v522_v60  ;;  %v909_v9 = vadd.f32 1.0, %v2637_v61  ;;  %2658 = vtanh.f32 %v3612_v8  ;;  %v3729_v10 = vmul.f32 0.5, %v240_v59 }
  0xaa   : > { %v2641_v31 = vpop.eup %2640  ;;  %v713_v33 = vpack.c.bf16 %v619_v48, %v617_v21  ;;  %v3723_v44 = vmul.f32 0.5, %v908_v34  ;;  %v910_v45 = vadd.f32 1.0, %v2639_v1  ;;  %2660 = vtanh.f32 %v3614_v35 }
  0xab   : > { %v2643_v50 = vpop.eup %2642  ;;  %1472 = vxpose.xlu1.c.b16.cont [3/8] %v1024_v52, 128  ;;  %v714_v39 = vpack.c.bf16 %v620_v3, %v618_v20  ;;  %v3726_v51 = vmul.f32 0.5, %v909_v9  ;;  %v911_v57 = vadd.f32 1.0, %v2641_v31  ;;  %2662 = vtanh.f32 %v3621_v53 }
  0xac   : > { %v2645_v43 = vpop.eup %2644  ;;  %v1035_v8 = vunpack.c.l.bf16 %v713_v33  ;;  %v1037_v2 = vunpack.c.h.bf16 %v713_v33  ;;  %v912_v37 = vadd.f32 1.0, %v2643_v50  ;;  %v3733_v35 = vmul.f32 0.5, %v910_v45 }
  0xad   : > { %v2647_v55 = vpop.eup %2646  ;;  %v1036_v47 = vunpack.c.l.bf16 %v714_v39  ;;  %v1038_v27 = vunpack.c.h.bf16 %v714_v39  ;;  %v3735_v52 = vmul.f32 0.5, %v911_v57  ;;  %1536 = vmatprep.subr.bf16.mxu1 %v714_v39  ;;  %v1029_v53 = vpack.c.bf16 %v3719_v29, %v3707_v19 }
  0xae   : > { %v2649_v15 = vpop.eup %2648  ;;  %v913_v16 = vadd.f32 1.0, %v2645_v43  ;;  %v914_v62 = vadd.f32 1.0, %v2647_v55  ;;  %2664 = vtanh.f32 %v3626_v4  ;;  %1537 = vmatpush1.bf16.msra.mxu1 %v713_v33  ;;  %v1006_v21 = vpack.c.bf16 %v3726_v51, %v3723_v44  ;;  %v243_v33 = vld [vmem:[%s3415_s22 + $0xb0] sm:$0xff] }
  0xaf   : > { %v2651_v17 = vpop.eup %2650  ;;  %1473 = vxpose.xlu1.c.b16.cont [4/8] %v1025_v63, 128  ;;  %v915_v22 = vadd.f32 1.0, %v2649_v15  ;;  %v3745_v60 = vmul.f32 0.5, %v241_v6  ;;  %v3747_v20 = vmul.f32 0.5, %v242_v11  ;;  %v3749_v48 = vadd.f32 %v1036_v47, %v1035_v8  ;;  %v244_v8 = vld [vmem:[%s3415_s22 + $0xb8] sm:$0xff]  ;;  %v263_v51 = vld [vmem:[%s3415_s22 + $0x150] sm:$0xff] }
  0xb0   : > { %v2653_v61 = vpop.eup %2652  ;;  %v3751_v34 = vmul.f32 0.5, %v912_v37  ;;  %v916_v4 = vadd.f32 1.0, %v2651_v17  ;;  %2666 = vtanh.f32 %v3628_v41  ;;  %v3754_v26 = vadd.f32 %v1038_v27, %v1037_v2  ;;  %v247_v27 = vld [vmem:[%s3415_s22 + $0xd0] sm:$0xff]  ;;  %v248_v15 = vld [vmem:[%s3415_s22 + $0xd8] sm:$0xff] }
  0xb1   : > { %v2655_v1 = vpop.eup %2654  ;;  %v1007_v25 = vpack.c.bf16 %v3735_v52, %v3733_v35  ;;  %v917_v63 = vadd.f32 1.0, %v2653_v61  ;;  %2668 = vtanh.f32 %v3631_v7  ;;  %v3759_v9 = vmul.f32 0.5, %v913_v16  ;;  %v251_v61 = vld [vmem:[%s3415_s22 + $0xf0] sm:$0xff] }
  0xb2   : > { %v2657_v3 = vpop.eup %2656  ;;  %v3761_v59 = vmul.f32 0.5, %v914_v62  ;;  %v918_v31 = vadd.f32 1.0, %v2655_v1  ;;  %2670 = vtanh.f32 %v3633_v14  ;;  %v3768_v45 = vmul.f32 0.5, %v915_v22  ;;  %v250_v62 = vld [vmem:[%s3415_s22 + $0xe8] sm:$0xff] }
  0xb3   : > { %v2659_v41 = vpop.eup %2658  ;;  %1474 = vxpose.xlu1.c.b16.cont [5/8] %v1026_v49, 128  ;;  %v3770_v50 = vmul.f32 0.5, %v916_v4  ;;  %v919_v7 = vadd.f32 1.0, %v2657_v3  ;;  %2672 = vtanh.f32 %v3637_v13  ;;  %v3773_v57 = vmul.f32 0.5, %v917_v63  ;;  %v245_v13 = vld [vmem:[%s3415_s22 + $0xc0] sm:$0xff]  ;;  %v252_v4 = vld [vmem:[%s3415_s22 + $0xf8] sm:$0xff] }
  0xb4   : > { %v2661_v39 = vpop.eup %2660  ;;  %v3775_v43 = vmul.f32 0.5, %v918_v31  ;;  %v920_v14 = vadd.f32 1.0, %v2659_v41  ;;  %2674 = vtanh.f32 %v3640_v42  ;;  %v341_v2 = vmul.f32 0.5, %v243_v33  ;;  %v246_v42 = vld [vmem:[%s3415_s22 + $0xc8] sm:$0xff] }
  0xb5   : > { %v2663_v32 = vpop.eup %2662  ;;  %v3779_v40 = vmul.f32 0.5, %v919_v7  ;;  %v921_v49 = vadd.f32 1.0, %v2661_v39  ;;  %2676 = vtanh.f32 %v3650_v23  ;;  %v1008_v37 = vpack.c.bf16 %v3759_v9, %v3751_v34  ;;  %v286_v7 = vld [vmem:[%s3415_s22 + $0x208] sm:$0xff] }
  0xb6   : > { %v3785_v6 = vmul.f32 0.5, %v920_v14  ;;  %v922_v11 = vadd.f32 1.0, %v2663_v32  ;;  %2678 = vtanh.f32 %v3655_v30  ;;  %v1009_v23 = vpack.c.bf16 %v3768_v45, %v3761_v59  ;;  %v288_v32 = vld [vmem:[%s3415_s22 + $0x218] sm:$0xff] }
  0xb7   : > { %1475 = vxpose.xlu1.c.b16.cont [6/8] %v1027_v5, 128  ;;  %v3794_v55 = vmul.f32 0.5, %v921_v49  ;;  %2680 = vtanh.f32 %v3681_v58  ;;  %v342_v47 = vmul.f32 0.5, %v244_v8  ;;  %v1010_v30 = vpack.c.bf16 %v3773_v57, %v3770_v50  ;;  %v249_v5 = vld [vmem:[%s3415_s22 + $0xe0] sm:$0xff]  ;;  %v266_v50 = vld [vmem:[%s3415_s22 + $0x168] sm:$0xff] }
  0xb8   : > { %v2665_v16 = vpop.eup %2664  ;;  %v1011_v38 = vpack.c.bf16 %v3779_v40, %v3775_v43  ;;  %2682 = vtanh.f32 %v3686_v0  ;;  %v343_v56 = vmul.f32 0.5, %v245_v13  ;;  %v3806_v22 = vmul.f32 0.5, %v922_v11 }
  0xb9   : > { %v923_v17 = vadd.f32 1.0, %v2665_v16  ;;  %2684 = vtanh.f32 %v3696_v54  ;;  %v344_v58 = vmul.f32 0.5, %v246_v42  ;;  %v1012_v63 = vpack.c.bf16 %v3794_v55, %v3785_v6  ;;  %v269_v55 = vld [vmem:[%s3415_s22 + $0x180] sm:$0xff] }
  0xba   : > { %v2667_v1 = vpop.eup %2666  ;;  %2686 = vtanh.f32 %v3714_v24  ;;  %v345_v0 = vmul.f32 0.5, %v247_v27  ;;  %v3814_v3 = vmul.f32 0.5, %v248_v15  ;;  %v3820_v54 = vmul.f32 0.5, %v249_v5 }
  0xbb   : > { %v2669_v31 = vpop.eup %2668  ;;  %1476 = vxpose.xlu1.c.b16.cont [7/8] %v1028_v28, 128  ;;  %v523_v33 = vadd.f32 1.0, %v2667_v1  ;;  %2688 = vtanh.f32 %v3729_v10  ;;  %v3822_v41 = vmul.f32 0.5, %v250_v62  ;;  %v3826_v24 = vmul.f32 0.5, %v251_v61  ;;  %v285_v10 = vld [vmem:[%s3415_s22 + $0x200] sm:$0xff] }
  0xbc   : > { %v2671_v39 = vpop.eup %2670  ;;  %v524_v14 = vadd.f32 1.0, %v2669_v31  ;;  %2690 = vtanh.f32 %v3745_v60  ;;  %v3828_v8 = vmul.f32 0.5, %v252_v4  ;;  %v3831_v36 = vmul.f32 0.5, %v923_v17 }
  0xbd   : > { %v2673_v12 = vpop.eup %2672  ;;  %v525_v28 = vadd.f32 1.0, %v2671_v39  ;;  %v621_v49 = vmul.f32 0.5, %v523_v33  ;;  %2692 = vtanh.f32 %v3747_v20  ;;  %v3838_v42 = vmul.f32 0.5, %v286_v7 }
  0xbe   : > { %v2675_v13 = vpop.eup %2674  ;;  %1486 = vxpose.xlu0.c.b16.start.end [1/1] (short) %v1030_v46, 128  ;;  %v526_v60 = vadd.f32 1.0, %v2673_v12  ;;  %v622_v11 = vmul.f32 0.5, %v524_v14  ;;  %2694 = vtanh.f32 %v341_v2  ;;  %v3843_v20 = vmul.f32 0.5, %v288_v32  ;;  %v287_v46 = vld [vmem:[%s3415_s22 + $0x210] sm:$0xff] }
  0xbf   : > { %v2677_v27 = vpop.eup %2676  ;;  %1477 = vxpose.xlu1.c.b16.end [8/8] %v1029_v53, 128  ;;  %v623_v15 = vmul.f32 0.5, %v525_v28  ;;  %v527_v16 = vadd.f32 1.0, %v2675_v13  ;;  %2696 = vtanh.f32 %v342_v47  ;;  %v3846_v17 = vmul.f32 0.5, %v285_v10 }
  0xc0   : > { %v2679_v5 = vpop.eup %2678  ;;  %v624_v62 = vmul.f32 0.5, %v526_v60  ;;  %v528_v18 = vadd.f32 1.0, %v2677_v27  ;;  %2698 = vtanh.f32 %v343_v56  ;;  %v1013_v33 = vpack.c.bf16 %v3831_v36, %v3806_v22 }
  0xc1   : > { %v2681_v2 = vpop.eup %2680  ;;  %v715_v61 = vpack.c.bf16 %v623_v15, %v621_v49  ;;  %v529_v4 = vadd.f32 1.0, %v2679_v5  ;;  %v625_v1 = vmul.f32 0.5, %v527_v16  ;;  %2700 = vtanh.f32 %v344_v58  ;;  %v253_v58 = vld [vmem:[%s3415_s22 + $0x100] sm:$0xff] }
  0xc2   : > { %v2683_v31 = vpop.eup %2682  ;;  %v716_v19 = vpack.c.bf16 %v624_v62, %v622_v11  ;;  %v530_v29 = vadd.f32 1.0, %v2681_v2  ;;  %v626_v53 = vmul.f32 0.5, %v528_v18  ;;  %2702 = vtanh.f32 %v345_v0 }
  0xc3   : > { %v2685_v47 = vpop.eup %2684  ;;  %v627_v7 = vmul.f32 0.5, %v529_v4  ;;  %v531_v56 = vadd.f32 1.0, %v2683_v31  ;;  %v3850_v39 = vmul.f32 0.5, %v287_v46  ;;  %v1039_v32 = vunpack.c.l.bf16 %v715_v61 }
  0xc4   : > { %v2687_v14 = vpop.eup %2686  ;;  %v1040_v12 = vunpack.c.l.bf16 %v716_v19  ;;  %v628_v28 = vmul.f32 0.5, %v530_v29  ;;  %v532_v49 = vadd.f32 1.0, %v2685_v47  ;;  %1538 = vmatprep.subr.bf16.mxu1 %v716_v19  ;;  %2704 = vtanh.f32 %v3814_v3 }
  0xc5   : > { %v2689_v10 = vpop.eup %2688  ;;  %v717_v13 = vpack.c.bf16 %v627_v7, %v625_v1  ;;  %v533_v60 = vadd.f32 1.0, %v2687_v14  ;;  %v629_v11 = vmul.f32 0.5, %v531_v56  ;;  %1539 = vmatpush1.bf16.msra.mxu1 %v715_v61  ;;  %v1041_v27 = vunpack.c.h.bf16 %v715_v61 }
  0xc6   : > { %v2691_v0 = vpop.eup %2690  ;;  %v1042_v15 = vunpack.c.h.bf16 %v716_v19  ;;  %v718_v16 = vpack.c.bf16 %v628_v28, %v626_v53  ;;  %v534_v5 = vadd.f32 1.0, %v2689_v10  ;;  %v630_v46 = vmul.f32 0.5, %v532_v49 }
  0xc7   : > { %v2693_v62 = vpop.eup %2692  ;;  %v1043_v18 = vunpack.c.l.bf16 %v717_v13  ;;  %v631_v2 = vmul.f32 0.5, %v533_v60  ;;  %v3854_v4 = vmul.f32 0.5, %v253_v58  ;;  %v3856_v29 = vadd.f32 %v1040_v12, %v1039_v32 }
  0xc8   : > { %v2695_v31 = vpop.eup %2694  ;;  %v1044_v1 = vunpack.c.l.bf16 %v718_v16  ;;  %v632_v47 = vmul.f32 0.5, %v534_v5  ;;  %v535_v7 = vadd.f32 1.0, %v2691_v0  ;;  %1540 = vmatprep.subr.bf16.mxu1 %v718_v16  ;;  %v536_v14 = vadd.f32 1.0, %v2693_v62 }
  0xc9   : > { %v2697_v56 = vpop.eup %2696  ;;  %v719_v3 = vpack.c.bf16 %v631_v2, %v629_v11  ;;  %v537_v61 = vadd.f32 1.0, %v2695_v31  ;;  %1541 = vmatpush1.bf16.msra.mxu1 %v717_v13  ;;  %2706 = vtanh.f32 %v3820_v54  ;;  %v1144_v53 = vadd.f32 %v1042_v15, %v1041_v27 }
  0xca   : > { %v2699_v19 = vpop.eup %2698  ;;  %v1045_v28 = vunpack.c.h.bf16 %v717_v13  ;;  %v720_v49 = vpack.c.bf16 %v632_v47, %v630_v46  ;;  %v538_v58 = vadd.f32 1.0, %v2697_v56  ;;  %v3859_v60 = vadd.f32 %v1044_v1, %v1043_v18  ;;  %v254_v56 = vld [vmem:[%s3415_s22 + $0x108] sm:$0xff] }
  0xcb   : > { %v2701_v10 = vpop.eup %2700  ;;  %v1046_v32 = vunpack.c.h.bf16 %v718_v16  ;;  %v633_v12 = vmul.f32 0.5, %v535_v7  ;;  %v634_v5 = vmul.f32 0.5, %v536_v14  ;;  %v1047_v11 = vunpack.c.l.bf16 %v719_v3 }
  0xcc   : > { %v2703_v0 = vpop.eup %2702  ;;  %1136 = vadd.xlane.f32.xlu1 %v3749_v48  ;;  %v1049_v62 = vunpack.c.h.bf16 %v719_v3  ;;  %v635_v2 = vmul.f32 0.5, %v537_v61  ;;  %v636_v31 = vmul.f32 0.5, %v538_v58  ;;  %1542 = vmatprep.subr.bf16.mxu1 %v720_v49  ;;  %v539_v54 = vadd.f32 1.0, %v2699_v19 }
  0xcd   : > { %v540_v27 = vadd.f32 1.0, %v2701_v10  ;;  %v541_v13 = vadd.f32 1.0, %v2703_v0  ;;  %1543 = vmatpush1.bf16.msra.mxu1 %v719_v3  ;;  %2708 = vtanh.f32 %v3822_v41  ;;  %v1048_v15 = vunpack.c.l.bf16 %v720_v49 }
  0xce   : > { %v1050_v18 = vunpack.c.h.bf16 %v720_v49  ;;  %v721_v16 = vpack.c.bf16 %v635_v2, %v633_v12  ;;  %v722_v46 = vpack.c.bf16 %v636_v31, %v634_v5  ;;  %v2705_v1 = vpop.eup %2704  ;;  %v1150_v47 = vadd.f32 %v1046_v32, %v1045_v28  ;;  %v255_v28 = vld [vmem:[%s3415_s22 + $0x110] sm:$0xff]  ;;  %v292_v31 = vld [vmem:[%s3415_s22 + $0x238] sm:$0xff] }
  0xcf   : > { %v637_v48 = vmul.f32 0.5, %v539_v54  ;;  %v639_v7 = vmul.f32 0.5, %v541_v13  ;;  %2710 = vtanh.f32 %v3826_v24  ;;  %v542_v41 = vadd.f32 1.0, %v2705_v1 }
  0xd0   : > { %1139 = vadd.xlane.f32.xlu1 %v3754_v26  ;;  %v1051_v14 = vunpack.c.l.bf16 %v721_v16  ;;  %v1052_v61 = vunpack.c.l.bf16 %v722_v46  ;;  %v1053_v3 = vunpack.c.h.bf16 %v721_v16  ;;  %v1054_v19 = vunpack.c.h.bf16 %v722_v46  ;;  %1544 = vmatprep.subr.bf16.mxu1 %v722_v46  ;;  %v256_v26 = vld [vmem:[%s3415_s22 + $0x118] sm:$0xff] }
  0xd1   : > { %v638_v49 = vmul.f32 0.5, %v540_v27  ;;  %v723_v58 = vpack.c.bf16 %v639_v7, %v637_v48  ;;  %2712 = vtanh.f32 %v3828_v8  ;;  %1545 = vmatpush1.bf16.msra.mxu1 %v721_v16  ;;  %v3868_v24 = vadd.f32 %v1048_v15, %v1047_v11  ;;  %v290_v8 = vld [vmem:[%s3415_s22 + $0x228] sm:$0xff]  ;;  %v289_v11 = vld [vmem:[%s3415_s22 + $0x220] sm:$0xff]  ;;  %v259_v48 = vld [vmem:[%s3415_s22 + $0x130] sm:$0xff] }
  0xd2   : > { %v3870_v10 = vadd.f32 %v1050_v18, %v1049_v62  ;;  %2714 = vtanh.f32 %v3838_v42  ;;  %v352_v32 = vmul.f32 0.5, %v254_v56  ;;  %v3874_v5 = vadd.f32 %v1052_v61, %v1051_v14  ;;  %v291_v18 = vld [vmem:[%s3415_s22 + $0x230] sm:$0xff]  ;;  %v257_v16 = vld [vmem:[%s3415_s22 + $0x120] sm:$0xff]  ;;  %v260_v7 = vld [vmem:[%s3415_s22 + $0x138] sm:$0xff] }
  0xd3   : > { %v2707_v12 = vpop.eup %2706  ;;  %v3876_v0 = vadd.f32 %v1054_v19, %v1053_v3  ;;  %v640_v2 = vmul.f32 0.5, %v542_v41  ;;  %2716 = vtanh.f32 %v3843_v20  ;;  %v1055_v62 = vunpack.c.l.bf16 %v723_v58  ;;  %v294_v19 = vld [vmem:[%s3415_s22 + $0x248] sm:$0xff]  ;;  %v296_v41 = vld [vmem:[%s3415_s22 + $0x258] sm:$0xff] }
  0xd4   : > { %1145 = vadd.xlane.f32.xlu1 %v1144_v53  ;;  %v543_v42 = vadd.f32 1.0, %v2707_v12  ;;  %2718 = vtanh.f32 %v3846_v17  ;;  %v353_v54 = vmul.f32 0.5, %v255_v28  ;;  %v1057_v13 = vunpack.c.h.bf16 %v723_v58  ;;  %v258_v53 = vld [vmem:[%s3415_s22 + $0x128] sm:$0xff] }
  0xd5   : > { %v724_v27 = vpack.c.bf16 %v640_v2, %v638_v49  ;;  %2720 = vtanh.f32 %v3850_v39  ;;  %v354_v15 = vmul.f32 0.5, %v256_v26  ;;  %v388_v20 = vmul.f32 0.5, %v290_v8  ;;  %v293_v2 = vld [vmem:[%s3415_s22 + $0x240] sm:$0xff] }
  0xd6   : > { %2722 = vtanh.f32 %v3854_v4  ;;  %v390_v46 = vmul.f32 0.5, %v292_v31  ;;  %v387_v1 = vmul.f32 0.5, %v289_v11  ;;  %v641_v61 = vmul.f32 0.5, %v543_v42  ;;  %v295_v31 = vld [vmem:[%s3415_s22 + $0x250] sm:$0xff]  ;;  %v261_v11 = vld [vmem:[%s3415_s22 + $0x140] sm:$0xff] }
  0xd7   : > { %v2709_v56 = vpop.eup %2708  ;;  %v1056_v17 = vunpack.c.l.bf16 %v724_v27  ;;  %v1058_v14 = vunpack.c.h.bf16 %v724_v27  ;;  %2724 = vtanh.f32 %v352_v32  ;;  %1546 = vmatprep.subr.bf16.mxu1 %v724_v27  ;;  %v389_v4 = vmul.f32 0.5, %v291_v18 }
  0xd8   : > { %1151 = vadd.xlane.f32.xlu1 %v1150_v47  ;;  %v544_v39 = vadd.f32 1.0, %v2709_v56  ;;  %2726 = vtanh.f32 %v353_v54  ;;  %1547 = vmatpush1.bf16.msra.mxu1 %v723_v58  ;;  %v355_v3 = vmul.f32 0.5, %v257_v16  ;;  %v356_v28 = vmul.f32 0.5, %v258_v53 }
  0xd9   : > { %v2711_v49 = vpop.eup %2710  ;;  %2728 = vtanh.f32 %v354_v15  ;;  %v357_v26 = vmul.f32 0.5, %v259_v48  ;;  %v358_v12 = vmul.f32 0.5, %v260_v7  ;;  %v3893_v8 = vadd.f32 %v1056_v17, %v1055_v62  ;;  %v262_v15 = vld [vmem:[%s3415_s22 + $0x148] sm:$0xff] }
  0xda   : > { %v1168_v32 = vadd.f32 %v1058_v14, %v1057_v13  ;;  %v545_v47 = vadd.f32 1.0, %v2711_v49  ;;  %2730 = vtanh.f32 %v388_v20  ;;  %v642_v58 = vmul.f32 0.5, %v544_v39  ;;  %v264_v39 = vld [vmem:[%s3415_s22 + $0x158] sm:$0xff] }
  0xdb   : > { %v2713_v42 = vpop.eup %2712  ;;  %1438 = vxpose.xlu0.c.b16.start [1/8] %v1006_v21, 128  ;;  %2732 = vtanh.f32 %v390_v46  ;;  %v392_v54 = vmul.f32 0.5, %v294_v19  ;;  %v3900_v27 = vmul.f32 0.5, %v296_v41  ;;  %v3904_v16 = vmul.f32 0.5, %v293_v2 }
  0xdc   : > { %v2715_v18 = vpop.eup %2714  ;;  %1157 = vadd.xlane.f32.xlu1 %v3870_v10  ;;  %v546_v62 = vadd.f32 1.0, %v2713_v42  ;;  %v643_v13 = vmul.f32 0.5, %v545_v47  ;;  %2734 = vtanh.f32 %v387_v1  ;;  %v3906_v44 = vmul.f32 0.5, %v295_v31 }
  0xdd   : > { %v2717_v20 = vpop.eup %2716  ;;  %v580_v53 = vadd.f32 1.0, %v2715_v18  ;;  %2736 = vtanh.f32 %v389_v4  ;;  %v3909_v21 = vmul.f32 0.5, %v261_v11  ;;  %v3911_v56 = vmul.f32 0.5, %v262_v15 }
  0xde   : > { %v2719_v46 = vpop.eup %2718  ;;  %v644_v48 = vmul.f32 0.5, %v546_v62  ;;  %v582_v7 = vadd.f32 1.0, %v2717_v20  ;;  %2738 = vtanh.f32 %v355_v3  ;;  %v3916_v1 = vpack.c.bf16 %v643_v13, %v641_v61 }
  0xdf   : > { %v2721_v10 = vpop.eup %2720  ;;  %1439 = vxpose.xlu0.c.b16.cont [2/8] %v1007_v25, 128  ;;  %v678_v17 = vmul.f32 0.5, %v580_v53  ;;  %v579_v14 = vadd.f32 1.0, %v2719_v46  ;;  %2740 = vtanh.f32 %v356_v28  ;;  %v3922_v49 = vmul.f32 0.5, %v263_v51 }
  0xe0   : > { %v2723_v4 = vpop.eup %2722  ;;  %1163 = vadd.xlane.f32.xlu1 %v3876_v0  ;;  %v3920_v19 = vpack.c.bf16 %v644_v48, %v642_v58  ;;  %v680_v41 = vmul.f32 0.5, %v582_v7  ;;  %v581_v3 = vadd.f32 1.0, %v2721_v10  ;;  %v1061_v35 = vunpack.c.h.bf16 %v3916_v1 }
  0xe1   : > { %v2725_v2 = vpop.eup %2724  ;;  %v677_v47 = vmul.f32 0.5, %v579_v14  ;;  %v547_v52 = vadd.f32 1.0, %v2723_v4  ;;  %2742 = vtanh.f32 %v357_v26  ;;  %v3929_v0 = vmul.f32 0.5, %v264_v39 }
  0xe2   : > { %v2727_v25 = vpop.eup %2726  ;;  %v3925_v61 = vpack.c.bf16 %v680_v41, %v678_v17  ;;  %v679_v28 = vmul.f32 0.5, %v581_v3  ;;  %v1062_v31 = vunpack.c.h.bf16 %v3920_v19  ;;  %1548 = vmatprep.subr.bf16.mxu1 %v3920_v19  ;;  %v548_v42 = vadd.f32 1.0, %v2725_v2 }
  0xe3   : > { %v2729_v11 = vpop.eup %2728  ;;  %1440 = vxpose.xlu0.c.b16.cont [3/8] %v1008_v37, 128  ;;  %v549_v58 = vadd.f32 1.0, %v2727_v25  ;;  %v645_v15 = vmul.f32 0.5, %v547_v52  ;;  %2744 = vtanh.f32 %v358_v12  ;;  %1549 = vmatpush1.bf16.msra.mxu1 %v3916_v1  ;;  %v1059_v18 = vunpack.c.l.bf16 %v3916_v1  ;;  %v297_v52 = vld [vmem:[%s3415_s22 + $0x260] sm:$0xff] }
  0xe4   : > { %v2731_v26 = vpop.eup %2730  ;;  %1169 = vadd.xlane.f32.xlu1 %v1168_v32  ;;  %1647 = vmatprep.subr.bf16.mxu0 %v3925_v61  ;;  %v3937_v62 = vpack.c.bf16 %v679_v28, %v677_v47  ;;  %v1174_v13 = vadd.f32 %v1062_v31, %v1061_v35  ;;  %v550_v20 = vadd.f32 1.0, %v2729_v11  ;;  %v646_v51 = vmul.f32 0.5, %v548_v42  ;;  %v300_v35 = vld [vmem:[%s3415_s22 + $0x278] sm:$0xff] }
  0xe5   : > { %v2733_v53 = vpop.eup %2732  ;;  %v647_v34 = vmul.f32 0.5, %v549_v58  ;;  %v584_v9 = vadd.f32 1.0, %v2731_v26  ;;  %2746 = vtanh.f32 %v392_v54  ;;  %v1060_v12 = vunpack.c.l.bf16 %v3920_v19  ;;  %v299_v26 = vld [vmem:[%s3415_s22 + $0x270] sm:$0xff] }
  0xe6   : > { %v2735_v37 = vpop.eup %2734  ;;  %1648 = vmatpush1.bf16.msra.mxu0 %v3937_v62  ;;  %v648_v32 = vmul.f32 0.5, %v550_v20  ;;  %v586_v46 = vadd.f32 1.0, %v2733_v53  ;;  %2748 = vtanh.f32 %v3900_v27  ;;  %v298_v27 = vld [vmem:[%s3415_s22 + $0x268] sm:$0xff] }
  0xe7   : > { %v2737_v48 = vpop.eup %2736  ;;  %1441 = vxpose.xlu0.c.b16.cont [4/8] %v1009_v23, 128  ;;  %v727_v7 = vpack.c.bf16 %v647_v34, %v645_v15  ;;  %v682_v10 = vmul.f32 0.5, %v584_v9  ;;  %v583_v1 = vadd.f32 1.0, %v2735_v37  ;;  %2750 = vtanh.f32 %v3904_v16  ;;  %v267_v34 = vld [vmem:[%s3415_s22 + $0x170] sm:$0xff]  ;;  %v268_v9 = vld [vmem:[%s3415_s22 + $0x178] sm:$0xff] }
  0xe8   : > { %v2739_v54 = vpop.eup %2738  ;;  %1175 = vadd.xlane.f32.xlu1 %v1174_v13  ;;  %v728_v17 = vpack.c.bf16 %v648_v32, %v646_v51  ;;  %v684_v14 = vmul.f32 0.5, %v586_v46  ;;  %v585_v39 = vadd.f32 1.0, %v2737_v48  ;;  %2752 = vtanh.f32 %v3906_v44  ;;  %v265_v13 = vld [vmem:[%s3415_s22 + $0x160] sm:$0xff] }
  0xe9   : > { %v2741_v4 = vpop.eup %2740  ;;  %v1462_v19 = vpop.trf.xlu1  ;;  %v1063_v41 = vunpack.c.l.bf16 %v727_v7  ;;  %v681_v59 = vmul.f32 0.5, %v583_v1  ;;  %v1065_v45 = vunpack.c.h.bf16 %v727_v7  ;;  %v551_v23 = vadd.f32 1.0, %v2739_v54 }
  0xea   : > { %v1064_v3 = vunpack.c.l.bf16 %v728_v17  ;;  %v3948_v2 = vpack.c.bf16 %v684_v14, %v682_v10  ;;  %v683_v16 = vmul.f32 0.5, %v585_v39  ;;  %v1066_v47 = vunpack.c.h.bf16 %v728_v17  ;;  %1550 = vmatprep.subr.bf16.mxu1 %v728_v17  ;;  %1566 = vmatprep.mubr.bf16.mxu1 %v1462_v19  ;;  %v302_v39 = vld [vmem:[%s3415_s22 + $0x288] sm:$0xff] }
  0xeb   : > { %v2743_v44 = vpop.eup %2742  ;;  %1442 = vxpose.xlu0.c.b16.cont [5/8] %v1010_v30, 128  ;;  %v3955_v25 = vadd.f32 %v1060_v12, %v1059_v18  ;;  %v552_v28 = vadd.f32 1.0, %v2741_v4  ;;  %2754 = vtanh.f32 %v3909_v21  ;;  %v396_v31 = vmul.f32 0.5, %v298_v27  ;;  %1551 = vmatpush1.bf16.msra.mxu1 %v727_v7 }
  0xec   : > { %1649 = vmatprep.subr.bf16.mxu0 %v3948_v2  ;;  %v3959_v11 = vpack.c.bf16 %v683_v16, %v681_v59  ;;  %v1180_v42 = vadd.f32 %v1066_v47, %v1065_v45  ;;  %v553_v58 = vadd.f32 1.0, %v2743_v44  ;;  %v649_v15 = vmul.f32 0.5, %v551_v23  ;;  %v303_v16 = vld [vmem:[%s3415_s22 + $0x290] sm:$0xff] }
  0xed   : > { %v2745_v57 = vpop.eup %2744  ;;  %v3964_v30 = vadd.f32 %v1064_v3, %v1063_v41  ;;  %2756 = vtanh.f32 %v3911_v56  ;;  %v398_v21 = vmul.f32 0.5, %v300_v35  ;;  %v395_v18 = vmul.f32 0.5, %v297_v52  ;;  %v304_v41 = vld [vmem:[%s3415_s22 + $0x298] sm:$0xff]  ;;  %v301_v3 = vld [vmem:[%s3415_s22 + $0x280] sm:$0xff] }
  0xee   : > { %1650 = vmatpush1.bf16.msra.mxu0 %v3959_v11  ;;  %1181 = vadd.xlane.f32.xlu1 %v1180_v42  ;;  %v554_v20 = vadd.f32 1.0, %v2745_v57  ;;  %v650_v53 = vmul.f32 0.5, %v552_v28  ;;  %v651_v51 = vmul.f32 0.5, %v553_v58  ;;  %2758 = vtanh.f32 %v3922_v49 }
  0xef   : > { %v2747_v37 = vpop.eup %2746  ;;  %1443 = vxpose.xlu0.c.b16.cont [6/8] %v1011_v38, 128  ;;  %2760 = vtanh.f32 %v3929_v0  ;;  %v397_v56 = vmul.f32 0.5, %v299_v26  ;;  %v363_v12 = vmul.f32 0.5, %v265_v13  ;;  %v364_v32 = vmul.f32 0.5, %v266_v50  ;;  %v271_v13 = vld [vmem:[%s3415_s22 + $0x190] sm:$0xff] }
  0xf0   : > { %v2749_v46 = vpop.eup %2748  ;;  %v652_v48 = vmul.f32 0.5, %v554_v20  ;;  %v729_v7 = vpack.c.bf16 %v651_v51, %v649_v15  ;;  %v588_v10 = vadd.f32 1.0, %v2747_v37  ;;  %2762 = vtanh.f32 %v396_v31  ;;  %v270_v31 = vld [vmem:[%s3415_s22 + $0x188] sm:$0xff] }
  0xf1   : > { %v2751_v1 = vpop.eup %2750  ;;  %v590_v49 = vadd.f32 1.0, %v2749_v46  ;;  %2764 = vtanh.f32 %v398_v21  ;;  %v365_v54 = vmul.f32 0.5, %v267_v34  ;;  %v366_v17 = vmul.f32 0.5, %v268_v9  ;;  %v306_v51 = vld [vmem:[%s3415_s22 + $0x2a8] sm:$0xff] }
  0xf2   : > { %v2753_v14 = vpop.eup %2752  ;;  %v730_v43 = vpack.c.bf16 %v652_v48, %v650_v53  ;;  %v1067_v40 = vunpack.c.l.bf16 %v729_v7  ;;  %v686_v38 = vmul.f32 0.5, %v588_v10  ;;  %v587_v0 = vadd.f32 1.0, %v2751_v1 }
  0xf3   : > { %1444 = vxpose.xlu0.c.b16.cont [7/8] %v1012_v63, 128  ;;  %v688_v27 = vmul.f32 0.5, %v590_v49  ;;  %v589_v4 = vadd.f32 1.0, %v2753_v14  ;;  %v1069_v19 = vunpack.c.h.bf16 %v729_v7  ;;  %2766 = vtanh.f32 %v395_v18  ;;  %v272_v18 = vld [vmem:[%s3415_s22 + $0x198] sm:$0xff] }
  0xf4   : > { %v1068_v59 = vunpack.c.l.bf16 %v730_v43  ;;  %v685_v45 = vmul.f32 0.5, %v587_v0  ;;  %v1070_v23 = vunpack.c.h.bf16 %v730_v43  ;;  %2768 = vtanh.f32 %v397_v56  ;;  %1552 = vmatprep.subr.bf16.mxu1 %v730_v43 }
  0xf5   : > { %v2755_v47 = vpop.eup %2754  ;;  %v3982_v35 = vpack.c.bf16 %v688_v27, %v686_v38  ;;  %v687_v52 = vmul.f32 0.5, %v589_v4  ;;  %2770 = vtanh.f32 %v363_v12  ;;  %v400_v6 = vmul.f32 0.5, %v302_v39  ;;  %1553 = vmatpush1.bf16.msra.mxu1 %v729_v7  ;;  %v308_v12 = vld [vmem:[%s3415_s22 + $0x2b8] sm:$0xff]  ;;  %v307_v38 = vld [vmem:[%s3415_s22 + $0x2b0] sm:$0xff] }
  0xf6   : > { %v1186_v63 = vadd.f32 %v1070_v23, %v1069_v19  ;;  %v555_v44 = vadd.f32 1.0, %v2755_v47  ;;  %2772 = vtanh.f32 %v364_v32  ;;  %v402_v28 = vmul.f32 0.5, %v304_v41  ;;  %v273_v23 = vld [vmem:[%s3415_s22 + $0x1a0] sm:$0xff] }
  0xf7   : > { %v2757_v42 = vpop.eup %2756  ;;  %1445 = vxpose.xlu0.c.b16.end [8/8] %v1013_v33, 128  ;;  %1651 = vmatprep.subr.bf16.mxu0 %v3982_v35  ;;  %v3990_v58 = vpack.c.bf16 %v687_v52, %v685_v45  ;;  %2774 = vtanh.f32 %v365_v54  ;;  %v399_v15 = vmul.f32 0.5, %v301_v3  ;;  %v401_v26 = vmul.f32 0.5, %v303_v16  ;;  %v305_v54 = vld [vmem:[%s3415_s22 + $0x2a0] sm:$0xff] }
  0xf8   : > { %v2759_v50 = vpop.eup %2758  ;;  %v3993_v57 = vadd.f32 %v1068_v59, %v1067_v40  ;;  %1187 = vadd.xlane.f32.xlu1 %v1186_v63  ;;  %v556_v21 = vadd.f32 1.0, %v2757_v42  ;;  %2776 = vtanh.f32 %v366_v17  ;;  %v367_v20 = vmul.f32 0.5, %v269_v55 }
  0xf9   : > { %v2761_v22 = vpop.eup %2760  ;;  %1652 = vmatpush1.bf16.msra.mxu0 %v3990_v58  ;;  %v557_v36 = vadd.f32 1.0, %v2759_v50  ;;  %v653_v33 = vmul.f32 0.5, %v555_v44  ;;  %2778 = vtanh.f32 %v400_v6  ;;  %v368_v53 = vmul.f32 0.5, %v270_v31 }
  0xfa   : > { %v2763_v34 = vpop.eup %2762  ;;  %v558_v9 = vadd.f32 1.0, %v2761_v22  ;;  %v654_v37 = vmul.f32 0.5, %v556_v21  ;;  %2780 = vtanh.f32 %v402_v28  ;;  %v369_v56 = vmul.f32 0.5, %v271_v13 }
  0xfb   : > { %v2765_v32 = vpop.eup %2764  ;;  %v655_v46 = vmul.f32 0.5, %v557_v36  ;;  %v592_v48 = vadd.f32 1.0, %v2763_v34  ;;  %2782 = vtanh.f32 %v399_v15  ;;  %v370_v7 = vmul.f32 0.5, %v272_v18 }
  0xfc   : > { %v656_v10 = vmul.f32 0.5, %v558_v9  ;;  %v594_v1 = vadd.f32 1.0, %v2765_v32  ;;  %2784 = vtanh.f32 %v401_v26  ;;  %v404_v49 = vmul.f32 0.5, %v306_v51  ;;  %v274_v51 = vld [vmem:[%s3415_s22 + $0x1a8] sm:$0xff] }
  0xfd   : > { %v2767_v17 = vpop.eup %2766  ;;  %v4000_v14 = vpack.c.bf16 %v655_v46, %v653_v33  ;;  %v690_v43 = vmul.f32 0.5, %v592_v48  ;;  %2786 = vtanh.f32 %v367_v20  ;;  %v406_v40 = vmul.f32 0.5, %v308_v12  ;;  %v275_v12 = vld [vmem:[%s3415_s22 + $0x1b0] sm:$0xff] }
  0xfe   : > { %v2769_v0 = vpop.eup %2768  ;;  %v4003_v39 = vpack.c.bf16 %v656_v10, %v654_v37  ;;  %v692_v27 = vmul.f32 0.5, %v594_v1  ;;  %v591_v4 = vadd.f32 1.0, %v2767_v17  ;;  %2788 = vtanh.f32 %v368_v53 }
  0xff   : > { %v2771_v19 = vpop.eup %2770  ;;  %v593_v41 = vadd.f32 1.0, %v2769_v0  ;;  %v1073_v59 = vunpack.c.h.bf16 %v4000_v14  ;;  %2790 = vtanh.f32 %v369_v56  ;;  %v403_v45 = vmul.f32 0.5, %v305_v54 }
 0x100   : > { %v2773_v3 = vpop.eup %2772  ;;  %v4007_v16 = vpack.c.bf16 %v692_v27, %v690_v43  ;;  %v689_v47 = vmul.f32 0.5, %v591_v4  ;;  %v1074_v52 = vunpack.c.h.bf16 %v4003_v39  ;;  %1554 = vmatprep.subr.bf16.mxu1 %v4003_v39  ;;  %v405_v6 = vmul.f32 0.5, %v307_v38 }
 0x101   : > { %v2775_v55 = vpop.eup %2774  ;;  %v691_v63 = vmul.f32 0.5, %v593_v41  ;;  %v559_v44 = vadd.f32 1.0, %v2771_v19  ;;  %v560_v28 = vadd.f32 1.0, %v2773_v3  ;;  %2792 = vtanh.f32 %v370_v7  ;;  %1555 = vmatpush1.bf16.msra.mxu1 %v4000_v14  ;;  %v276_v7 = vld [vmem:[%s3415_s22 + $0x1b8] sm:$0xff] }
 0x102   : > { %v2777_v31 = vpop.eup %2776  ;;  %1653 = vmatprep.subr.bf16.mxu0 %v4007_v16  ;;  %v1192_v42 = vadd.f32 %v1074_v52, %v1073_v59  ;;  %v561_v15 = vadd.f32 1.0, %v2775_v55  ;;  %2794 = vtanh.f32 %v404_v49  ;;  %v371_v26 = vmul.f32 0.5, %v273_v23  ;;  %v312_v52 = vld [vmem:[%s3415_s22 + $0x2d8] sm:$0xff] }
 0x103   : > { %v2779_v13 = vpop.eup %2778  ;;  %v4013_v50 = vpack.c.bf16 %v691_v63, %v689_v47  ;;  %v562_v21 = vadd.f32 1.0, %v2777_v31  ;;  %v657_v18 = vmul.f32 0.5, %v559_v44  ;;  %v658_v20 = vmul.f32 0.5, %v560_v28  ;;  %v309_v28 = vld [vmem:[%s3415_s22 + $0x2c0] sm:$0xff] }
 0x104   : > { %v2781_v22 = vpop.eup %2780  ;;  %1142 = vadd.xlane.f32.xlu0 %v3856_v29  ;;  %v1071_v36 = vunpack.c.l.bf16 %v4000_v14  ;;  %1193 = vadd.xlane.f32.xlu1 %v1192_v42  ;;  %v659_v33 = vmul.f32 0.5, %v561_v15  ;;  %v596_v53 = vadd.f32 1.0, %v2779_v13  ;;  %2796 = vtanh.f32 %v406_v40  ;;  %v311_v13 = vld [vmem:[%s3415_s22 + $0x2d0] sm:$0xff] }
 0x105   : > { %v2783_v34 = vpop.eup %2782  ;;  %v1072_v9 = vunpack.c.l.bf16 %v4003_v39  ;;  %1654 = vmatpush1.bf16.msra.mxu0 %v4013_v50  ;;  %v660_v37 = vmul.f32 0.5, %v562_v21  ;;  %v598_v56 = vadd.f32 1.0, %v2781_v22  ;;  %2798 = vtanh.f32 %v403_v45  ;;  %v277_v22 = vld [vmem:[%s3415_s22 + $0x1c0] sm:$0xff]  ;;  %v283_v14 = vld [vmem:[%s3415_s22 + $0x1f0] sm:$0xff] }
 0x106   : > { %v2785_v32 = vpop.eup %2784  ;;  %v4021_v46 = vpack.c.bf16 %v659_v33, %v657_v18  ;;  %v694_v29 = vmul.f32 0.5, %v596_v53  ;;  %v595_v48 = vadd.f32 1.0, %v2783_v34  ;;  %2800 = vtanh.f32 %v405_v6 }
 0x107   : > { %v2787_v10 = vpop.eup %2786  ;;  %v4024_v1 = vpack.c.bf16 %v660_v37, %v658_v20  ;;  %v696_v49 = vmul.f32 0.5, %v598_v56  ;;  %v597_v54 = vadd.f32 1.0, %v2785_v32  ;;  %v372_v17 = vmul.f32 0.5, %v274_v51  ;;  %v278_v37 = vld [vmem:[%s3415_s22 + $0x1c8] sm:$0xff] }
 0x108   : > { %v2789_v43 = vpop.eup %2788  ;;  %1148 = vadd.xlane.f32.xlu0 %v3859_v60  ;;  %v693_v40 = vmul.f32 0.5, %v595_v48  ;;  %v1077_v38 = vunpack.c.h.bf16 %v4021_v46  ;;  %v563_v0 = vadd.f32 1.0, %v2787_v10  ;;  %v373_v27 = vmul.f32 0.5, %v275_v12  ;;  %v310_v60 = vld [vmem:[%s3415_s22 + $0x2c8] sm:$0xff] }
 0x109   : > { %v2791_v4 = vpop.eup %2790  ;;  %v4028_v19 = vpack.c.bf16 %v696_v49, %v694_v29  ;;  %v695_v41 = vmul.f32 0.5, %v597_v54  ;;  %v1078_v59 = vunpack.c.h.bf16 %v4024_v1  ;;  %v374_v45 = vmul.f32 0.5, %v276_v7  ;;  %1556 = vmatprep.subr.bf16.mxu1 %v4024_v1  ;;  %v279_v54 = vld [vmem:[%s3415_s22 + $0x1d0] sm:$0xff] }
 0x10a   : > { %v564_v23 = vadd.f32 1.0, %v2789_v43  ;;  %v565_v3 = vadd.f32 1.0, %v2791_v4  ;;  %v661_v47 = vmul.f32 0.5, %v563_v0  ;;  %2802 = vtanh.f32 %v371_v26  ;;  %1557 = vmatpush1.bf16.msra.mxu1 %v4021_v46  ;;  %v4053_v43 = vpop.trf.xlu1  ;;  %v280_v0 = vld [vmem:[%s3415_s22 + $0x1d8] sm:$0xff] }
 0x10b   : > { %v2793_v6 = vpop.eup %2792  ;;  %v1075_v55 = vunpack.c.l.bf16 %v4021_v46  ;;  %1655 = vmatprep.subr.bf16.mxu0 %v4028_v19  ;;  %v4037_v63 = vpack.c.bf16 %v695_v41, %v693_v40  ;;  %v1198_v44 = vadd.f32 %v1078_v59, %v1077_v38  ;;  %2804 = vtanh.f32 %v372_v17  ;;  %v314_v59 = vld [vmem:[%s3415_s22 + $0x2e8] sm:$0xff] }
 0x10c   : > { %v2795_v31 = vpop.eup %2794  ;;  %1154 = vadd.xlane.f32.xlu0 %v3868_v24  ;;  %v566_v42 = vadd.f32 1.0, %v2793_v6  ;;  %v662_v15 = vmul.f32 0.5, %v564_v23  ;;  %v663_v26 = vmul.f32 0.5, %v565_v3  ;;  %2806 = vtanh.f32 %v373_v27 }
 0x10d   : > { %1656 = vmatpush1.bf16.msra.mxu0 %v4037_v63  ;;  %1199 = vadd.xlane.f32.xlu1 %v1198_v44  ;;  %v600_v21 = vadd.f32 1.0, %v2795_v31  ;;  %2808 = vtanh.f32 %v374_v45  ;;  %v408_v18 = vmul.f32 0.5, %v310_v60  ;;  %v410_v20 = vmul.f32 0.5, %v312_v52  ;;  %v313_v60 = vld [vmem:[%s3415_s22 + $0x2e0] sm:$0xff]  ;;  %v315_v31 = vld [vmem:[%s3415_s22 + $0x2f0] sm:$0xff] }
 0x10e   : > { %v2797_v33 = vpop.eup %2796  ;;  %v1076_v53 = vunpack.c.l.bf16 %v4024_v1  ;;  %v664_v51 = vmul.f32 0.5, %v566_v42  ;;  %v4045_v24 = vpack.c.bf16 %v663_v26, %v661_v47  ;;  %v407_v34 = vmul.f32 0.5, %v309_v28  ;;  %v316_v47 = vld [vmem:[%s3415_s22 + $0x2f8] sm:$0xff]  ;;  %v318_v1 = vld [vmem:[%s3415_s22 + $0x308] sm:$0xff] }
 0x10f   : > { %v2799_v56 = vpop.eup %2798  ;;  %v602_v12 = vadd.f32 1.0, %v2797_v33  ;;  %v698_v32 = vmul.f32 0.5, %v600_v21  ;;  %2810 = vtanh.f32 %v408_v18  ;;  %v409_v29 = vmul.f32 0.5, %v311_v13  ;;  %v281_v21 = vld [vmem:[%s3415_s22 + $0x1e0] sm:$0xff] }
 0x110   : > { %v2801_v48 = vpop.eup %2800  ;;  %1160 = vadd.xlane.f32.xlu0 %v3874_v5  ;;  %v4049_v7 = vpack.c.bf16 %v664_v51, %v662_v15  ;;  %v599_v10 = vadd.f32 1.0, %v2799_v56  ;;  %v1081_v49 = vunpack.c.h.bf16 %v4045_v24  ;;  %v375_v17 = vmul.f32 0.5, %v277_v22  ;;  %v4072_v51 = vpop.trf.xlu1 }
 0x111   : > { %v700_v40 = vmul.f32 0.5, %v602_v12  ;;  %v601_v38 = vadd.f32 1.0, %v2801_v48  ;;  %2812 = vtanh.f32 %v410_v20  ;;  %v376_v27 = vmul.f32 0.5, %v278_v37 }
 0x112   : > { %v1079_v4 = vunpack.c.l.bf16 %v4045_v24  ;;  %v697_v5 = vmul.f32 0.5, %v599_v10  ;;  %v1082_v41 = vunpack.c.h.bf16 %v4049_v7  ;;  %2814 = vtanh.f32 %v407_v34  ;;  %1558 = vmatprep.subr.bf16.mxu1 %v4049_v7 }
 0x113   : > { %v4060_v45 = vpack.c.bf16 %v700_v40, %v698_v32  ;;  %v699_v23 = vmul.f32 0.5, %v601_v38  ;;  %2816 = vtanh.f32 %v409_v29  ;;  %v377_v3 = vmul.f32 0.5, %v279_v54  ;;  %1559 = vmatpush1.bf16.msra.mxu1 %v4045_v24  ;;  %v282_v32 = vld [vmem:[%s3415_s22 + $0x1e8] sm:$0xff]  ;;  %v284_v38 = vld [vmem:[%s3415_s22 + $0x1f8] sm:$0xff] }
 0x114   : > { %v2803_v52 = vpop.eup %2802  ;;  %1166 = vadd.xlane.f32.xlu0 %v3893_v8  ;;  %v1080_v6 = vunpack.c.l.bf16 %v4049_v7  ;;  %v1204_v44 = vadd.f32 %v1082_v41, %v1081_v49  ;;  %v378_v28 = vmul.f32 0.5, %v280_v0  ;;  %2818 = vtanh.f32 %v375_v17 }
 0x115   : > { %v2805_v42 = vpop.eup %2804  ;;  %1657 = vmatprep.subr.bf16.mxu0 %v4060_v45  ;;  %v4069_v15 = vpack.c.bf16 %v699_v23, %v697_v5  ;;  %v567_v26 = vadd.f32 1.0, %v2803_v52  ;;  %2820 = vtanh.f32 %v376_v27  ;;  %v412_v13 = vmul.f32 0.5, %v314_v59  ;;  %v4099_v5 = vpop.trf.xlu1 }
 0x116   : > { %v2807_v18 = vpop.eup %2806  ;;  %1205 = vadd.xlane.f32.xlu1 %v1204_v44  ;;  %v568_v8 = vadd.f32 1.0, %v2805_v42  ;;  %2822 = vtanh.f32 %v377_v3  ;;  %v414_v20 = vmul.f32 0.5, %v316_v47  ;;  %v411_v22 = vmul.f32 0.5, %v313_v60 }
 0x117   : > { %v2809_v33 = vpop.eup %2808  ;;  %1658 = vmatpush1.bf16.msra.mxu0 %v4069_v15  ;;  %v569_v24 = vadd.f32 1.0, %v2807_v18  ;;  %v665_v34 = vmul.f32 0.5, %v567_v26  ;;  %2824 = vtanh.f32 %v378_v28  ;;  %v413_v37 = vmul.f32 0.5, %v315_v31 }
 0x118   : > { %1172 = vadd.xlane.f32.xlu0 %v3955_v25  ;;  %v570_v56 = vadd.f32 1.0, %v2809_v33  ;;  %v666_v12 = vmul.f32 0.5, %v568_v8  ;;  %2826 = vtanh.f32 %v412_v13  ;;  %v379_v29 = vmul.f32 0.5, %v281_v21 }
 0x119   : > { %v2811_v48 = vpop.eup %2810  ;;  %v4081_v7 = vadd.f32 %v1072_v9, %v1071_v36  ;;  %v4087_v25 = vadd.f32 %v1076_v53, %v1075_v55  ;;  %v667_v10 = vmul.f32 0.5, %v569_v24  ;;  %2828 = vtanh.f32 %v414_v20 }
 0x11a   : > { %v1131_v49 = vpop.xlane.xlu0 %1130  ;;  %v4089_v54 = vadd.f32 %v1080_v6, %v1079_v4  ;;  %v668_v17 = vmul.f32 0.5, %v570_v56  ;;  %v604_v40 = vadd.f32 1.0, %v2811_v48  ;;  %2830 = vtanh.f32 %v411_v22 }
 0x11b   : > { %v2813_v39 = vpop.eup %2812  ;;  %v1276_v36 = vmul.f32 %v1131_v49, %v1131_v49  ;;  %v4093_v9 = vpack.c.bf16 %v667_v10, %v665_v34  ;;  %2832 = vtanh.f32 %v413_v37  ;;  %v380_v46 = vmul.f32 0.5, %v282_v32  ;;  %v4116_v10 = vpop.trf.xlu1 }
 0x11c   : > { %v2815_v0 = vpop.eup %2814  ;;  %1178 = vadd.xlane.f32.xlu0 %v3964_v30  ;;  %v4097_v55 = vpack.c.bf16 %v668_v17, %v666_v12  ;;  %v606_v53 = vadd.f32 1.0, %v2813_v39  ;;  %v702_v27 = vmul.f32 0.5, %v604_v40  ;;  %2834 = vtanh.f32 %v379_v29  ;;  %v317_v29 = vld [vmem:[%s3415_s22 + $0x300] sm:$0xff] }
 0x11d   : > { %v2817_v4 = vpop.eup %2816  ;;  %v603_v41 = vadd.f32 1.0, %v2815_v0  ;;  %v1085_v59 = vunpack.c.h.bf16 %v4093_v9  ;;  %v381_v23 = vmul.f32 0.5, %v283_v14  ;;  %v382_v3 = vmul.f32 0.5, %v284_v38 }
 0x11e   : > { %v2819_v47 = vpop.eup %2818  ;;  %v1134_v60 = vpop.xlane.xlu0 %1133  ;;  %v704_v52 = vmul.f32 0.5, %v606_v53  ;;  %v605_v6 = vadd.f32 1.0, %v2817_v4  ;;  %v1086_v44 = vunpack.c.h.bf16 %v4097_v55  ;;  %1560 = vmatprep.subr.bf16.mxu1 %v4097_v55  ;;  %v416_v30 = vmul.f32 0.5, %v318_v1 }
 0x11f   : > { %v2821_v28 = vpop.eup %2820  ;;  %v1277_v31 = vmul.f32 %v1134_v60, %v1134_v60  ;;  %v701_v42 = vmul.f32 0.5, %v603_v41  ;;  %v571_v26 = vadd.f32 1.0, %v2819_v47  ;;  %2836 = vtanh.f32 %v380_v46  ;;  %1561 = vmatpush1.bf16.msra.mxu1 %v4093_v9 }
 0x120   : > { %v2823_v13 = vpop.eup %2822  ;;  %v1326_v21 = vsel %vm1325_vm0, %v1276_v36, 0.0  ;;  %1184 = vadd.xlane.f32.xlu0 %v3993_v57  ;;  %v4107_v18 = vpack.c.bf16 %v704_v52, %v702_v27  ;;  %v703_v8 = vmul.f32 0.5, %v605_v6  ;;  %v1210_v20 = vadd.f32 %v1086_v44, %v1085_v59 }
 0x121   : > { %v2825_v22 = vpop.eup %2824  ;;  %v1327_v33 = vsel %vm1325_vm0, %v1277_v31, 0.0  ;;  %v572_v24 = vadd.f32 1.0, %v2821_v28  ;;  %v573_v34 = vadd.f32 1.0, %v2823_v13  ;;  %v669_v37 = vmul.f32 0.5, %v571_v26  ;;  %v4127_v26 = vpop.trf.xlu1 }
 0x122   : > { %v2827_v56 = vpop.eup %2826  ;;  %v4110_v12 = vadd.f32 %v1327_v33, %v1326_v21  ;;  %1659 = vmatprep.subr.bf16.mxu0 %v4107_v18  ;;  %v4113_v32 = vpack.c.bf16 %v703_v8, %v701_v42  ;;  %1211 = vadd.xlane.f32.xlu1 %v1210_v20  ;;  %v574_v57 = vadd.f32 1.0, %v2825_v22  ;;  %2838 = vtanh.f32 %v381_v23 }
 0x123   : > { %v2829_v48 = vpop.eup %2828  ;;  %v670_v49 = vmul.f32 0.5, %v572_v24  ;;  %v671_v17 = vmul.f32 0.5, %v573_v34  ;;  %v608_v40 = vadd.f32 1.0, %v2827_v56  ;;  %2840 = vtanh.f32 %v382_v3 }
 0x124   : > { %v2831_v14 = vpop.eup %2830  ;;  %1190 = vadd.xlane.f32.xlu0 %v4081_v7  ;;  %v1494_v38 = vpop.trf.xlu0  ;;  %v1083_v39 = vunpack.c.l.bf16 %v4093_v9  ;;  %1660 = vmatpush1.bf16.msra.mxu0 %v4113_v32  ;;  %v672_v36 = vmul.f32 0.5, %v574_v57  ;;  %v610_v46 = vadd.f32 1.0, %v2829_v48  ;;  %2842 = vtanh.f32 %v416_v30 }
 0x125   : > { %v2833_v1 = vpop.eup %2832  ;;  %v739_v0 = vpack.c.bf16 %v671_v17, %v669_v37  ;;  %v706_v53 = vmul.f32 0.5, %v608_v40  ;;  %v607_v27 = vadd.f32 1.0, %v2831_v14  ;;  %v415_v4 = vmul.f32 0.5, %v317_v29  ;;  %2379 = vmatprep.mubr.msk.bf16.mxu0 %vm1502_vm1, %v1494_v38 }
 0x126   : > { %v2835_v41 = vpop.eup %2834  ;;  %v1084_v59 = vunpack.c.l.bf16 %v4097_v55  ;;  %v740_v23 = vpack.c.bf16 %v672_v36, %v670_v49  ;;  %v708_v3 = vmul.f32 0.5, %v610_v46  ;;  %v609_v47 = vadd.f32 1.0, %v2833_v1  ;;  %v4145_v46 = vpop.trf.xlu1 }
 0x127   : > { %v1087_v7 = vunpack.c.l.bf16 %v739_v0  ;;  %v705_v60 = vmul.f32 0.5, %v607_v27  ;;  %v1089_v52 = vunpack.c.h.bf16 %v739_v0  ;;  %v575_v9 = vadd.f32 1.0, %v2835_v41 }
 0x128   : > { %1196 = vadd.xlane.f32.xlu0 %v4087_v25  ;;  %v4123_v6 = vpop.trf.xlu0  ;;  %v1088_v44 = vunpack.c.l.bf16 %v740_v23  ;;  %v4125_v30 = vpack.c.bf16 %v708_v3, %v706_v53  ;;  %v707_v28 = vmul.f32 0.5, %v609_v47  ;;  %v1090_v31 = vunpack.c.h.bf16 %v740_v23  ;;  %1562 = vmatprep.subr.bf16.mxu1 %v740_v23 }
 0x129   : > { %v2837_v42 = vpop.eup %2836  ;;  %2844 = vtanh.f32 %v415_v4  ;;  %1563 = vmatpush1.bf16.msra.mxu1 %v739_v0  ;;  %v1207_v55 = vadd.f32 %v1084_v59, %v1083_v39  ;;  %v673_v8 = vmul.f32 0.5, %v575_v9  ;;  %v1095_v20 = vunpack.c.l.bf16 %v3937_v62 }
 0x12a   : > { %1661 = vmatprep.subr.bf16.mxu0 %v4125_v30  ;;  %v4130_v13 = vpack.c.bf16 %v707_v28, %v705_v60  ;;  %v1216_v25 = vadd.f32 %v1090_v31, %v1089_v52  ;;  %v576_v21 = vadd.f32 1.0, %v2837_v42  ;;  %v1099_v22 = vunpack.c.l.bf16 %v3959_v11 }
 0x12b   : > { %v1213_v34 = vadd.f32 %v1088_v44, %v1087_v7  ;;  %v1100_v37 = vunpack.c.l.bf16 %v3948_v2  ;;  %v1101_v56 = vunpack.c.h.bf16 %v3959_v11  ;;  %v1102_v57 = vunpack.c.h.bf16 %v3948_v2 }
 0x12c   : > { %v2839_v33 = vpop.eup %2838  ;;  %1202 = vadd.xlane.f32.xlu0 %v4089_v54  ;;  %v4136_v24 = vpop.trf.xlu0  ;;  %1662 = vmatpush1.bf16.msra.mxu0 %v4130_v13  ;;  %v674_v49 = vmul.f32 0.5, %v576_v21  ;;  %v1103_v17 = vunpack.c.l.bf16 %v3990_v58  ;;  %v1104_v40 = vunpack.c.l.bf16 %v3982_v35  ;;  %v1105_v36 = vunpack.c.h.bf16 %v3990_v58 }
 0x12d   : > { %v2841_v29 = vpop.eup %2840  ;;  %1217 = vadd.xlane.f32.xlu1 %v1216_v25  ;;  %v577_v48 = vadd.f32 1.0, %v2839_v33  ;;  %v1231_v38 = vadd.f32 %v1100_v37, %v1099_v22  ;;  %v1234_v39 = vadd.f32 %v1102_v57, %v1101_v56  ;;  %v1106_v2 = vunpack.c.h.bf16 %v3982_v35 }
 0x12e   : > { %v2843_v54 = vpop.eup %2842  ;;  %v578_v14 = vadd.f32 1.0, %v2841_v29  ;;  %v1237_v0 = vadd.f32 %v1104_v40, %v1103_v17  ;;  %v1107_v4 = vunpack.c.l.bf16 %v4013_v50  ;;  %v1108_v41 = vunpack.c.l.bf16 %v4007_v16 }
 0x12f   : > { %v675_v1 = vmul.f32 0.5, %v577_v48  ;;  %v612_v11 = vadd.f32 1.0, %v2843_v54  ;;  %v1109_v59 = vunpack.c.h.bf16 %v4013_v50  ;;  %v1240_v58 = vadd.f32 %v1106_v2, %v1105_v36 }
 0x130   : > { %1208 = vadd.xlane.f32.xlu0 %v1207_v55  ;;  %v4148_v53 = vpop.trf.xlu0  ;;  %v676_v27 = vmul.f32 0.5, %v578_v14  ;;  %v1110_v47 = vunpack.c.h.bf16 %v4007_v16  ;;  %v1096_v60 = vunpack.c.l.bf16 %v3925_v61  ;;  %v1097_v35 = vunpack.c.h.bf16 %v3937_v62 }
 0x131   : > { %v741_v23 = vpack.c.bf16 %v675_v1, %v673_v8  ;;  %v710_v3 = vmul.f32 0.5, %v612_v11  ;;  %v1243_v52 = vadd.f32 %v1108_v41, %v1107_v4  ;;  %v1098_v16 = vunpack.c.h.bf16 %v3925_v61  ;;  %v4161_v8 = vpop.trf.xlu1 }
 0x132   : > { %v742_v7 = vpack.c.bf16 %v676_v27, %v674_v49  ;;  %v1246_v42 = vadd.f32 %v1110_v47, %v1109_v59  ;;  %v1225_v56 = vadd.f32 %v1096_v60, %v1095_v20  ;;  %v1111_v40 = vunpack.c.l.bf16 %v4037_v63 }
 0x133   : > { %v2845_v9 = vpop.eup %2844  ;;  %v1091_v44 = vunpack.c.l.bf16 %v741_v23  ;;  %v4156_v28 = vpack.c.bf16 %v710_v3, %v710_v3  ;;  %v1093_v31 = vunpack.c.h.bf16 %v741_v23  ;;  %v1228_v57 = vadd.f32 %v1098_v16, %v1097_v35 }
 0x134   : > { %1214 = vadd.xlane.f32.xlu0 %v1213_v34  ;;  %v4158_v55 = vpop.trf.xlu0  ;;  %v1092_v50 = vunpack.c.l.bf16 %v742_v7  ;;  %v611_v25 = vadd.f32 1.0, %v2845_v9  ;;  %v1094_v21 = vunpack.c.h.bf16 %v742_v7  ;;  %1564 = vmatprep.subr.bf16.mxu1 %v742_v7  ;;  %v1112_v54 = vunpack.c.l.bf16 %v4028_v19 }
 0x135   : > { %2378 = vmatprep.subr.msk.bf16.mxu0 %vm1527_vm2, %v4156_v28  ;;  %1565 = vmatpush1.bf16.msra.mxu1 %v741_v23  ;;  %v1478_v29 = vpop.trf.xlu1  ;;  %v1113_v14 = vunpack.c.h.bf16 %v4037_v63  ;;  %v1114_v36 = vunpack.c.h.bf16 %v4028_v19  ;;  %v1117_v63 = vunpack.c.h.bf16 %v4069_v15  ;;  %v1118_v19 = vunpack.c.h.bf16 %v4060_v45 }
 0x136   : > { %v1219_v62 = vadd.f32 %v1092_v50, %v1091_v44  ;;  %v709_v22 = vmul.f32 0.5, %v611_v25  ;;  %v1222_v33 = vadd.f32 %v1094_v21, %v1093_v31  ;;  %v1249_v1 = vadd.f32 %v1112_v54, %v1111_v40 }
 0x137   : > { %v1252_v11 = vadd.f32 %v1114_v36, %v1113_v14  ;;  %v1258_v27 = vadd.f32 %v1118_v19, %v1117_v63  ;;  %v1121_v4 = vunpack.c.h.bf16 %v4113_v32  ;;  %v1122_v41 = vunpack.c.h.bf16 %v4107_v18 }
 0x138   : > { %1220 = vadd.xlane.f32.xlu0 %v1219_v62  ;;  %v4165_v37 = vpop.trf.xlu0  ;;  %v4167_v34 = vpack.c.bf16 %v709_v22, %v709_v22  ;;  %1223 = vadd.xlane.f32.xlu1 %v1222_v33  ;;  %v1128_v60 = vunpack.c.l.bf16 %v4156_v28 }
 0x139   : > { %v1479_v17 = vpop.trf.xlu1  ;;  %v1264_v3 = vadd.f32 %v1122_v41, %v1121_v4 }
 0x13a   : > { %v1529_v61 = vsel %vm1527_vm2, %v4167_v34, 0 }
 0x13b   : > { %1664 = vmatpush1.bf16.msra.mxu0 %v1529_v61 }
 0x13c   : > { %1226 = vadd.xlane.f32.xlu0 %v1225_v56  ;;  %v4171_v48 = vpop.trf.xlu0  ;;  %1229 = vadd.xlane.f32.xlu1 %v1228_v57 }
 0x13e   : > { %1680 = vmatmul.mubr.bf16.vlgmr.msra.gmra.mrb[0].mxu0 %v1478_v29 }
 0x13f   : > { %2380 = vmatprep.mubr.msk.bf16.mxu0 %vm1502_vm1, %v4123_v6  ;;  %v1480_v6 = vpop.trf.xlu1 }
 0x140   : > { %1232 = vadd.xlane.f32.xlu0 %v1231_v38  ;;  %v4175_v49 = vpop.trf.xlu0  ;;  %1235 = vadd.xlane.f32.xlu1 %v1234_v39  ;;  %v1115_v38 = vunpack.c.l.bf16 %v4069_v15  ;;  %v1116_v39 = vunpack.c.l.bf16 %v4060_v45  ;;  %v1123_v45 = vunpack.c.l.bf16 %v4130_v13  ;;  %v1124_v15 = vunpack.c.l.bf16 %v4125_v30 }
 0x142   : > { %v1255_v2 = vadd.f32 %v1116_v39, %v1115_v38 }
 0x143   : > { %v1481_v59 = vpop.trf.xlu1 }
 0x144   : > { %1238 = vadd.xlane.f32.xlu0 %v1237_v0  ;;  %v1446_v20 = vpop.trf.xlu0  ;;  %1241 = vadd.xlane.f32.xlu1 %v1240_v58 }
 0x145   : > { %1567 = vmatmul.mubr.bf16.vlgmr.msra.gmra.mrb[0].mxu1 %v1446_v20 }
 0x146   : > { %1690 = vmatmul.mubr.bf16.gmra.mrb[4].mxu0 %v1479_v17  ;;  %1576 = vmatprep.mubr.bf16.mxu1 %v4053_v43  ;;  %v1119_v43 = vunpack.c.l.bf16 %v4113_v32  ;;  %v1125_v32 = vunpack.c.h.bf16 %v4130_v13 }
 0x147   : > { %2381 = vmatprep.mubr.msk.bf16.mxu0 %vm1502_vm1, %v4136_v24  ;;  %v1120_v24 = vunpack.c.l.bf16 %v4107_v18  ;;  %v1126_v18 = vunpack.c.h.bf16 %v4125_v30  ;;  %v1482_v47 = vpop.trf.xlu1 }
 0x148   : > { %1244 = vadd.xlane.f32.xlu0 %v1243_v52  ;;  %1247 = vadd.xlane.f32.xlu1 %v1246_v42  ;;  %v1447_v0 = vpop.trf.xlu0 }
 0x149   : > { %v1261_v23 = vadd.f32 %v1120_v24, %v1119_v43  ;;  %v1270_v7 = vadd.f32 %v1126_v18, %v1125_v32 }
 0x14b   : > { %v1483_v13 = vpop.trf.xlu1 }
 0x14c   : > { %1250 = vadd.xlane.f32.xlu0 %v1249_v1  ;;  %1253 = vadd.xlane.f32.xlu1 %v1252_v11  ;;  %v1448_v58 = vpop.trf.xlu0 }
 0x14d   : > { %1577 = vmatmul.mubr.bf16.gmra.mrb[4].mxu1 %v1447_v0 }
 0x14e   : > { %1700 = vmatmul.mubr.bf16.gmra.mrb[8].mxu0 %v1480_v6  ;;  %1586 = vmatprep.mubr.bf16.mxu1 %v4072_v51  ;;  %v1267_v51 = vadd.f32 %v1124_v15, %v1123_v45 }
 0x14f   : > { %2382 = vmatprep.mubr.msk.bf16.mxu0 %vm1502_vm1, %v4148_v53  ;;  %v1127_v53 = vunpack.c.l.bf16 %v4167_v34  ;;  %v1484_v52 = vpop.trf.xlu1 }
 0x150   : > { %1256 = vadd.xlane.f32.xlu0 %v1255_v2  ;;  %1259 = vadd.xlane.f32.xlu1 %v1258_v27  ;;  %v1449_v35 = vpop.trf.xlu0 }
 0x151   : > { %v1273_v30 = vadd.f32 %v1128_v60, %v1127_v53 }
 0x153   : > { %v1485_v44 = vpop.trf.xlu1 }
 0x154   : > { %1262 = vadd.xlane.f32.xlu0 %v1261_v23  ;;  %1265 = vadd.xlane.f32.xlu1 %v1264_v3  ;;  %v1450_v9 = vpop.trf.xlu0 }
 0x155   : > { %1587 = vmatmul.mubr.bf16.gmra.mrb[8].mxu1 %v1448_v58 }
 0x156   : > { %1710 = vmatmul.mubr.bf16.gmra.mrb[12].mxu0 %v1481_v59  ;;  %1596 = vmatprep.mubr.bf16.mxu1 %v4099_v5 }
 0x157   : > { %2383 = vmatprep.mubr.msk.bf16.mxu0 %vm1502_vm1, %v4158_v55 }
 0x158   : > { %1268 = vadd.xlane.f32.xlu0 %v1267_v51  ;;  %1271 = vadd.xlane.f32.xlu1 %v1270_v7  ;;  %v1451_v5 = vpop.trf.xlu0 }
 0x159   : > { %v1137_v28 = vpop.xlane.xlu1 %1136 }
 0x15a   : > { %v1278_v21 = vmul.f32 %v1137_v28, %v1137_v28 }
 0x15c   : > { %1274 = vadd.xlane.f32.xlu0 %v1273_v30  ;;  %v1452_v31 = vpop.trf.xlu0 }
 0x15d   : > { %1597 = vmatmul.mubr.bf16.gmra.mrb[12].mxu1 %v1449_v35 }
 0x15e   : > { %1720 = vmatmul.mubr.bf16.gmra.mrb[16].mxu0 %v1482_v47  ;;  %1606 = vmatprep.mubr.bf16.mxu1 %v4116_v10  ;;  %v1140_v10 = vpop.xlane.xlu1 %1139 }
 0x15f   : > { %2384 = vmatprep.mubr.msk.bf16.mxu0 %vm1502_vm1, %v4165_v37  ;;  %v1279_v16 = vmul.f32 %v1140_v10, %v1140_v10 }
 0x161   : > { %v1331_v22 = vsel %vm1325_vm0, %v1279_v16, 0.0 }
 0x162   : > { %v1146_v42 = vpop.xlane.xlu1 %1145 }
 0x163   : > { %v1281_v33 = vmul.f32 %v1146_v42, %v1146_v42 }
 0x165   : > { %1607 = vmatmul.mubr.bf16.gmra.mrb[16].mxu1 %v1450_v9  ;;  %v1335_v29 = vsel %vm1325_vm0, %v1281_v33, 0.0 }
 0x166   : > { %1730 = vmatmul.mubr.bf16.gmra.mrb[20].mxu0 %v1483_v13  ;;  %1616 = vmatprep.mubr.bf16.mxu1 %v4127_v26  ;;  %v1453_v26 = vpop.trf.xlu0  ;;  %v1152_v55 = vpop.xlane.xlu1 %1151 }
 0x167   : > { %2385 = vmatprep.mubr.msk.bf16.mxu0 %vm1502_vm1, %v4171_v48  ;;  %v1283_v48 = vmul.f32 %v1152_v55, %v1152_v55 }
 0x169   : > { %v1339_v14 = vsel %vm1325_vm0, %v1283_v48, 0.0 }
 0x16a   : > { %v1158_v50 = vpop.xlane.xlu1 %1157 }
 0x16b   : > { %v1285_v36 = vmul.f32 %v1158_v50, %v1158_v50 }
 0x16d   : > { %1617 = vmatmul.mubr.bf16.gmra.mrb[20].mxu1 %v1451_v5  ;;  %v1343_v63 = vsel %vm1325_vm0, %v1285_v36, 0.0 }
 0x16e   : > { %1740 = vmatmul.mubr.bf16.gmra.mrb[24].mxu0 %v1484_v52  ;;  %1626 = vmatprep.mubr.bf16.mxu1 %v4145_v46  ;;  %v1164_v25 = vpop.xlane.xlu1 %1163  ;;  %v1329_v46 = vsel %vm1325_vm0, %v1278_v21, 0.0 }
 0x16f   : > { %2386 = vmatprep.mubr.msk.bf16.mxu0 %vm1502_vm1, %v4175_v49  ;;  %v1330_v37 = vadd.f32 %v1329_v46, %v4110_v12  ;;  %v1287_v19 = vmul.f32 %v1164_v25, %v1164_v25 }
 0x171   : > { %v1332_v57 = vadd.f32 %v1331_v22, %v1330_v37  ;;  %v1347_v41 = vsel %vm1325_vm0, %v1287_v19, 0.0 }
 0x172   : > { %v1170_v62 = vpop.xlane.xlu1 %1169 }
 0x173   : > { %v1289_v59 = vmul.f32 %v1170_v62, %v1170_v62 }
 0x175   : > { %1627 = vmatmul.mubr.bf16.gmra.mrb[24].mxu1 %v1452_v31  ;;  %v1351_v18 = vsel %vm1325_vm0, %v1289_v59, 0.0 }
 0x176   : > { %1636 = vmatprep.mubr.bf16.mxu1 %v4161_v8  ;;  %1750 = vmatmul.mubr.bf16.gmra.mrb[28].mxu0 %v1485_v44  ;;  %v1176_v8 = vpop.xlane.xlu1 %1175 }
 0x177   : > { %v1291_v58 = vmul.f32 %v1176_v8, %v1176_v8 }
 0x179   : > { %v1355_v13 = vsel %vm1325_vm0, %v1291_v58, 0.0 }
 0x17b   : > { %v1182_v38 = vpop.xlane.xlu1 %1181 }
 0x17c   : > { %v1293_v35 = vmul.f32 %v1182_v38, %v1182_v38 }
 0x17d   : > { %1637 = vmatmul.mubr.bf16.gmra.mrb[28].mxu1 %v1453_v26 }
 0x17e   : > { %v1359_v31 = vsel %vm1325_vm0, %v1293_v35, 0.0 }
 0x185   : > { %v1188_v24 = vpop.xlane.xlu1 %1187 }
 0x186   : > { %v1295_v42 = vmul.f32 %v1188_v24, %v1188_v24 }
 0x188   : > { %v1363_v16 = vsel %vm1325_vm0, %v1295_v42, 0.0 }
 0x191   : > { %v1143_v34 = vpop.xlane.xlu0 %1142  ;;  %v1194_v7 = vpop.xlane.xlu1 %1193 }
 0x192   : > { %v1280_v56 = vmul.f32 %v1143_v34, %v1143_v34  ;;  %v1297_v62 = vmul.f32 %v1194_v7, %v1194_v7 }
 0x194   : > { %v1333_v61 = vsel %vm1325_vm0, %v1280_v56, 0.0 }
 0x195   : > { %v1334_v49 = vadd.f32 %v1333_v61, %v1332_v57  ;;  %v1149_v17 = vpop.xlane.xlu0 %1148  ;;  %v1367_v57 = vsel %vm1325_vm0, %v1297_v62, 0.0 }
 0x196   : > { %v1282_v20 = vmul.f32 %v1149_v17, %v1149_v17 }
 0x197   : > { %v1336_v40 = vadd.f32 %v1335_v29, %v1334_v49 }
 0x198   : > { %v1337_v54 = vsel %vm1325_vm0, %v1282_v20, 0.0 }
 0x199   : > { %v1338_v6 = vadd.f32 %v1337_v54, %v1336_v40  ;;  %v1155_v12 = vpop.xlane.xlu0 %1154 }
 0x19a   : > { %v1284_v39 = vmul.f32 %v1155_v12, %v1155_v12  ;;  %v1200_v28 = vpop.xlane.xlu1 %1199 }
 0x19b   : > { %v1340_v1 = vadd.f32 %v1339_v14, %v1338_v6  ;;  %v1299_v8 = vmul.f32 %v1200_v28, %v1200_v28 }
 0x19c   : > { %v1341_v11 = vsel %vm1325_vm0, %v1284_v39, 0.0 }
 0x19d   : > { %v1342_v0 = vadd.f32 %v1341_v11, %v1340_v1  ;;  %v1161_v2 = vpop.xlane.xlu0 %1160  ;;  %v1371_v40 = vsel %vm1325_vm0, %v1299_v8, 0.0 }
 0x19e   : > { %v1286_v43 = vmul.f32 %v1161_v2, %v1161_v2 }
 0x19f   : > { %v1344_v27 = vadd.f32 %v1343_v63, %v1342_v0 }
 0x1a0   : > { %v1345_v4 = vsel %vm1325_vm0, %v1286_v43, 0.0 }
 0x1a1   : > { %v1346_v45 = vadd.f32 %v1345_v4, %v1344_v27  ;;  %v1167_v15 = vpop.xlane.xlu0 %1166 }
 0x1a2   : > { %v1288_v23 = vmul.f32 %v1167_v15, %v1167_v15 }
 0x1a3   : > { %v1348_v3 = vadd.f32 %v1347_v41, %v1346_v45  ;;  %v1206_v33 = vpop.xlane.xlu1 %1205 }
 0x1a4   : > { %v1349_v32 = vsel %vm1325_vm0, %v1288_v23, 0.0  ;;  %v1301_v54 = vmul.f32 %v1206_v33, %v1206_v33 }
 0x1a5   : > { %v1350_v47 = vadd.f32 %v1349_v32, %v1348_v3  ;;  %v1173_v51 = vpop.xlane.xlu0 %1172 }
 0x1a6   : > { %v1290_v53 = vmul.f32 %v1173_v51, %v1173_v51  ;;  %v1375_v39 = vsel %vm1325_vm0, %v1301_v54, 0.0 }
 0x1a7   : > { %v1352_v60 = vadd.f32 %v1351_v18, %v1350_v47 }
 0x1a8   : > { %v1353_v30 = vsel %vm1325_vm0, %v1290_v53, 0.0 }
 0x1a9   : > { %v1354_v52 = vadd.f32 %v1353_v30, %v1352_v60  ;;  %v1179_v9 = vpop.xlane.xlu0 %1178 }
 0x1aa   : > { %v1292_v44 = vmul.f32 %v1179_v9, %v1179_v9 }
 0x1ab   : > { %v1356_v5 = vadd.f32 %v1355_v13, %v1354_v52 }
 0x1ac   : > { %v1357_v10 = vsel %vm1325_vm0, %v1292_v44, 0.0 }
 0x1ad   : > { %v1358_v26 = vadd.f32 %v1357_v10, %v1356_v5  ;;  %v1185_v55 = vpop.xlane.xlu0 %1184 }
 0x1ae   : > { %v1294_v50 = vmul.f32 %v1185_v55, %v1185_v55 }
 0x1af   : > { %v1360_v25 = vadd.f32 %v1359_v31, %v1358_v26  ;;  %v1212_v17 = vpop.xlane.xlu1 %1211 }
 0x1b0   : > { %v1361_v21 = vsel %vm1325_vm0, %v1294_v50, 0.0  ;;  %v1303_v1 = vmul.f32 %v1212_v17, %v1212_v17 }
 0x1b1   : > { %v1362_v46 = vadd.f32 %v1361_v21, %v1360_v25  ;;  %v1191_v22 = vpop.xlane.xlu0 %1190 }
 0x1b2   : > { %v1296_v37 = vmul.f32 %v1191_v22, %v1191_v22  ;;  %v1379_v27 = vsel %vm1325_vm0, %v1303_v1, 0.0 }
 0x1b3   : > { %v1364_v34 = vadd.f32 %v1363_v16, %v1362_v46 }
 0x1b4   : > { %v1365_v56 = vsel %vm1325_vm0, %v1296_v37, 0.0 }
 0x1b5   : > { %v1366_v61 = vadd.f32 %v1365_v56, %v1364_v34  ;;  %v1197_v29 = vpop.xlane.xlu0 %1196 }
 0x1b6   : > { %v1298_v48 = vmul.f32 %v1197_v29, %v1197_v29 }
 0x1b7   : > { %v1368_v49 = vadd.f32 %v1367_v57, %v1366_v61 }
 0x1b8   : > { %v1369_v20 = vsel %vm1325_vm0, %v1298_v48, 0.0 }
 0x1b9   : > { %v1370_v14 = vadd.f32 %v1369_v20, %v1368_v49  ;;  %v1203_v36 = vpop.xlane.xlu0 %1202 }
 0x1ba   : > { %v1300_v6 = vmul.f32 %v1203_v36, %v1203_v36  ;;  %v1218_v19 = vpop.xlane.xlu1 %1217 }
 0x1bb   : > { %v1372_v12 = vadd.f32 %v1371_v40, %v1370_v14  ;;  %v1305_v24 = vmul.f32 %v1218_v19, %v1218_v19 }
 0x1bc   : > { %v1373_v38 = vsel %vm1325_vm0, %v1300_v6, 0.0 }
 0x1bd   : > { %v1374_v11 = vadd.f32 %v1373_v38, %v1372_v12  ;;  %v1209_v63 = vpop.xlane.xlu0 %1208  ;;  %v1383_v23 = vsel %vm1325_vm0, %v1305_v24, 0.0 }
 0x1be   : > { %v1302_v0 = vmul.f32 %v1209_v63, %v1209_v63 }
 0x1bf   : > { %v1376_v2 = vadd.f32 %v1375_v39, %v1374_v11 }
 0x1c0   : > { %v1377_v43 = vsel %vm1325_vm0, %v1302_v0, 0.0 }
 0x1c1   : > { %v1378_v4 = vadd.f32 %v1377_v43, %v1376_v2  ;;  %v1215_v41 = vpop.xlane.xlu0 %1214 }
 0x1c2   : > { %v1304_v59 = vmul.f32 %v1215_v41, %v1215_v41 }
 0x1c3   : > { %v1380_v45 = vadd.f32 %v1379_v27, %v1378_v4 }
 0x1c4   : > { %v1381_v15 = vsel %vm1325_vm0, %v1304_v59, 0.0 }
 0x1c5   : > { %v1382_v3 = vadd.f32 %v1381_v15, %v1380_v45  ;;  %v1221_v32 = vpop.xlane.xlu0 %1220  ;;  %v1224_v18 = vpop.xlane.xlu1 %1223 }
 0x1c6   : > { %v1306_v58 = vmul.f32 %v1221_v32, %v1221_v32  ;;  %v1307_v47 = vmul.f32 %v1224_v18, %v1224_v18 }
 0x1c7   : > { %v1384_v51 = vadd.f32 %v1383_v23, %v1382_v3 }
 0x1c8   : > { %v1385_v7 = vsel %vm1325_vm0, %v1306_v58, 0.0  ;;  %v1387_v53 = vsel %vm1325_vm0, %v1307_v47, 0.0 }
 0x1c9   : > { %v1386_v60 = vadd.f32 %v1385_v7, %v1384_v51  ;;  %v1227_v30 = vpop.xlane.xlu0 %1226  ;;  %v1230_v13 = vpop.xlane.xlu1 %1229 }
 0x1ca   : > { %v1308_v35 = vmul.f32 %v1227_v30, %v1227_v30  ;;  %v1309_v52 = vmul.f32 %v1230_v13, %v1230_v13 }
 0x1cb   : > { %v1388_v9 = vadd.f32 %v1387_v53, %v1386_v60 }
 0x1cc   : > { %v1389_v44 = vsel %vm1325_vm0, %v1308_v35, 0.0  ;;  %v1391_v5 = vsel %vm1325_vm0, %v1309_v52, 0.0 }
 0x1cd   : > { %v1390_v28 = vadd.f32 %v1389_v44, %v1388_v9  ;;  %v1233_v10 = vpop.xlane.xlu0 %1232  ;;  %v1236_v31 = vpop.xlane.xlu1 %1235 }
 0x1ce   : > { %v1310_v42 = vmul.f32 %v1233_v10, %v1233_v10  ;;  %v1311_v26 = vmul.f32 %v1236_v31, %v1236_v31 }
 0x1cf   : > { %v1392_v55 = vadd.f32 %v1391_v5, %v1390_v28 }
 0x1d0   : > { %v1393_v50 = vsel %vm1325_vm0, %v1310_v42, 0.0  ;;  %v1395_v25 = vsel %vm1325_vm0, %v1311_v26, 0.0 }
 0x1d1   : > { %v1394_v21 = vadd.f32 %v1393_v50, %v1392_v55  ;;  %v1239_v16 = vpop.xlane.xlu0 %1238  ;;  %v1242_v62 = vpop.xlane.xlu1 %1241 }
 0x1d2   : > { %v1312_v46 = vmul.f32 %v1239_v16, %v1239_v16  ;;  %v1313_v22 = vmul.f32 %v1242_v62, %v1242_v62 }
 0x1d3   : > { %v1396_v33 = vadd.f32 %v1395_v25, %v1394_v21 }
 0x1d4   : > { %v1397_v37 = vsel %vm1325_vm0, %v1312_v46, 0.0  ;;  %v1399_v34 = vsel %vm1325_vm0, %v1313_v22, 0.0 }
 0x1d5   : > { %v1398_v56 = vadd.f32 %v1397_v37, %v1396_v33  ;;  %v1245_v57 = vpop.xlane.xlu0 %1244  ;;  %v1248_v8 = vpop.xlane.xlu1 %1247 }
 0x1d6   : > { %v1314_v61 = vmul.f32 %v1245_v57, %v1245_v57  ;;  %v1315_v29 = vmul.f32 %v1248_v8, %v1248_v8 }
 0x1d7   : > { %v1400_v48 = vadd.f32 %v1399_v34, %v1398_v56 }
 0x1d8   : > { %v1401_v49 = vsel %vm1325_vm0, %v1314_v61, 0.0  ;;  %v1403_v17 = vsel %vm1325_vm0, %v1315_v29, 0.0 }
 0x1d9   : > { %v1402_v20 = vadd.f32 %v1401_v49, %v1400_v48  ;;  %v1251_v40 = vpop.xlane.xlu0 %1250  ;;  %v1254_v54 = vpop.xlane.xlu1 %1253 }
 0x1da   : > { %v1316_v14 = vmul.f32 %v1251_v40, %v1251_v40  ;;  %v1317_v36 = vmul.f32 %v1254_v54, %v1254_v54 }
 0x1db   : > { %v1404_v6 = vadd.f32 %v1403_v17, %v1402_v20 }
 0x1dc   : > { %v1405_v12 = vsel %vm1325_vm0, %v1316_v14, 0.0  ;;  %v1407_v38 = vsel %vm1325_vm0, %v1317_v36, 0.0 }
 0x1dd   : > { %v1406_v39 = vadd.f32 %v1405_v12, %v1404_v6  ;;  %v1257_v1 = vpop.xlane.xlu0 %1256  ;;  %v1260_v11 = vpop.xlane.xlu1 %1259 }
 0x1de   : > { %v1318_v63 = vmul.f32 %v1257_v1, %v1257_v1  ;;  %v1319_v19 = vmul.f32 %v1260_v11, %v1260_v11 }
 0x1df   : > { %v1408_v0 = vadd.f32 %v1407_v38, %v1406_v39 }
 0x1e0   : > { %v1409_v2 = vsel %vm1325_vm0, %v1318_v63, 0.0  ;;  %v1411_v43 = vsel %vm1325_vm0, %v1319_v19, 0.0 }
 0x1e1   : > { %v1410_v27 = vadd.f32 %v1409_v2, %v1408_v0  ;;  %v1263_v24 = vpop.xlane.xlu0 %1262  ;;  %v1266_v4 = vpop.xlane.xlu1 %1265 }
 0x1e2   : > { %v1320_v41 = vmul.f32 %v1263_v24, %v1263_v24  ;;  %v1321_v59 = vmul.f32 %v1266_v4, %v1266_v4 }
 0x1e3   : > { %v1412_v45 = vadd.f32 %v1411_v43, %v1410_v27 }
 0x1e4   : > { %v1413_v15 = vsel %vm1325_vm0, %v1320_v41, 0.0  ;;  %v1415_v23 = vsel %vm1325_vm0, %v1321_v59, 0.0 }
 0x1e5   : > { %v1414_v3 = vadd.f32 %v1413_v15, %v1412_v45  ;;  %v1269_v32 = vpop.xlane.xlu0 %1268  ;;  %v1272_v18 = vpop.xlane.xlu1 %1271 }
 0x1e6   : > { %v1322_v58 = vmul.f32 %v1269_v32, %v1269_v32  ;;  %v1323_v47 = vmul.f32 %v1272_v18, %v1272_v18 }
 0x1e7   : > { %v1416_v51 = vadd.f32 %v1415_v23, %v1414_v3 }
 0x1e8   : > { %v1417_v7 = vsel %vm1325_vm0, %v1322_v58, 0.0  ;;  %v1419_v53 = vsel %vm1325_vm0, %v1323_v47, 0.0 }
 0x1e9   : > { %v1418_v60 = vadd.f32 %v1417_v7, %v1416_v51  ;;  %v1275_v30 = vpop.xlane.xlu0 %1274 }
 0x1ea   : > { %v1324_v13 = vmul.f32 %v1275_v30, %v1275_v30 }
 0x1eb   : > { %v1420_v35 = vadd.f32 %v1419_v53, %v1418_v60 }
 0x1ec   : > { %v1421_v52 = vsel %vm1325_vm0, %v1324_v13, 0.0 }
 0x1ed   : > { %v1422_v9 = vadd.f32 %v1421_v52, %v1420_v35 }
 0x1ef   : > { %1423 = vadd.xlane.f32.xlu1 %v1422_v9 }
 0x211   : > { %v1681_v44 = vpop.f32.mrb[0].mxu0 }
 0x212   : > { %v1683_v5 = vpop.f32.mrb[1].mxu0 }
 0x213   : > { %v1685_v28 = vpop.f32.mrb[2].mxu0 }
 0x214   : > { %v1687_v10 = vpop.f32.mrb[3].mxu0 }
 0x218   : > { %v1568_v31 = vpop.f32.mrb[0].mxu1 }
 0x219   : > { %v4262_v42 = vadd.f32 %v1681_v44, %v1568_v31  ;;  %v1570_v26 = vpop.f32.mrb[1].mxu1  ;;  %v1691_v55 = vpop.f32.mrb[4].mxu0 }
 0x21a   : > { %v4264_v50 = vadd.f32 %v1683_v5, %v1570_v26  ;;  %v1572_v25 = vpop.f32.mrb[2].mxu1  ;;  %v1693_v21 = vpop.f32.mrb[5].mxu0 }
 0x21b   : > { %v4266_v16 = vadd.f32 %v1685_v28, %v1572_v25  ;;  %v1574_v62 = vpop.f32.mrb[3].mxu1  ;;  %v1695_v46 = vpop.f32.mrb[6].mxu0 }
 0x21c   : > { %v4268_v22 = vadd.f32 %v1687_v10, %v1574_v62  ;;  %v1697_v33 = vpop.f32.mrb[7].mxu0 }
 0x220   : > { %v1578_v37 = vpop.f32.mrb[4].mxu1 }
 0x221   : > { %v4270_v34 = vadd.f32 %v1691_v55, %v1578_v37  ;;  %v1580_v56 = vpop.f32.mrb[5].mxu1  ;;  %v1701_v57 = vpop.f32.mrb[8].mxu0 }
 0x222   : > { %v4272_v8 = vadd.f32 %v1693_v21, %v1580_v56  ;;  %v1582_v61 = vpop.f32.mrb[6].mxu1  ;;  %v1703_v29 = vpop.f32.mrb[9].mxu0 }
 0x223   : > { %v1584_v48 = vpop.f32.mrb[7].mxu1  ;;  %v1705_v49 = vpop.f32.mrb[10].mxu0  ;;  %v4274_v20 = vadd.f32 %v1695_v46, %v1582_v61 }
 0x224   : > { %v1707_v17 = vpop.f32.mrb[11].mxu0  ;;  %v4276_v40 = vadd.f32 %v1697_v33, %v1584_v48 }
 0x228   : > { %v1588_v54 = vpop.f32.mrb[8].mxu1 }
 0x229   : > { %v1590_v14 = vpop.f32.mrb[9].mxu1  ;;  %v1711_v36 = vpop.f32.mrb[12].mxu0  ;;  %v4278_v39 = vadd.f32 %v1701_v57, %v1588_v54 }
 0x22a   : > { %v1592_v6 = vpop.f32.mrb[10].mxu1  ;;  %v1713_v12 = vpop.f32.mrb[13].mxu0  ;;  %v4280_v1 = vadd.f32 %v1703_v29, %v1590_v14 }
 0x22b   : > { %v1594_v38 = vpop.f32.mrb[11].mxu1  ;;  %v4282_v11 = vadd.f32 %v1705_v49, %v1592_v6  ;;  %v1715_v63 = vpop.f32.mrb[14].mxu0 }
 0x22c   : > { %v1717_v19 = vpop.f32.mrb[15].mxu0  ;;  %v4284_v2 = vadd.f32 %v1707_v17, %v1594_v38 }
 0x230   : > { %v1598_v0 = vpop.f32.mrb[12].mxu1 }
 0x231   : > { %v1600_v43 = vpop.f32.mrb[13].mxu1  ;;  %v1721_v27 = vpop.f32.mrb[16].mxu0  ;;  %v4286_v24 = vadd.f32 %v1711_v36, %v1598_v0 }
 0x232   : > { %v1602_v4 = vpop.f32.mrb[14].mxu1  ;;  %v1723_v41 = vpop.f32.mrb[17].mxu0  ;;  %v4288_v59 = vadd.f32 %v1713_v12, %v1600_v43 }
 0x233   : > { %v4290_v45 = vadd.f32 %v1715_v63, %v1602_v4  ;;  %v1604_v15 = vpop.f32.mrb[15].mxu1  ;;  %v1725_v23 = vpop.f32.mrb[18].mxu0 }
 0x234   : > { %v1727_v3 = vpop.f32.mrb[19].mxu0  ;;  %v4292_v18 = vadd.f32 %v1717_v19, %v1604_v15 }
 0x238   : > { %v1608_v32 = vpop.f32.mrb[16].mxu1 }
 0x239   : > { %v1610_v58 = vpop.f32.mrb[17].mxu1  ;;  %v1731_v47 = vpop.f32.mrb[20].mxu0  ;;  %v4294_v35 = vadd.f32 %v1721_v27, %v1608_v32 }
 0x23a   : > { %v1612_v51 = vpop.f32.mrb[18].mxu1  ;;  %v1733_v7 = vpop.f32.mrb[21].mxu0  ;;  %v4296_v52 = vadd.f32 %v1723_v41, %v1610_v58 }
 0x23b   : > { %v1614_v53 = vpop.f32.mrb[19].mxu1  ;;  %v1735_v60 = vpop.f32.mrb[22].mxu0  ;;  %v4298_v26 = vadd.f32 %v1725_v23, %v1612_v51  ;;  %v1760_v51 = vmul.f32 0.0025510204, %v4262_v42 }
 0x23c   : > { %v1737_v30 = vpop.f32.mrb[23].mxu0  ;;  %v4300_v25 = vadd.f32 %v1727_v3, %v1614_v53 }
 0x23d   : > { %v4328_v53 = vadd.f32 1e-08, %v1760_v51  ;;  %v1774_v51 = vmul.f32 0.0025510204, %v4290_v45 }
 0x23f   : > { %2846 = vrsqrt.f32 %v4328_v53  ;;  %vm1826_vm3 = vcmp.eq.f32.partialorder %v4328_v53, inf  ;;  %vm1828_vm4 = vcmp.eq.f32.partialorder %v4328_v53, 0.0 }
 0x240   : > { %v1618_v13 = vpop.f32.mrb[20].mxu1 }
 0x241   : > { %v1620_v9 = vpop.f32.mrb[21].mxu1  ;;  %v1741_v44 = vpop.f32.mrb[24].mxu0  ;;  %v4302_v21 = vadd.f32 %v1731_v47, %v1618_v13  ;;  %v1763_v13 = vmul.f32 0.0025510204, %v4268_v22  ;;  %v1767_v22 = vmul.f32 0.0025510204, %v4276_v40 }
 0x242   : > { %v1622_v5 = vpop.f32.mrb[22].mxu1  ;;  %v1743_v28 = vpop.f32.mrb[25].mxu0  ;;  %v4304_v62 = vadd.f32 %v1733_v7, %v1620_v9  ;;  %v1761_v7 = vmul.f32 0.0025510204, %v4264_v50  ;;  %v1764_v50 = vmul.f32 0.0025510204, %v4270_v34 }
 0x243   : > { %v1624_v10 = vpop.f32.mrb[23].mxu1  ;;  %v1745_v31 = vpop.f32.mrb[26].mxu0  ;;  %v4306_v46 = vadd.f32 %v1735_v60, %v1622_v5  ;;  %v1765_v5 = vmul.f32 0.0025510204, %v4272_v8  ;;  %v4352_v34 = vadd.f32 1e-08, %v1767_v22 }
 0x244   : > { %v1747_v55 = vpop.f32.mrb[27].mxu0  ;;  %v4308_v54 = vadd.f32 %v1737_v30, %v1624_v10  ;;  %v4330_v60 = vadd.f32 1e-08, %v1761_v7  ;;  %v1762_v30 = vmul.f32 0.0025510204, %v4266_v16 }
 0x245   : > { %v1766_v16 = vmul.f32 0.0025510204, %v4274_v20  ;;  %v4348_v10 = vadd.f32 1e-08, %v1765_v5  ;;  %v1768_v8 = vmul.f32 0.0025510204, %v4278_v39 }
 0x246   : > { %2848 = vrsqrt.f32 %v4330_v60  ;;  %v4336_v9 = vadd.f32 1e-08, %v1762_v30  ;;  %v1769_v40 = vmul.f32 0.0025510204, %v4280_v1  ;;  %vm1833_vm5 = vcmp.eq.f32.partialorder %v4330_v60, inf }
 0x247   : > { %v1770_v1 = vmul.f32 0.0025510204, %v4282_v11  ;;  %vm1835_vm6 = vcmp.eq.f32.partialorder %v4330_v60, 0.0  ;;  %vm1861_vm13 = vcmp.eq.f32.partialorder %v4348_v10, inf  ;;  %vm1863_vm14 = vcmp.eq.f32.partialorder %v4348_v10, 0.0 }
 0x248   : > { %v1628_v33 = vpop.f32.mrb[24].mxu1  ;;  %vm1840_vm7 = vcmp.eq.f32.partialorder %v4336_v9, inf  ;;  %vm1842_vm8 = vcmp.eq.f32.partialorder %v4336_v9, 0.0  ;;  %v1864_v30 = vand.u32 2147483648, %v4348_v10  ;;  %vm1875_vm1 = vcmp.eq.f32.partialorder %v4352_v34, inf }
 0x249   : > { %v1630_v37 = vpop.f32.mrb[25].mxu1  ;;  %v1751_v56 = vpop.f32.mrb[28].mxu0  ;;  %v4310_v14 = vadd.f32 %v1741_v44, %v1628_v33  ;;  %v4339_v44 = vadd.f32 1e-08, %v1763_v13  ;;  %vm1877_vm2 = vcmp.eq.f32.partialorder %v4352_v34, 0.0 }
 0x24a   : > { %v1632_v57 = vpop.f32.mrb[26].mxu1  ;;  %v1753_v61 = vpop.f32.mrb[29].mxu0  ;;  %v4312_v6 = vadd.f32 %v1743_v28, %v1630_v37  ;;  %v4345_v28 = vadd.f32 1e-08, %v1764_v50 }
 0x24b   : > { %v1634_v29 = vpop.f32.mrb[27].mxu1  ;;  %v1755_v48 = vpop.f32.mrb[30].mxu0  ;;  %v4314_v12 = vadd.f32 %v1745_v31, %v1632_v57  ;;  %v4350_v31 = vadd.f32 1e-08, %v1766_v16  ;;  %v4366_v57 = vadd.f32 1e-08, %v1768_v8 }
 0x24c   : > { %v1757_v49 = vpop.f32.mrb[31].mxu0  ;;  %v4316_v38 = vadd.f32 %v1747_v55, %v1634_v29  ;;  %v2847_v55 = vpop.eup %2846  ;;  %v4371_v29 = vadd.f32 1e-08, %v1769_v40  ;;  %vm1847_vm9 = vcmp.eq.f32.partialorder %v4339_v44, inf  ;;  %vm1849_vm10 = vcmp.eq.f32.partialorder %v4339_v44, 0.0 }
 0x24d   : > { %v1825_v37 = vmul.f32 %v2847_v55, %v4328_v53  ;;  %vm1854_vm11 = vcmp.eq.f32.partialorder %v4345_v28, inf  ;;  %vm1856_vm12 = vcmp.eq.f32.partialorder %v4345_v28, 0.0  ;;  %vm1868_vm15 = vcmp.eq.f32.partialorder %v4350_v31, inf }
 0x24e   : > { %vm1870_vm0 = vcmp.eq.f32.partialorder %v4350_v31, 0.0  ;;  %v1871_v22 = vand.u32 2147483648, %v4350_v31  ;;  %v4428_v55 = vadd.f32 1e-08, %v1774_v51  ;;  %v1778_v51 = vmul.f32 0.0025510204, %v4298_v26 }
 0x24f   : > { %v1827_v11 = vsel %vm1826_vm3, %v4328_v53, %v1825_v37  ;;  %v1878_v37 = vand.u32 2147483648, %v4352_v34  ;;  %vm1882_vm3 = vcmp.eq.f32.partialorder %v4366_v57, inf  ;;  %v1780_v26 = vmul.f32 0.0025510204, %v4302_v21 }
 0x250   : > { %v1638_v17 = vpop.f32.mrb[28].mxu1  ;;  %v2849_v20 = vpop.eup %2848  ;;  %v4523_v21 = vadd.f32 1e-08, %v1778_v51 }
 0x251   : > { %v1640_v36 = vpop.f32.mrb[29].mxu1  ;;  %v4318_v63 = vadd.f32 %v1751_v56, %v1638_v17  ;;  %v1829_v56 = vand.u32 2147483648, %v4328_v53  ;;  %v1832_v39 = vmul.f32 %v2849_v20, %v4330_v60  ;;  %v1843_v17 = vand.u32 2147483648, %v4336_v9 }
 0x252   : > { %v1642_v19 = vpop.f32.mrb[30].mxu1  ;;  %v4320_v43 = vadd.f32 %v1753_v61, %v1640_v36  ;;  %v1836_v61 = vand.u32 2147483648, %v4330_v60  ;;  %v1775_v20 = vmul.f32 0.0025510204, %v4292_v18 }
 0x253   : > { %v1644_v0 = vpop.f32.mrb[31].mxu1  ;;  %v4322_v27 = vadd.f32 %v1755_v48, %v1642_v19  ;;  %v1771_v48 = vmul.f32 0.0025510204, %v4284_v2  ;;  %v1850_v19 = vand.u32 2147483648, %v4339_v44  ;;  %v1834_v2 = vsel %vm1833_vm5, %v4330_v60, %v1832_v39 }
 0x254   : > { %v4324_v4 = vadd.f32 %v1757_v49, %v1644_v0  ;;  %v4388_v0 = vadd.f32 1e-08, %v1770_v1  ;;  %v4403_v7 = vsel %vm1828_vm4, %v1829_v56, %v1827_v11  ;;  %v4410_v13 = vsel %vm1835_vm6, %v1836_v61, %v1834_v2 }
 0x255   : > { %vm1884_vm4 = vcmp.eq.f32.partialorder %v4366_v57, 0.0  ;;  %v1885_v1 = vand.u32 2147483648, %v4366_v57  ;;  %vm1889_vm5 = vcmp.eq.f32.partialorder %v4371_v29, inf  ;;  %vm1891_vm6 = vcmp.eq.f32.partialorder %v4371_v29, 0.0 }
 0x256   : > { %v1776_v11 = vmul.f32 0.0025510204, %v4294_v35  ;;  %v1777_v35 = vmul.f32 0.0025510204, %v4296_v52 }
 0x27c   : > { %v1424_v41 = vpop.xlane.xlu1 %1423 }
 0x27d   : > { %v1425_v15 = vrot.slane %v1424_v41, 4 }
 0x27f   : > { %v1426_v23 = vadd.f32 %v1425_v15, %v1424_v41  ;;  %v1772_v41 = vmul.f32 0.0025510204, %v4286_v24 }
 0x281   : > { %v1427_v3 = vrot.slane %v1426_v23, 2  ;;  %v4414_v45 = vadd.f32 1e-08, %v1772_v41 }
 0x283   : > { %v1428_v32 = vadd.f32 %v1427_v3, %v1426_v23  ;;  %v4394_v23 = vadd.f32 1e-08, %v1771_v48  ;;  %v1773_v3 = vmul.f32 0.0025510204, %v4288_v59  ;;  %v4461_v48 = vadd.f32 1e-08, %v1775_v20 }
 0x285   : > { %v1429_v58 = vrot.slane %v1428_v32, 1  ;;  %v4421_v5 = vadd.f32 1e-08, %v1773_v3 }
 0x287   : > { %v1430_v47 = vadd.f32 %v1429_v58, %v1428_v32 }
 0x289   : > { %2433 = vpush %v1430_v47  ;;  %v1857_v47 = vand.u32 2147483648, %v4345_v28 }
 0x2ba   : > { %s2434_s24 = spop %2433 }
 0x2bb   : > { %s1432_s5 = smul.f32 0.0025510204, %s2434_s24  ;;  %s3036_s24 = scalar_lea.vmem %s4920_s16, 4096 }
 0x2bc   : > { %p3037_p2 = scmp.ne.s32.totalorder %s4920_s16, %s3036_s24 }
 0x2bd   : > { %s1433_s3 = sadd.f32 0.00065536, %s1432_s5  ;;  %s3171_s5 = smov [#allocation7]  }
 0x2be   : > { %p3038_p10 = pnand %p3037_p2, %p5018_p1 }
 0x2bf   : > { %s1434_s0 = smax.f32 %s3170_s23, %s1433_s3  ;;  %s3040_s3 = sshll.u32 %s3171_s5, 4  ;;  %s3041_s3 = int_to_ptr.vmem [resolvable:$false] %s3040_s3 }
 0x2c0   : > { %v1435_v42 = vstv %s1434_s0  ;;  %p3039_p7 = pneg %p3038_p10  ;;  %s3042_s23 = scalar_lea.vmem %s3041_s3, 8192 }
 0x2c1   : > { %2850 = vrsqrt.f32 %v1435_v42  ;;  %p3043_p9 = scmp.lt.s32.totalorder %s4920_s16, %s3041_s3  ;;  %p3044_p5 = scmp.lt.s32.totalorder %s3042_s23, %s3036_s24 }
 0x2c2   : > { %2852 = vrsqrt.f32 %v4336_v9 }
 0x2c3   : > { %2854 = vrsqrt.f32 %v4339_v44  ;;  %p3045_p8 = por %p3044_p5, %p3043_p9 }
 0x2c4   : > { %2856 = vrsqrt.f32 %v4345_v28 }
 0x2c5   : > { %2858 = vrsqrt.f32 %v4348_v10  ;;  %p3046_p12 = pnand %p3045_p8, %p3039_p7 }
 0x2c6   : > { %2860 = vrsqrt.f32 %v4350_v31 }
 0x2c7   : > { %2862 = vrsqrt.f32 %v4352_v34 }
 0x2c8   : > { %2864 = vrsqrt.f32 %v4366_v57 }
 0x2c9   : > { %2866 = vrsqrt.f32 %v4371_v29 }
 0x2ca   : > { %2868 = vrsqrt.f32 %v4388_v0 }
 0x2cb   : > { %v2851_v33 = vpop.eup %2850  ;;  %2870 = vrsqrt.f32 %v4394_v23 }
 0x2cc   : > { %2435 = vpush %v2851_v33  ;;  %v2853_v49 = vpop.eup %2852  ;;  %2872 = vrsqrt.f32 %v4414_v45 }
 0x2cd   : > { %v2855_v36 = vpop.eup %2854  ;;  %v1839_v15 = vmul.f32 %v2853_v49, %v4336_v9  ;;  %2874 = vrsqrt.f32 %v4421_v5 }
 0x2ce   : > { %v2857_v32 = vpop.eup %2856  ;;  %v1846_v58 = vmul.f32 %v2855_v36, %v4339_v44  ;;  %2876 = vrsqrt.f32 %v4428_v55  ;;  %v1892_v36 = vand.u32 2147483648, %v4371_v29 }
 0x2cf   : > { %v2859_v24 = vpop.eup %2858  ;;  %v1841_v42 = vsel %vm1840_vm7, %v4336_v9, %v1839_v15  ;;  %v1853_v50 = vmul.f32 %v2857_v32, %v4345_v28  ;;  %vm1896_vm7 = vcmp.eq.f32.partialorder %v4388_v0, inf  ;;  %2878 = vrsqrt.f32 %v4461_v48 }
 0x2d0   : > { %v2861_v59 = vpop.eup %2860  ;;  %v1848_v60 = vsel %vm1847_vm9, %v4339_v44, %v1846_v58  ;;  %v1860_v16 = vmul.f32 %v2859_v24, %v4348_v10  ;;  %v4436_v40 = vsel %vm1842_vm8, %v1843_v17, %v1841_v42  ;;  %vm1898_vm8 = vcmp.eq.f32.partialorder %v4388_v0, 0.0 }
 0x2d1   : > { %v2863_v53 = vpop.eup %2862  ;;  %v1867_v8 = vmul.f32 %v2861_v59, %v4350_v31  ;;  %v4443_v56 = vsel %vm1849_vm10, %v1850_v19, %v1848_v60  ;;  %v1855_v39 = vsel %vm1854_vm11, %v4345_v28, %v1853_v50  ;;  %v1899_v28 = vand.u32 2147483648, %v4388_v0 }
 0x2d2   : > { %v1874_v33 = vmul.f32 %v2863_v53, %v4352_v34  ;;  %v2865_v18 = vpop.eup %2864  ;;  %v1862_v9 = vsel %vm1861_vm13, %v4348_v10, %v1860_v16  ;;  %v4465_v49 = vsel %vm1856_vm12, %v1857_v47, %v1855_v39  ;;  %vm1903_vm9 = vcmp.eq.f32.partialorder %v4394_v23, inf }
 0x2d3   : > { %v2867_v44 = vpop.eup %2866  ;;  %v1869_v61 = vsel %vm1868_vm15, %v4350_v31, %v1867_v8  ;;  %v4474_v19 = vsel %vm1863_vm14, %v1864_v30, %v1862_v9  ;;  %v1881_v2 = vmul.f32 %v2865_v18, %v4366_v57  ;;  %vm1905_vm10 = vcmp.eq.f32.partialorder %v4394_v23, 0.0 }
 0x2d4   : > { %v1876_v17 = vsel %vm1875_vm1, %v4352_v34, %v1874_v33  ;;  %v2869_v41 = vpop.eup %2868  ;;  %v4481_v15 = vsel %vm1870_vm0, %v1871_v22, %v1869_v61  ;;  %v1888_v3 = vmul.f32 %v2867_v44, %v4371_v29  ;;  %v1906_v58 = vand.u32 2147483648, %v4394_v23 }
 0x2d5   : > { %v2871_v10 = vpop.eup %2870  ;;  %v4489_v32 = vsel %vm1877_vm2, %v1878_v37, %v1876_v17  ;;  %vm1910_vm11 = vcmp.eq.f32.partialorder %v4414_v45, inf  ;;  %v1913_v31 = vand.u32 2147483648, %v4414_v45  ;;  %v4496_v47 = vadd.f32 1e-08, %v1776_v11 }
 0x2d6   : > { %v1883_v52 = vsel %vm1882_vm3, %v4366_v57, %v1881_v2  ;;  %v1895_v34 = vmul.f32 %v2869_v41, %v4388_v0  ;;  %vm1917_vm12 = vcmp.eq.f32.partialorder %v4421_v5, inf  ;;  %v1779_v24 = vmul.f32 0.0025510204, %v4300_v25  ;;  %v2873_v30 = vpop.eup %2872 }
 0x2d7   : > { %v1890_v59 = vsel %vm1889_vm5, %v4371_v29, %v1888_v3  ;;  %v1902_v53 = vmul.f32 %v2871_v10, %v4394_v23  ;;  %v4509_v42 = vadd.f32 1e-08, %v1777_v35  ;;  %v2875_v50 = vpop.eup %2874  ;;  %vm1912_vm13 = vcmp.eq.f32.partialorder %v4414_v45, 0.0 }
 0x2d8   : > { %vm1919_vm14 = vcmp.eq.f32.partialorder %v4421_v5, 0.0  ;;  %v1920_v60 = vand.u32 2147483648, %v4421_v5  ;;  %vm1924_vm15 = vcmp.eq.f32.partialorder %v4428_v55, inf  ;;  %v1927_v25 = vand.u32 2147483648, %v4428_v55  ;;  %v2877_v16 = vpop.eup %2876 }
 0x2d9   : > { %v4519_v22 = vsel %vm1884_vm4, %v1885_v1, %v1883_v52  ;;  %vm1926_vm0 = vcmp.eq.f32.partialorder %v4428_v55, 0.0  ;;  %2880 = vrsqrt.f32 %v4496_v47  ;;  %v1781_v8 = vmul.f32 0.0025510204, %v4304_v62  ;;  %v2879_v17 = vpop.eup %2878 }
 0x2da   : > { %v4528_v20 = vsel %vm1891_vm6, %v1892_v36, %v1890_v59  ;;  %vm1931_vm1 = vcmp.eq.f32.partialorder %v4461_v48, inf  ;;  %v4531_v33 = vadd.f32 1e-08, %v1779_v24  ;;  %v1782_v57 = vmul.f32 0.0025510204, %v4306_v46 }
 0x2db   : > { %v1897_v37 = vsel %vm1896_vm7, %v4388_v0, %v1895_v34  ;;  %v1904_v39 = vsel %vm1903_vm9, %v4394_v23, %v1902_v53  ;;  %2882 = vrsqrt.f32 %v4509_v42  ;;  %v4541_v62 = vadd.f32 1e-08, %v1780_v26 }
 0x2dc   : > { %v1909_v29 = vmul.f32 %v2873_v30, %v4414_v45  ;;  %v1916_v18 = vmul.f32 %v2875_v50, %v4421_v5  ;;  %v1923_v9 = vmul.f32 %v2877_v16, %v4428_v55  ;;  %v1783_v46 = vmul.f32 0.0025510204, %v4308_v54 }
 0x2dd   : > { %v1934_v1 = vand.u32 2147483648, %v4461_v48  ;;  %2884 = vrsqrt.f32 %v4523_v21  ;;  %v4549_v44 = vadd.f32 1e-08, %v1781_v8  ;;  %v1784_v61 = vmul.f32 0.0025510204, %v4310_v14 }
 0x2de   : > { %v4554_v36 = vsel %vm1898_vm8, %v1899_v28, %v1897_v37  ;;  %vm1933_vm2 = vcmp.eq.f32.partialorder %v4461_v48, 0.0  ;;  %2886 = vrsqrt.f32 %v4531_v33  ;;  %v4558_v11 = vadd.f32 1e-08, %v1782_v57 }
 0x2df   : > { %v1785_v54 = vmul.f32 0.0025510204, %v4312_v6  ;;  %v4563_v2 = vsel %vm1905_vm10, %v1906_v58, %v1904_v39  ;;  %vm1938_vm3 = vcmp.eq.f32.partialorder %v4496_v47, inf  ;;  %v1941_v14 = vand.u32 2147483648, %v4496_v47 }
 0x2e0   : > { %2888 = vrsqrt.f32 %v4541_v62  ;;  %v1911_v0 = vsel %vm1910_vm11, %v4414_v45, %v1909_v29  ;;  %v1918_v28 = vsel %vm1917_vm12, %v4421_v5, %v1916_v18  ;;  %v1925_v6 = vsel %vm1924_vm15, %v4428_v55, %v1923_v9 }
 0x2e1   : > { %v4577_v23 = vadd.f32 1e-08, %v1783_v46  ;;  %v1930_v41 = vmul.f32 %v2879_v17, %v4461_v48  ;;  %2890 = vrsqrt.f32 %v4549_v44  ;;  %v4581_v3 = vadd.f32 1e-08, %v1784_v61 }
 0x2e2   : > { %v1786_v35 = vmul.f32 0.0025510204, %v4314_v12  ;;  %vm1940_vm4 = vcmp.eq.f32.partialorder %v4496_v47, 0.0  ;;  %vm1945_vm5 = vcmp.eq.f32.partialorder %v4509_v42, inf  ;;  %2892 = vrsqrt.f32 %v4558_v11 }
 0x2e3   : > { %v4587_v10 = vadd.f32 1e-08, %v1785_v54  ;;  %v1787_v58 = vmul.f32 0.0025510204, %v4316_v38  ;;  %v2881_v51 = vpop.eup %2880  ;;  %v4594_v52 = vsel %vm1912_vm13, %v1913_v31, %v1911_v0  ;;  %v4598_v12 = vsel %vm1919_vm14, %v1920_v60, %v1918_v28 }
 0x2e4   : > { %v1948_v34 = vand.u32 2147483648, %v4509_v42  ;;  %v1788_v24 = vmul.f32 0.0025510204, %v4318_v63  ;;  %v4604_v30 = vsel %vm1926_vm0, %v1927_v25, %v1925_v6  ;;  %vm1947_vm6 = vcmp.eq.f32.partialorder %v4509_v42, 0.0 }
 0x2e5   : > { %vm1952_vm7 = vcmp.eq.f32.partialorder %v4523_v21, inf  ;;  %2894 = vrsqrt.f32 %v4577_v23  ;;  %v1789_v38 = vmul.f32 0.0025510204, %v4320_v43  ;;  %v2883_v45 = vpop.eup %2882  ;;  %v1932_v5 = vsel %vm1931_vm1, %v4461_v48, %v1930_v41 }
 0x2e6   : > { %2896 = vrsqrt.f32 %v4581_v3  ;;  %v4614_v63 = vadd.f32 1e-08, %v1786_v35  ;;  %v1790_v55 = vmul.f32 0.0025510204, %v4322_v27  ;;  %v1937_v31 = vmul.f32 %v2881_v51, %v4496_v47 }
 0x2e7   : > { %2898 = vrsqrt.f32 %v4587_v10  ;;  %v4619_v59 = vadd.f32 1e-08, %v1787_v58  ;;  %v1791_v53 = vmul.f32 0.0025510204, %v4324_v4  ;;  %v2885_v43 = vpop.eup %2884  ;;  %vm1954_vm8 = vcmp.eq.f32.partialorder %v4523_v21, 0.0 }
 0x2e8   : > { %v1955_v26 = vand.u32 2147483648, %v4523_v21  ;;  %vm1959_vm9 = vcmp.eq.f32.partialorder %v4531_v33, inf  ;;  %v4625_v50 = vadd.f32 1e-08, %v1788_v24  ;;  %v2887_v60 = vpop.eup %2886  ;;  %v1944_v27 = vmul.f32 %v2883_v45, %v4509_v42 }
 0x2e9   : > { %vm1961_vm10 = vcmp.eq.f32.partialorder %v4531_v33, 0.0  ;;  %v1962_v25 = vand.u32 2147483648, %v4531_v33  ;;  %v4630_v16 = vadd.f32 1e-08, %v1789_v38  ;;  %v4634_v4 = vsel %vm1933_vm2, %v1934_v1, %v1932_v5 }
 0x2ea   : > { %v2889_v8 = vpop.eup %2888  ;;  %vm1966_vm11 = vcmp.eq.f32.partialorder %v4541_v62, inf  ;;  %2900 = vrsqrt.f32 %v4614_v63  ;;  %v4638_v57 = vadd.f32 1e-08, %v1790_v55  ;;  %v1939_v37 = vsel %vm1938_vm3, %v4496_v47, %v1937_v31 }
 0x2eb   : > { %v1951_v39 = vmul.f32 %v2885_v43, %v4523_v21  ;;  %2902 = vrsqrt.f32 %v4619_v59  ;;  %v4645_v29 = vadd.f32 1e-08, %v1791_v53  ;;  %v2891_v18 = vpop.eup %2890  ;;  %v1958_v48 = vmul.f32 %v2887_v60, %v4531_v33 }
 0x2ec   : > { %vm1968_vm12 = vcmp.eq.f32.partialorder %v4541_v62, 0.0  ;;  %v1969_v9 = vand.u32 2147483648, %v4541_v62  ;;  %2904 = vrsqrt.f32 %v4625_v50  ;;  %v2893_v46 = vpop.eup %2892  ;;  %v1946_v1 = vsel %vm1945_vm5, %v4509_v42, %v1944_v27 }
 0x2ed   : > { %v1965_v61 = vmul.f32 %v2889_v8, %v4541_v62  ;;  %vm1973_vm13 = vcmp.eq.f32.partialorder %v4549_v44, inf  ;;  %2906 = vrsqrt.f32 %v4630_v16  ;;  %v4661_v17 = vsel %vm1940_vm4, %v1941_v14, %v1939_v37 }
 0x2ee   : > { %vm1975_vm14 = vcmp.eq.f32.partialorder %v4549_v44, 0.0  ;;  %v1976_v54 = vand.u32 2147483648, %v4549_v44  ;;  %2908 = vrsqrt.f32 %v4638_v57  ;;  %v1953_v28 = vsel %vm1952_vm7, %v4523_v21, %v1951_v39 }
 0x2ef   : > { %v2895_v0 = vpop.eup %2894  ;;  %v1972_v6 = vmul.f32 %v2891_v18, %v4549_v44  ;;  %vm1980_vm15 = vcmp.eq.f32.partialorder %v4558_v11, inf  ;;  %2910 = vrsqrt.f32 %v4645_v29  ;;  %v4674_v14 = vsel %vm1947_vm6, %v1948_v34, %v1946_v1 }
 0x2f0   : > { %v2897_v47 = vpop.eup %2896  ;;  %v1960_v41 = vsel %vm1959_vm9, %v4531_v33, %v1958_v48  ;;  %v1979_v35 = vmul.f32 %v2893_v46, %v4558_v11  ;;  %vm1982_vm0 = vcmp.eq.f32.partialorder %v4558_v11, 0.0  ;;  %v1967_v51 = vsel %vm1966_vm11, %v4541_v62, %v1965_v61 }
 0x2f1   : > { %v2899_v58 = vpop.eup %2898  ;;  %v1983_v24 = vand.u32 2147483648, %v4558_v11  ;;  %vm1987_vm1 = vcmp.eq.f32.partialorder %v4577_v23, inf  ;;  %vm1989_vm2 = vcmp.eq.f32.partialorder %v4577_v23, 0.0  ;;  %v4689_v42 = vsel %vm1954_vm8, %v1955_v26, %v1953_v28 }
 0x2f2   : > { %v1986_v34 = vmul.f32 %v2895_v0, %v4577_v23  ;;  %v1990_v38 = vand.u32 2147483648, %v4577_v23  ;;  %vm1994_vm3 = vcmp.eq.f32.partialorder %v4581_v3, inf  ;;  %v4696_v45 = vsel %vm1961_vm10, %v1962_v25, %v1960_v41 }
 0x2f3   : > { %v1974_v5 = vsel %vm1973_vm13, %v4549_v44, %v1972_v6  ;;  %v1993_v55 = vmul.f32 %v2897_v47, %v4581_v3  ;;  %vm1996_vm4 = vcmp.eq.f32.partialorder %v4581_v3, 0.0  ;;  %v4705_v31 = vsel %vm1968_vm12, %v1969_v9, %v1967_v51 }
 0x2f4   : > { %v2901_v21 = vpop.eup %2900  ;;  %v1981_v53 = vsel %vm1980_vm15, %v4558_v11, %v1979_v35  ;;  %v1997_v33 = vand.u32 2147483648, %v4581_v3  ;;  %v2000_v43 = vmul.f32 %v2899_v58, %v4587_v10  ;;  %vm2001_vm5 = vcmp.eq.f32.partialorder %v4587_v10, inf }
 0x2f5   : > { %v2903_v26 = vpop.eup %2902  ;;  %vm2003_vm6 = vcmp.eq.f32.partialorder %v4587_v10, 0.0  ;;  %v2004_v60 = vand.u32 2147483648, %v4587_v10  ;;  %vm2008_vm7 = vcmp.eq.f32.partialorder %v4614_v63, inf  ;;  %v4718_v27 = vsel %vm1975_vm14, %v1976_v54, %v1974_v5 }
 0x2f6   : > { %v2905_v62 = vpop.eup %2904  ;;  %v1988_v25 = vsel %vm1987_vm1, %v4577_v23, %v1986_v34  ;;  %vm2010_vm8 = vcmp.eq.f32.partialorder %v4614_v63, 0.0  ;;  %v2011_v8 = vand.u32 2147483648, %v4614_v63  ;;  %v4727_v39 = vsel %vm1982_vm0, %v1983_v24, %v1981_v53 }
 0x2f7   : > { %v2907_v37 = vpop.eup %2906  ;;  %v1995_v44 = vsel %vm1994_vm3, %v4581_v3, %v1993_v55  ;;  %vm2015_vm9 = vcmp.eq.f32.partialorder %v4619_v59, inf  ;;  %vm2017_vm10 = vcmp.eq.f32.partialorder %v4619_v59, 0.0  ;;  %v2002_v48 = vsel %vm2001_vm5, %v4587_v10, %v2000_v43 }
 0x2f8   : > { %v2909_v18 = vpop.eup %2908  ;;  %v2007_v9 = vmul.f32 %v2901_v21, %v4614_v63  ;;  %v2018_v46 = vand.u32 2147483648, %v4619_v59  ;;  %vm2022_vm11 = vcmp.eq.f32.partialorder %v4625_v50, inf  ;;  %v4742_v1 = vsel %vm1989_vm2, %v1990_v38, %v1988_v25 }
 0x2f9   : > { %v2911_v11 = vpop.eup %2910  ;;  %vm2024_vm12 = vcmp.eq.f32.partialorder %v4625_v50, 0.0  ;;  %v2025_v61 = vand.u32 2147483648, %v4625_v50  ;;  %v4750_v0 = vsel %vm1996_vm4, %v1997_v33, %v1995_v44  ;;  %v2014_v28 = vmul.f32 %v2903_v26, %v4619_v59 }
 0x2fa   : > { %vm2029_vm13 = vcmp.eq.f32.partialorder %v4630_v16, inf  ;;  %vm2031_vm14 = vcmp.eq.f32.partialorder %v4630_v16, 0.0  ;;  %v4757_v23 = vsel %vm2003_vm6, %v2004_v60, %v2002_v48  ;;  %v2021_v6 = vmul.f32 %v2905_v62, %v4625_v50 }
 0x2fb   : > { %v2028_v47 = vmul.f32 %v2907_v37, %v4630_v16  ;;  %v2032_v41 = vand.u32 2147483648, %v4630_v16  ;;  %v2009_v3 = vsel %vm2008_vm7, %v4614_v63, %v2007_v9  ;;  %v2035_v35 = vmul.f32 %v2909_v18, %v4638_v57 }
 0x2fc   : > { %v2042_v58 = vmul.f32 %v2911_v11, %v4645_v29  ;;  %vm2036_vm15 = vcmp.eq.f32.partialorder %v4638_v57, inf  ;;  %vm2038_vm0 = vcmp.eq.f32.partialorder %v4638_v57, 0.0  ;;  %v2039_v10 = vand.u32 2147483648, %v4638_v57 }
 0x2fd   : > { %s2436_s8 = spop %2435  ;;  %v2016_v34 = vsel %vm2015_vm9, %v4619_v59, %v2014_v28  ;;  %vm2043_vm1 = vcmp.eq.f32.partialorder %v4645_v29, inf  ;;  %vm2045_vm2 = vcmp.eq.f32.partialorder %v4645_v29, 0.0  ;;  %v2012_v38 = vsel %vm2010_vm8, %v2011_v8, %v2009_v3 }
 0x2fe   : > { %v4746_v54 = vstv %s2436_s8  ;;  %v2023_v5 = vsel %vm2022_vm11, %v4625_v50, %v2021_v6  ;;  %v2037_v21 = vsel %vm2036_vm15, %v4638_v57, %v2035_v35  ;;  %v2044_v53 = vsel %vm2043_vm1, %v4645_v29, %v2042_v58 }
 0x2ff   : > { %v2049_v51 = vmul.f32 %v4746_v54, %v4403_v7  ;;  %v2050_v24 = vmul.f32 %v4746_v54, %v4410_v13  ;;  %v2051_v7 = vmul.f32 %v4746_v54, %v4436_v40  ;;  %v2030_v13 = vsel %vm2029_vm13, %v4630_v16, %v2028_v47 }
 0x300   : > { %v2052_v55 = vmul.f32 %v4746_v54, %v4443_v56  ;;  %v2053_v40 = vmul.f32 %v4746_v54, %v4465_v49  ;;  %v2019_v33 = vsel %vm2017_vm10, %v2018_v46, %v2016_v34  ;;  %v2046_v43 = vand.u32 2147483648, %v4645_v29 }
 0x301   : > { %v2081_v63 = vmul.f32 0.5, %v2049_v51  ;;  %v2054_v26 = vmul.f32 %v4746_v54, %v4474_v19  ;;  %v2082_v60 = vmul.f32 0.5, %v2050_v24  ;;  %v2026_v56 = vsel %vm2024_vm12, %v2025_v61, %v2023_v5 }
 0x302   : > { %v2033_v62 = vsel %vm2031_vm14, %v2032_v41, %v2030_v13  ;;  %v2055_v25 = vmul.f32 %v4746_v54, %v4481_v15  ;;  %v2083_v49 = vmul.f32 0.5, %v2051_v7  ;;  %v2040_v59 = vsel %vm2038_vm0, %v2039_v10, %v2037_v21 }
 0x303   : > { %v2047_v8 = vsel %vm2045_vm2, %v2046_v43, %v2044_v53  ;;  %v2056_v19 = vmul.f32 %v4746_v54, %v4489_v32  ;;  %v2084_v37 = vmul.f32 0.5, %v2052_v55  ;;  %v2057_v50 = vmul.f32 %v4746_v54, %v4519_v22 }
 0x304   : > { %v2058_v16 = vmul.f32 %v4746_v54, %v4528_v20  ;;  %v2085_v44 = vmul.f32 0.5, %v2053_v40  ;;  %2912 = vtanh.f32 %v2081_v63  ;;  %v2059_v15 = vmul.f32 %v4746_v54, %v4554_v36 }
 0x305   : > { %v2060_v57 = vmul.f32 %v4746_v54, %v4563_v2  ;;  %v2086_v29 = vmul.f32 0.5, %v2054_v26  ;;  %2914 = vtanh.f32 %v2082_v60  ;;  %v2061_v32 = vmul.f32 %v4746_v54, %v4594_v52 }
 0x306   : > { %v2062_v18 = vmul.f32 %v4746_v54, %v4598_v12  ;;  %v2087_v22 = vmul.f32 0.5, %v2055_v25  ;;  %2916 = vtanh.f32 %v2083_v49  ;;  %v2063_v20 = vmul.f32 %v4746_v54, %v4604_v30 }
 0x307   : > { %v2064_v48 = vmul.f32 %v4746_v54, %v4634_v4  ;;  %v2088_v36 = vmul.f32 0.5, %v2056_v19  ;;  %2918 = vtanh.f32 %v2084_v37  ;;  %v2065_v2 = vmul.f32 %v4746_v54, %v4661_v17 }
 0x308   : > { %v2066_v9 = vmul.f32 %v4746_v54, %v4674_v14  ;;  %v2089_v52 = vmul.f32 0.5, %v2057_v50  ;;  %2920 = vtanh.f32 %v2085_v44  ;;  %v2067_v12 = vmul.f32 %v4746_v54, %v4689_v42 }
 0x309   : > { %v2068_v30 = vmul.f32 %v4746_v54, %v4696_v45  ;;  %v2090_v46 = vmul.f32 0.5, %v2058_v16  ;;  %2922 = vtanh.f32 %v2086_v29  ;;  %v2069_v4 = vmul.f32 %v4746_v54, %v4705_v31 }
 0x30a   : > { %v2070_v17 = vmul.f32 %v4746_v54, %v4718_v27  ;;  %v2091_v11 = vmul.f32 0.5, %v2059_v15  ;;  %2924 = vtanh.f32 %v2087_v22  ;;  %v2071_v14 = vmul.f32 %v4746_v54, %v4727_v39 }
 0x30b   : > { %v2072_v42 = vmul.f32 %v4746_v54, %v4742_v1  ;;  %v2092_v61 = vmul.f32 0.5, %v2060_v57  ;;  %2926 = vtanh.f32 %v2088_v36  ;;  %v4846_v45 = vmul.f32 %v4746_v54, %v4750_v0 }
 0x30c   : > { %v4850_v31 = vmul.f32 %v4746_v54, %v4757_v23  ;;  %v2093_v28 = vmul.f32 0.5, %v2061_v32  ;;  %2928 = vtanh.f32 %v2089_v52  ;;  %v4854_v27 = vmul.f32 %v4746_v54, %v2012_v38 }
 0x30d   : > { %v4857_v39 = vmul.f32 %v4746_v54, %v2019_v33  ;;  %v2094_v1 = vmul.f32 0.5, %v2062_v18  ;;  %2930 = vtanh.f32 %v2090_v46  ;;  %v4860_v47 = vmul.f32 %v4746_v54, %v2026_v56 }
 0x30e   : > { %v2913_v6 = vpop.eup %2912  ;;  %v4863_v0 = vmul.f32 %v4746_v54, %v2033_v62  ;;  %v2095_v23 = vmul.f32 0.5, %v2063_v20  ;;  %2932 = vtanh.f32 %v2091_v11  ;;  %v4866_v3 = vmul.f32 %v4746_v54, %v2040_v59 }
 0x30f   : > { %v2915_v41 = vpop.eup %2914  ;;  %v2096_v35 = vmul.f32 0.5, %v2064_v48  ;;  %2934 = vtanh.f32 %v2092_v61  ;;  %v2145_v58 = vadd.f32 1.0, %v2913_v6  ;;  %v4869_v10 = vmul.f32 %v4746_v54, %v2047_v8 }
 0x310   : > { %v2917_v51 = vpop.eup %2916  ;;  %v2097_v24 = vmul.f32 0.5, %v2065_v2  ;;  %2936 = vtanh.f32 %v2093_v28  ;;  %v2146_v34 = vadd.f32 1.0, %v2915_v41  ;;  %v2098_v38 = vmul.f32 0.5, %v2066_v9 }
 0x311   : > { %v2919_v7 = vpop.eup %2918  ;;  %2938 = vtanh.f32 %v2094_v1  ;;  %v2147_v5 = vadd.f32 1.0, %v2917_v51  ;;  %v2177_v13 = vmul.f32 0.5, %v2145_v58  ;;  %v2099_v21 = vmul.f32 0.5, %v2067_v12 }
 0x312   : > { %v2921_v55 = vpop.eup %2920  ;;  %2940 = vtanh.f32 %v2095_v23  ;;  %v2148_v53 = vadd.f32 1.0, %v2919_v7  ;;  %v2178_v40 = vmul.f32 0.5, %v2146_v34  ;;  %v2100_v33 = vmul.f32 0.5, %v2068_v30 }
 0x313   : > { %v2923_v63 = vpop.eup %2922  ;;  %2942 = vtanh.f32 %v2096_v35  ;;  %v2149_v43 = vadd.f32 1.0, %v2921_v55  ;;  %v2179_v54 = vmul.f32 0.5, %v2147_v5  ;;  %2209 = vst [vmem:[%s4873_s26] sm:$0xff] %v2177_v13  ;;  %v2101_v60 = vmul.f32 0.5, %v2069_v4 }
 0x314   : > { %v2925_v26 = vpop.eup %2924  ;;  %2944 = vtanh.f32 %v2097_v24  ;;  %v2150_v56 = vadd.f32 1.0, %v2923_v63  ;;  %v2180_v62 = vmul.f32 0.5, %v2148_v53  ;;  %2210 = vst [vmem:[%s4873_s26 + $0x8] sm:$0xff] %v2178_v40  ;;  %v2102_v49 = vmul.f32 0.5, %v2070_v17 }
 0x315   : > { %v2927_v25 = vpop.eup %2926  ;;  %2946 = vtanh.f32 %v2098_v38  ;;  %v2151_v59 = vadd.f32 1.0, %v2925_v26  ;;  %v2181_v8 = vmul.f32 0.5, %v2149_v43  ;;  %2211 = vst [vmem:[%s4873_s26 + $0x10] sm:$0xff] %v2179_v54  ;;  %v2103_v37 = vmul.f32 0.5, %v2071_v14 }
 0x316   : > { %v2929_v19 = vpop.eup %2928  ;;  %2948 = vtanh.f32 %v2099_v21  ;;  %v2152_v50 = vadd.f32 1.0, %v2927_v25  ;;  %v2182_v16 = vmul.f32 0.5, %v2150_v56  ;;  %2212 = vst [vmem:[%s4873_s26 + $0x18] sm:$0xff] %v2180_v62  ;;  %v2104_v15 = vmul.f32 0.5, %v2072_v42 }
 0x317   : > { %v2931_v44 = vpop.eup %2930  ;;  %2950 = vtanh.f32 %v2100_v33  ;;  %v2153_v57 = vadd.f32 1.0, %v2929_v19  ;;  %v2183_v29 = vmul.f32 0.5, %v2151_v59  ;;  %2213 = vst [vmem:[%s4873_s26 + $0x20] sm:$0xff] %v2181_v8  ;;  %v2105_v18 = vmul.f32 0.5, %v4846_v45 }
 0x318   : > { %v2933_v32 = vpop.eup %2932  ;;  %2952 = vtanh.f32 %v2101_v60  ;;  %v2154_v22 = vadd.f32 1.0, %v2931_v44  ;;  %v2184_v20 = vmul.f32 0.5, %v2152_v50  ;;  %2214 = vst [vmem:[%s4873_s26 + $0x28] sm:$0xff] %v2182_v16  ;;  %v2106_v36 = vmul.f32 0.5, %v4850_v31 }
 0x319   : > { %v2935_v48 = vpop.eup %2934  ;;  %2954 = vtanh.f32 %v2102_v49  ;;  %v2155_v2 = vadd.f32 1.0, %v2933_v32  ;;  %v2185_v9 = vmul.f32 0.5, %v2153_v57  ;;  %2215 = vst [vmem:[%s4873_s26 + $0x30] sm:$0xff] %v2183_v29  ;;  %v2107_v12 = vmul.f32 0.5, %v4854_v27 }
 0x31a   : > { %v2937_v52 = vpop.eup %2936  ;;  %2956 = vtanh.f32 %v2103_v37  ;;  %v2156_v30 = vadd.f32 1.0, %v2935_v48  ;;  %v2186_v46 = vmul.f32 0.5, %v2154_v22  ;;  %2216 = vst [vmem:[%s4873_s26 + $0x38] sm:$0xff] %v2184_v20  ;;  %v2108_v17 = vmul.f32 0.5, %v4857_v39 }
 0x31b   : > { %v2939_v4 = vpop.eup %2938  ;;  %2958 = vtanh.f32 %v2104_v15  ;;  %v2157_v11 = vadd.f32 1.0, %v2937_v52  ;;  %v2187_v14 = vmul.f32 0.5, %v2155_v2  ;;  %2217 = vst [vmem:[%s4873_s26 + $0x40] sm:$0xff] %v2185_v9  ;;  %v2109_v61 = vmul.f32 0.5, %v4860_v47 }
 0x31c   : > { %v2941_v42 = vpop.eup %2940  ;;  %2960 = vtanh.f32 %v2105_v18  ;;  %v2158_v45 = vadd.f32 1.0, %v2939_v4  ;;  %v2188_v31 = vmul.f32 0.5, %v2156_v30  ;;  %2218 = vst [vmem:[%s4873_s26 + $0x48] sm:$0xff] %v2186_v46  ;;  %v2110_v27 = vmul.f32 0.5, %v4863_v0 }
 0x31d   : > { %v2943_v28 = vpop.eup %2942  ;;  %2962 = vtanh.f32 %v2106_v36  ;;  %v2159_v1 = vadd.f32 1.0, %v2941_v42  ;;  %v2189_v39 = vmul.f32 0.5, %v2157_v11  ;;  %2219 = vst [vmem:[%s4873_s26 + $0x50] sm:$0xff] %v2187_v14  ;;  %v2111_v23 = vmul.f32 0.5, %v4866_v3 }
 0x31e   : > { %v2945_v6 = vpop.eup %2944  ;;  %2964 = vtanh.f32 %v2107_v12  ;;  %v2160_v41 = vadd.f32 1.0, %v2943_v28  ;;  %v2190_v47 = vmul.f32 0.5, %v2158_v45  ;;  %2220 = vst [vmem:[%s4873_s26 + $0x58] sm:$0xff] %v2188_v31  ;;  %v2112_v58 = vmul.f32 0.5, %v4869_v10 }
 0x31f   : > { %v2947_v35 = vpop.eup %2946  ;;  %2966 = vtanh.f32 %v2108_v17  ;;  %v2161_v51 = vadd.f32 1.0, %v2945_v6  ;;  %v2191_v0 = vmul.f32 0.5, %v2159_v1  ;;  %2221 = vst [vmem:[%s4873_s26 + $0x60] sm:$0xff] %v2189_v39 }
 0x320   : > { %v2949_v24 = vpop.eup %2948  ;;  %2968 = vtanh.f32 %v2109_v61  ;;  %v2162_v34 = vadd.f32 1.0, %v2947_v35  ;;  %v2192_v7 = vmul.f32 0.5, %v2160_v41  ;;  %2222 = vst [vmem:[%s4873_s26 + $0x68] sm:$0xff] %v2190_v47 }
 0x321   : > { %v2951_v3 = vpop.eup %2950  ;;  %2970 = vtanh.f32 %v2110_v27  ;;  %v2163_v38 = vadd.f32 1.0, %v2949_v24  ;;  %v2193_v5 = vmul.f32 0.5, %v2161_v51  ;;  %2223 = vst [vmem:[%s4873_s26 + $0x70] sm:$0xff] %v2191_v0 }
 0x322   : > { %v2953_v13 = vpop.eup %2952  ;;  %2972 = vtanh.f32 %v2111_v23  ;;  %v2164_v10 = vadd.f32 1.0, %v2951_v3  ;;  %v2194_v55 = vmul.f32 0.5, %v2162_v34  ;;  %2224 = vst [vmem:[%s4873_s26 + $0x78] sm:$0xff] %v2192_v7 }
 0x323   : > { %v2955_v21 = vpop.eup %2954  ;;  %2974 = vtanh.f32 %v2112_v58  ;;  %v2165_v53 = vadd.f32 1.0, %v2953_v13  ;;  %v2195_v40 = vmul.f32 0.5, %v2163_v38  ;;  %2225 = vst [vmem:[%s4873_s26 + $0x80] sm:$0xff] %v2193_v5 }
 0x324   : > { %v2957_v63 = vpop.eup %2956  ;;  %v2166_v33 = vadd.f32 1.0, %v2955_v21  ;;  %v2196_v43 = vmul.f32 0.5, %v2164_v10  ;;  %2226 = vst [vmem:[%s4873_s26 + $0x88] sm:$0xff] %v2194_v55 }
 0x325   : > { %v2959_v54 = vpop.eup %2958  ;;  %v2167_v26 = vadd.f32 1.0, %v2957_v63  ;;  %v2197_v60 = vmul.f32 0.5, %v2165_v53  ;;  %2227 = vst [vmem:[%s4873_s26 + $0x90] sm:$0xff] %v2195_v40 }
 0x326   : > { %v2961_v56 = vpop.eup %2960  ;;  %v2168_v62 = vadd.f32 1.0, %v2959_v54  ;;  %v2198_v25 = vmul.f32 0.5, %v2166_v33  ;;  %2228 = vst [vmem:[%s4873_s26 + $0x98] sm:$0xff] %v2196_v43 }
 0x327   : > { %v2963_v49 = vpop.eup %2962  ;;  %v2169_v59 = vadd.f32 1.0, %v2961_v56  ;;  %v2199_v8 = vmul.f32 0.5, %v2167_v26  ;;  %2229 = vst [vmem:[%s4873_s26 + $0xa0] sm:$0xff] %v2197_v60 }
 0x328   : > { %v2965_v19 = vpop.eup %2964  ;;  %v2170_v37 = vadd.f32 1.0, %v2963_v49  ;;  %v2200_v50 = vmul.f32 0.5, %v2168_v62  ;;  %2230 = vst [vmem:[%s4873_s26 + $0xa8] sm:$0xff] %v2198_v25 }
 0x329   : > { %v2967_v16 = vpop.eup %2966  ;;  %v2171_v44 = vadd.f32 1.0, %v2965_v19  ;;  %v2201_v15 = vmul.f32 0.5, %v2169_v59  ;;  %2231 = vst [vmem:[%s4873_s26 + $0xb0] sm:$0xff] %v2199_v8 }
 0x32a   : > { %v2969_v57 = vpop.eup %2968  ;;  %v2172_v29 = vadd.f32 1.0, %v2967_v16  ;;  %v2202_v32 = vmul.f32 0.5, %v2170_v37  ;;  %2232 = vst [vmem:[%s4873_s26 + $0xb8] sm:$0xff] %v2200_v50 }
 0x32b   : > { %v2971_v18 = vpop.eup %2970  ;;  %v2173_v22 = vadd.f32 1.0, %v2969_v57  ;;  %v2203_v20 = vmul.f32 0.5, %v2171_v44  ;;  %2233 = vst [vmem:[%s4873_s26 + $0xc0] sm:$0xff] %v2201_v15 }
 0x32c   : > { %v2973_v48 = vpop.eup %2972  ;;  %v2174_v36 = vadd.f32 1.0, %v2971_v18  ;;  %v2204_v2 = vmul.f32 0.5, %v2172_v29  ;;  %2234 = vst [vmem:[%s4873_s26 + $0xc8] sm:$0xff] %v2202_v32 }
 0x32d   : > { %v2975_v9 = vpop.eup %2974  ;;  %v2175_v52 = vadd.f32 1.0, %v2973_v48  ;;  %v2205_v12 = vmul.f32 0.5, %v2173_v22  ;;  %2235 = vst [vmem:[%s4873_s26 + $0xd0] sm:$0xff] %v2203_v20 }
 0x32e   : > { %v2176_v30 = vadd.f32 1.0, %v2975_v9  ;;  %v2206_v46 = vmul.f32 0.5, %v2174_v36  ;;  %2236 = vst [vmem:[%s4873_s26 + $0xd8] sm:$0xff] %v2204_v2 }
 0x32f   : > { %v2207_v4 = vmul.f32 0.5, %v2175_v52  ;;  %2237 = vst [vmem:[%s4873_s26 + $0xe0] sm:$0xff] %v2205_v12 }
 0x330   : > { %v2208_v17 = vmul.f32 0.5, %v2176_v30  ;;  %2238 = vst [vmem:[%s4873_s26 + $0xe8] sm:$0xff] %v2206_v46 }
 0x331   : > { %2239 = vst [vmem:[%s4873_s26 + $0xf0] sm:$0xff] %v2207_v4 }
 0x332   : > { %2240 = vst [vmem:[%s4873_s26 + $0xf8] sm:$0xff] %v2208_v17 }
 0x333   : > { %3049 = shalt.err (!%p3046_p12)
}
 0x334   : > { %s3050_s0 = scalar_lea.hbm %s4918_s30, 4096  ;;  %s3054_s26 = scalar_lea.hbm %s4988_s2, 16384 }
 0x335   : > { %p3051_p4 = scmp.ne.s32.totalorder %s4918_s30, %s3050_s0  ;;  %p3055_p3 = scmp.lt.u32.totalorder %s4918_s30, %s4988_s2 }
 0x336   : > { %p3056_p11 = scmp.lt.u32.totalorder %s3054_s26, %s3050_s0  ;;  %p3058_p2 = scmp.lt.u32.totalorder %s3050_s0, %s4918_s30 }
 0x337   : > { %p3052_p13 = pnand %p3051_p4, %p5018_p1 }
 0x338   : > { %p3057_p6 = por %p3056_p11, %p3055_p3 }
 0x339   : > { %p3053_p0 = pneg %p3052_p13 }
 0x33a   : > { %p3059_p10 = por %p3058_p2, %p3057_p6 }
 0x33c   : > { %p3060_p7 = pnand %p3059_p10, %p3053_p0 }
 0x33e   : > { %3063 = shalt.err (!%p3060_p7)
}
 0x33f   : > { %s3172_s4 = smov 256   ;;  %s3173_s15 = smov 16  }
 0x340   : > { %2441 = dma.vmem_to_hbm [thread:$0]  (%p5018_p1), %s4920_s16, 4096, %s4918_s30, %s2242_s25, %s3172_s4, %s3172_s4, %s3173_s15  }
 0x341 PF: > { %s5019_s22 = sld [smem:[#allocation13_spill]]  ;;  %p2455_p9 = scmp.ge.s32.totalorder %s3162_s19, 2 }
 0x342   : > { %s2273_s27 = sand.u32 1, %s3122_s9  }
 0x343   : > { %s2274_s24 = scalar_lea.sflag [#allocation4], %s2273_s27 }
 0x347   : > { %p5020_p5 = scmp.ne.s32.totalorder %s5019_s22, 0 }
 0x349   : > { %p2451_p8 = pnand %p2455_p9, %p5020_p5 }
 0x34b   : > { %3117 = dma.done.wait (!%p2451_p8), %s2274_s24, 4096  }
 0x34c   : > { %3119 = vsyncadd (!%p2451_p8), %s2274_s24, 4294963200  ;;  %s21_s19 = sadd.s32 1, %s3162_s19   ;;  %s5021_s6 = smov %s3361_s12 }
 0x34d   : > { %p18_p12 = scmp.ge.s32.totalorder %s21_s19, 6   ;;  %s5022_s7 = sld [smem:[#allocation11_spill]] }
 0x34e   : > { %s5023_s30 = sld [smem:[#allocation12_spill]]  ;;  %s5024_s9 = smov %s3126_s10 }
 0x34f   : > { %s5025_s10 = smov %s3130_s11  ;;  %s5026_s11 = smov %s3364_s20 }
 0x350   : > { %s5027_s12 = smov %s3138_s13  ;;  %s5028_s13 = smov %s3142_s14 }
 0x351   : > { %s5029_s14 = smov %s5021_s6  ;;  %s5030_s15 = smov %s3154_s17 }
 0x352   : > { %s5031_s16 = smov %s3158_s18  ;;  %20 = sbr.rel (!%p18_p12) target bundleno = 13 (0xd), region = 86 }
 0x353   : > { %s5032_s17 = smov %s5022_s7 }
 0x354   : > { %s5033_s18 = smov %s5023_s30 }
 0x359   :  { %2279 = vsyncpa [#allocation3], 1 }
 0x35a   :  { %2281 = vsyncpa [#allocation3 + $0x1], 1 }
 0x35b   :  { %2282 = vsyncpa [#allocation6], 1 }
 0x35c   :  { %2284 = vsyncpa [#allocation6 + $0x1], 1 }
 0x35d   :  { %2285 = vsyncpa [#allocation4], 1 }
 0x35e   :  { %2287 = vsyncpa [#allocation4 + $0x1], 1 }

</bundles_post_ra>
